<compile_context>
chip_gen: v6e
topology: v6e:2x2x1
jax: 0.10.0
libtpu: 0.0.40
codegen_flags: <defaults>
</compile_context>

<pallas_src>
import jax
import jax.numpy as jnp
from jax.experimental import pallas as pl
from jax.experimental.pallas import tpu as pltpu


BN_EPS = 1e-5
ML_PAD = 128          # padded width of the fused mu|logvar projection (lane-dense)
DEC_COL_BLK = 256     # recon column-slab width per grid step (2 lane tiles)


def _bn_train(h, gamma, beta):
    """BatchNorm1d, training mode: single-pass batch stats (sum and
    sum-of-squares together), biased variance, eps=1e-5, all f32."""
    inv_n = 1.0 / h.shape[0]
    mean = jnp.sum(h, axis=0, keepdims=True) * inv_n
    meansq = jnp.sum(h * h, axis=0, keepdims=True) * inv_n
    var = meansq - mean * mean
    return (h - mean) * jax.lax.rsqrt(var + BN_EPS) * gamma + beta


def vae_kernel(
    # inputs
    x_ref, eps_ref,
    w1_ref, wml_ref, w2_ref, w3_ref,
    p1_ref, pml_ref, p2_ref, p3_ref,
    # outputs
    recon_ref, mulogvar_ref,
    # scratch
    h2_ref,
):
    latent = eps_ref.shape[1]
    dot_dtype = w1_ref.dtype            # f32, or bf16 on the fast MXU path

    # ---- encode + reparameterize + fc2/BN2: once, on the first column step ----
    @pl.when(pl.program_id(0) == 0)
    def _encode():
        p1 = p1_ref[...]                # rows: [bias; gamma; beta]
        pml = pml_ref[...]
        p2 = p2_ref[...]

        # cast x to the MXU operand dtype in-kernel (free VPU filler).
        x = x_ref[...].astype(dot_dtype)
        h1 = jnp.dot(x, w1_ref[...], preferred_element_type=jnp.float32) + p1[0:1]
        h1 = jnp.maximum(_bn_train(h1, p1[1:2], p1[2:3]), 0.0)

        # fused mu|logvar projection: one dot + one BN over a lane-dense 128-col slab
        ml = (jnp.dot(h1.astype(dot_dtype), wml_ref[...],
                      preferred_element_type=jnp.float32) + pml[0:1])
        ml = _bn_train(ml, pml[1:2], pml[2:3])
        mulogvar_ref[...] = ml          # output block resident; flushed at grid end

        mu = ml[:, :latent]
        logvar = ml[:, latent:2 * latent]
        z = mu + jnp.exp(0.5 * logvar) * eps_ref[...]

        # fc2: K = latent (tiny) contraction -> VPU broadcast-FMAs, skip the MXU.
        w2 = w2_ref[...]
        h2 = z[:, 0:1] * w2[0:1, :]
        for k in range(1, latent):
            h2 = h2 + z[:, k:k + 1] * w2[k:k + 1, :]
        h2 = h2 + p2[0:1]
        h2 = jnp.maximum(_bn_train(h2, p2[1:2], p2[2:3]), 0.0)
        h2_ref[...] = h2.astype(h2_ref.dtype)   # persists across column steps

    # ---- decode: one recon column slab per step (w3 load / recon writeback
    #      overlap with compute via the BlockSpec pipeline) ----
    p3 = p3_ref[...]
    r = (jnp.dot(h2_ref[...], w3_ref[...],
                 preferred_element_type=jnp.float32) + p3[0:1])
    recon_ref[...] = _bn_train(r, p3[1:2], p3[2:3])


def prepare_params(params, use_bf16=False):
    """One-time parameter repacking.  Run OUTSIDE the per-call hot path.

    Fuses the mu/logvar projections (padded to 128 lane-dense columns), packs
    per-layer (bias, gamma, beta) into (3, dim) slabs, zero-pads the decode
    output dimension to a multiple of DEC_COL_BLK (gamma padded with 1), and
    casts the MXU operands to bf16 when requested (valid on v5e/v6e/v7x; all
    BatchNorm / elementwise math stays in f32 inside the kernel)."""
    dot_dtype = jnp.bfloat16 if use_bf16 else jnp.float32

    in_dim, hdim = params["w1"].shape
    latent = params["wmu"].shape[1]
    assert 2 * latent <= ML_PAD

    out_pad = pl.cdiv(in_dim, DEC_COL_BLK) * DEC_COL_BLK
    pad = out_pad - in_dim
    ml_pad = ML_PAD - 2 * latent

    def pack3(b, g, be, pad_cols=0):
        if pad_cols:
            b = jnp.pad(b, ((0, 0), (0, pad_cols)))
            g = jnp.pad(g, ((0, 0), (0, pad_cols)), constant_values=1.0)
            be = jnp.pad(be, ((0, 0), (0, pad_cols)))
        return jnp.concatenate([b, g, be], axis=0)

    wml = jnp.pad(jnp.concatenate([params["wmu"], params["wlv"]], axis=1),
                  ((0, 0), (0, ml_pad)))
    pml = pack3(jnp.concatenate([params["bmu"], params["blv"]], axis=1),
                jnp.concatenate([params["gmu"], params["glv"]], axis=1),
                jnp.concatenate([params["bemu"], params["belv"]], axis=1),
                pad_cols=ml_pad)

    return dict(
        w1=params["w1"].astype(dot_dtype),
        wml=wml.astype(dot_dtype),
        w2=params["w2"],                                           # f32 (VPU fc2 path)
        w3=jnp.pad(params["w3"], ((0, 0), (0, pad))).astype(dot_dtype),
        p1=pack3(params["b1"], params["g1"], params["be1"]),
        pml=pml,
        p2=pack3(params["b2"], params["g2"], params["be2"]),
        p3=pack3(params["b3"], params["g3"], params["be3"], pad_cols=pad),
    )


@jax.jit
def vae_forward(x, eps, prep):
    """VAE forward (training-mode semantics).  `prep` must come from
    prepare_params() -- all constant packing is hoisted out of this path.

    Returns (recon_padded, mu, logvar); recon_padded[:, :784] is the
    reconstruction.  The padded tensor is returned as-is to avoid a full-copy
    slice in the hot path; consumers slice once downstream if needed."""
    B, in_dim = x.shape
    latent = eps.shape[1]
    hdim = prep["w1"].shape[1]
    out_pad = prep["w3"].shape[1]
    n_steps = out_pad // DEC_COL_BLK
    dot_dtype = prep["w1"].dtype

    const = lambda j: (0, 0)
    col = lambda j: (0, j)

    recon_p, ml = pl.pallas_call(
        vae_kernel,
        out_shape=(
            jax.ShapeDtypeStruct((B, out_pad), jnp.float32),   # lane-padded recon
            jax.ShapeDtypeStruct((B, ML_PAD), jnp.float32),    # mu | logvar (padded)
        ),
        grid_spec=pltpu.PrefetchScalarGridSpec(
            num_scalar_prefetch=0,
            grid=(n_steps,),
            in_specs=[
                pl.BlockSpec((B, in_dim), const),         # x (resident, unpadded)
                pl.BlockSpec((B, latent), const),         # eps
                pl.BlockSpec((in_dim, hdim), const),      # w1
                pl.BlockSpec((hdim, ML_PAD), const),      # fused wmu|wlogvar
                pl.BlockSpec((latent, hdim), const),      # w2
                pl.BlockSpec((hdim, DEC_COL_BLK), col),   # w3 column slab
                pl.BlockSpec((3, hdim), const),           # p1  [bias;gamma;beta]
                pl.BlockSpec((3, ML_PAD), const),         # pml
                pl.BlockSpec((3, hdim), const),           # p2
                pl.BlockSpec((3, DEC_COL_BLK), col),      # p3 column slab
            ],
            out_specs=(
                pl.BlockSpec((B, DEC_COL_BLK), col),      # recon column slab
                pl.BlockSpec((B, ML_PAD), const),         # mu|logvar (resident)
            ),
            scratch_shapes=[pltpu.VMEM((B, hdim), dot_dtype)],   # h2, carried
        ),
        # scratch-carried encode => sequential axis; no vmem override needed
        # (~3 MiB footprint fits v5e/v6e/v7x default scoped VMEM).
        compiler_params=pltpu.CompilerParams(dimension_semantics=("arbitrary",)),
    )(x, eps, prep["w1"], prep["wml"], prep["w2"], prep["w3"],
      prep["p1"], prep["pml"], prep["p2"], prep["p3"])

    mu = ml[:, :latent]
    logvar = ml[:, latent:2 * latent]
    return recon_p, mu, logvar


def init_params(key, in_dim=784, hdim=128, latent_dim=2):
    """Deterministic synthetic parameters (PyTorch-like init, weights stored
    pre-transposed as (in_features, out_features) so the kernel does x @ W)."""
    ks = jax.random.split(key, 5)

    def linear(k, fan_in, fan_out):
        bound = 1.0 / jnp.sqrt(fan_in)
        kw, kb = jax.random.split(k)
        w = jax.random.uniform(kw, (fan_in, fan_out), jnp.float32, -bound, bound)
        b = jax.random.uniform(kb, (1, fan_out), jnp.float32, -bound, bound)
        return w, b

    w1, b1 = linear(ks[0], in_dim, hdim)
    wmu, bmu = linear(ks[1], hdim, latent_dim)
    wlv, blv = linear(ks[2], hdim, latent_dim)
    w2, b2 = linear(ks[3], latent_dim, hdim)
    w3, b3 = linear(ks[4], hdim, in_dim)

    def bn(dim):  # PyTorch BatchNorm1d init: weight=1, bias=0
        return jnp.ones((1, dim), jnp.float32), jnp.zeros((1, dim), jnp.float32)

    g1, be1 = bn(hdim)
    gmu, bemu = bn(latent_dim)
    glv, belv = bn(latent_dim)
    g2, be2 = bn(hdim)
    g3, be3 = bn(in_dim)

    return dict(
        w1=w1, b1=b1, g1=g1, be1=be1,
        wmu=wmu, bmu=bmu, gmu=gmu, bemu=bemu,
        wlv=wlv, blv=blv, glv=glv, belv=belv,
        w2=w2, b2=b2, g2=g2, be2=be2,
        w3=w3, b3=b3, g3=g3, be3=be3,
    )


def reference_forward(x, eps, p):
    """Pure-JAX reference mirroring the PyTorch forward (training mode)."""
    def bn(h, g, b):
        m = jnp.mean(h, axis=0, keepdims=True)
        v = jnp.mean((h - m) ** 2, axis=0, keepdims=True)
        return (h - m) / jnp.sqrt(v + BN_EPS) * g + b

    h1 = jnp.maximum(bn(x @ p["w1"] + p["b1"], p["g1"], p["be1"]), 0.0)
    mu = bn(h1 @ p["wmu"] + p["bmu"], p["gmu"], p["bemu"])
    logvar = bn(h1 @ p["wlv"] + p["blv"], p["glv"], p["belv"])
    z = mu + jnp.exp(0.5 * logvar) * eps
    h2 = jnp.maximum(bn(z @ p["w2"] + p["b2"], p["g2"], p["be2"]), 0.0)
    recon = bn(h2 @ p["w3"] + p["b3"], p["g3"], p["be3"])
    return recon, mu, logvar


if __name__ == "__main__":
    # Batch large enough to fill the MXU M-dimension (256 for v6e/v7x; >=128 v5e).
    B, IN_DIM, HDIM, LATENT = 256, 784, 128, 2

    key = jax.random.PRNGKey(0)
    k_x, k_eps, k_p = jax.random.split(key, 3)

    x = jax.random.uniform(k_x, (B, IN_DIM), jnp.float32)       # MNIST-like input
    eps = jax.random.normal(k_eps, (B, LATENT), jnp.float32)    # reparam noise
    params = init_params(k_p, IN_DIM, HDIM, LATENT)

    out_pad = pl.cdiv(IN_DIM, DEC_COL_BLK) * DEC_COL_BLK

    # ---- f32 MXU-operand path: tight match to the PyTorch/JAX reference ----
    prep = prepare_params(params, use_bf16=False)   # one-time, outside the hot path
    recon_p, mu, logvar = vae_forward(x, eps, prep)
    jax.block_until_ready((recon_p, mu, logvar))

    assert recon_p.shape == (B, out_pad)
    assert mu.shape == (B, LATENT) and logvar.shape == (B, LATENT)

    recon = recon_p[:, :IN_DIM]          # test-only slice, outside the hot path
    r_ref, mu_ref, lv_ref = reference_forward(x, eps, params)
    assert jnp.allclose(recon, r_ref, atol=5e-4), "recon mismatch"
    assert jnp.allclose(mu, mu_ref, atol=5e-4), "mu mismatch"
    assert jnp.allclose(logvar, lv_ref, atol=5e-4), "logvar mismatch"

    # ---- bf16 MXU-operand path (valid & recommended on v5e/v6e/v7x) ----
    prep_bf = prepare_params(params, use_bf16=True)
    recon_bf_p, mu_bf, lv_bf = vae_forward(x, eps, prep_bf)
    jax.block_until_ready((recon_bf_p, mu_bf, lv_bf))
    assert bool(jnp.all(jnp.isfinite(recon_bf_p)))
    assert float(jnp.max(jnp.abs(recon_bf_p[:, :IN_DIM] - r_ref))) < 0.5, "bf16 recon diverged"

    print("KERNEL_OK")
</pallas_src>

<mosaic_0001>
module attributes {stable_mosaic.version = 11 : i64} {
  func.func @vae_kernel(%arg0: i32, %arg1: memref<256x784xf32, #tpu.memory_space<vmem>>, %arg2: memref<256x2xf32, #tpu.memory_space<vmem>>, %arg3: memref<784x128xf32, #tpu.memory_space<vmem>>, %arg4: memref<128x128xf32, #tpu.memory_space<vmem>>, %arg5: memref<2x128xf32, #tpu.memory_space<vmem>>, %arg6: memref<128x256xf32, #tpu.memory_space<vmem>>, %arg7: memref<3x128xf32, #tpu.memory_space<vmem>>, %arg8: memref<3x128xf32, #tpu.memory_space<vmem>>, %arg9: memref<3x128xf32, #tpu.memory_space<vmem>>, %arg10: memref<3x256xf32, #tpu.memory_space<vmem>>, %arg11: memref<256x256xf32, #tpu.memory_space<vmem>>, %arg12: memref<256x128xf32, #tpu.memory_space<vmem>>, %arg13: memref<256x128xf32, #tpu.memory_space<vmem>>) attributes {dimension_semantics = [#tpu.dimension_semantics<arbitrary>], iteration_bounds = array<i64: 4>, scalar_prefetch = 0 : i64, scratch_operands = 1 : i64, tpu.core_type = #tpu.core_type<tc>, window_params = [{pipeline_mode = #tpu.pipeline_mode<synchronous>, transform_indices = @transform_0, window_bounds = array<i64: 256, 784>}, {pipeline_mode = #tpu.pipeline_mode<synchronous>, transform_indices = @transform_1, window_bounds = array<i64: 256, 2>}, {pipeline_mode = #tpu.pipeline_mode<synchronous>, transform_indices = @transform_2, window_bounds = array<i64: 784, 128>}, {pipeline_mode = #tpu.pipeline_mode<synchronous>, transform_indices = @transform_3, window_bounds = array<i64: 128, 128>}, {pipeline_mode = #tpu.pipeline_mode<synchronous>, transform_indices = @transform_4, window_bounds = array<i64: 2, 128>}, {transform_indices = @transform_5, window_bounds = array<i64: 128, 256>}, {pipeline_mode = #tpu.pipeline_mode<synchronous>, transform_indices = @transform_6, window_bounds = array<i64: 3, 128>}, {pipeline_mode = #tpu.pipeline_mode<synchronous>, transform_indices = @transform_7, window_bounds = array<i64: 3, 128>}, {pipeline_mode = #tpu.pipeline_mode<synchronous>, transform_indices = @transform_8, window_bounds = array<i64: 3, 128>}, {transform_indices = @transform_9, window_bounds = array<i64: 3, 256>}, {transform_indices = @transform_10, window_bounds = array<i64: 256, 256>}, {pipeline_mode = #tpu.pipeline_mode<synchronous>, transform_indices = @transform_11, window_bounds = array<i64: 256, 128>}]} {
    %c0_i32 = arith.constant 0 : i32
    %0 = arith.cmpi eq, %arg0, %c0_i32 : i32
    %1 = arith.extui %0 : i1 to i32
    %c0_i32_0 = arith.constant 0 : i32
    %2 = arith.cmpi ne, %1, %c0_i32_0 : i32
    scf.if %2 {
      %c0_13 = arith.constant 0 : index
      %c0_14 = arith.constant 0 : index
      %35 = vector.load %arg7[%c0_13, %c0_14] : memref<3x128xf32, #tpu.memory_space<vmem>>, vector<3x128xf32>
      %c0_15 = arith.constant 0 : index
      %c0_16 = arith.constant 0 : index
      %36 = vector.load %arg8[%c0_15, %c0_16] : memref<3x128xf32, #tpu.memory_space<vmem>>, vector<3x128xf32>
      %c0_17 = arith.constant 0 : index
      %c0_18 = arith.constant 0 : index
      %37 = vector.load %arg9[%c0_17, %c0_18] : memref<3x128xf32, #tpu.memory_space<vmem>>, vector<3x128xf32>
      %c0_19 = arith.constant 0 : index
      %c0_20 = arith.constant 0 : index
      %38 = vector.load %arg1[%c0_19, %c0_20] : memref<256x784xf32, #tpu.memory_space<vmem>>, vector<256x784xf32>
      %c0_21 = arith.constant 0 : index
      %c0_22 = arith.constant 0 : index
      %39 = vector.load %arg3[%c0_21, %c0_22] : memref<784x128xf32, #tpu.memory_space<vmem>>, vector<784x128xf32>
      %cst_23 = arith.constant dense<0.000000e+00> : vector<256x128xf32>
      %40 = tpu.matmul %38, %39, %cst_23 {dimension_numbers = #tpu.dot_dimension_numbers<[1], [0], [0], [1], [0, 0, 1, 1], [], []>} : vector<256x784xf32>, vector<784x128xf32>, vector<256x128xf32> -> vector<256x128xf32>
      %41 = vector.extract_strided_slice %35 {offsets = [0, 0], sizes = [1, 128], strides = [1, 1]} : vector<3x128xf32> to vector<1x128xf32>
      %42 = vector.broadcast %41 : vector<1x128xf32> to vector<256x128xf32>
      %43 = arith.addf %40, %42 : vector<256x128xf32>
      %44 = vector.extract_strided_slice %35 {offsets = [1, 0], sizes = [1, 128], strides = [1, 1]} : vector<3x128xf32> to vector<1x128xf32>
      %45 = vector.extract_strided_slice %35 {offsets = [2, 0], sizes = [1, 128], strides = [1, 1]} : vector<3x128xf32> to vector<1x128xf32>
      %cst_24 = arith.constant dense<0.000000e+00> : vector<128xf32>
      %46 = vector.multi_reduction <add>, %43, %cst_24 [0] : vector<256x128xf32> to vector<128xf32>
      %47 = vector.shape_cast %46 : vector<128xf32> to vector<1x128xf32>
      %cst_25 = arith.constant 3.906250e-03 : f32
      %48 = vector.broadcast %cst_25 : f32 to vector<1x128xf32>
      %49 = arith.mulf %47, %48 : vector<1x128xf32>
      %50 = arith.mulf %43, %43 : vector<256x128xf32>
      %cst_26 = arith.constant dense<0.000000e+00> : vector<128xf32>
      %51 = vector.multi_reduction <add>, %50, %cst_26 [0] : vector<256x128xf32> to vector<128xf32>
      %52 = vector.shape_cast %51 : vector<128xf32> to vector<1x128xf32>
      %cst_27 = arith.constant 3.906250e-03 : f32
      %53 = vector.broadcast %cst_27 : f32 to vector<1x128xf32>
      %54 = arith.mulf %52, %53 : vector<1x128xf32>
      %55 = arith.mulf %49, %49 : vector<1x128xf32>
      %56 = arith.subf %54, %55 : vector<1x128xf32>
      %57 = vector.broadcast %49 : vector<1x128xf32> to vector<256x128xf32>
      %58 = arith.subf %43, %57 : vector<256x128xf32>
      %cst_28 = arith.constant 9.99999974E-6 : f32
      %59 = vector.broadcast %cst_28 : f32 to vector<1x128xf32>
      %60 = arith.addf %56, %59 : vector<1x128xf32>
      %61 = math.rsqrt %60 : vector<1x128xf32>
      %62 = vector.broadcast %61 : vector<1x128xf32> to vector<256x128xf32>
      %63 = arith.mulf %58, %62 : vector<256x128xf32>
      %64 = vector.broadcast %44 : vector<1x128xf32> to vector<256x128xf32>
      %65 = arith.mulf %63, %64 : vector<256x128xf32>
      %66 = vector.broadcast %45 : vector<1x128xf32> to vector<256x128xf32>
      %67 = arith.addf %65, %66 : vector<256x128xf32>
      %cst_29 = arith.constant 0.000000e+00 : f32
      %68 = vector.broadcast %cst_29 : f32 to vector<256x128xf32>
      %69 = arith.maximumf %67, %68 : vector<256x128xf32>
      %c0_30 = arith.constant 0 : index
      %c0_31 = arith.constant 0 : index
      %70 = vector.load %arg4[%c0_30, %c0_31] : memref<128x128xf32, #tpu.memory_space<vmem>>, vector<128x128xf32>
      %cst_32 = arith.constant dense<0.000000e+00> : vector<256x128xf32>
      %71 = tpu.matmul %69, %70, %cst_32 {dimension_numbers = #tpu.dot_dimension_numbers<[1], [0], [0], [1], [0, 0, 1, 1], [], []>} : vector<256x128xf32>, vector<128x128xf32>, vector<256x128xf32> -> vector<256x128xf32>
      %72 = vector.extract_strided_slice %36 {offsets = [0, 0], sizes = [1, 128], strides = [1, 1]} : vector<3x128xf32> to vector<1x128xf32>
      %73 = vector.broadcast %72 : vector<1x128xf32> to vector<256x128xf32>
      %74 = arith.addf %71, %73 : vector<256x128xf32>
      %75 = vector.extract_strided_slice %36 {offsets = [1, 0], sizes = [1, 128], strides = [1, 1]} : vector<3x128xf32> to vector<1x128xf32>
      %76 = vector.extract_strided_slice %36 {offsets = [2, 0], sizes = [1, 128], strides = [1, 1]} : vector<3x128xf32> to vector<1x128xf32>
      %cst_33 = arith.constant dense<0.000000e+00> : vector<128xf32>
      %77 = vector.multi_reduction <add>, %74, %cst_33 [0] : vector<256x128xf32> to vector<128xf32>
      %78 = vector.shape_cast %77 : vector<128xf32> to vector<1x128xf32>
      %cst_34 = arith.constant 3.906250e-03 : f32
      %79 = vector.broadcast %cst_34 : f32 to vector<1x128xf32>
      %80 = arith.mulf %78, %79 : vector<1x128xf32>
      %81 = arith.mulf %74, %74 : vector<256x128xf32>
      %cst_35 = arith.constant dense<0.000000e+00> : vector<128xf32>
      %82 = vector.multi_reduction <add>, %81, %cst_35 [0] : vector<256x128xf32> to vector<128xf32>
      %83 = vector.shape_cast %82 : vector<128xf32> to vector<1x128xf32>
      %cst_36 = arith.constant 3.906250e-03 : f32
      %84 = vector.broadcast %cst_36 : f32 to vector<1x128xf32>
      %85 = arith.mulf %83, %84 : vector<1x128xf32>
      %86 = arith.mulf %80, %80 : vector<1x128xf32>
      %87 = arith.subf %85, %86 : vector<1x128xf32>
      %88 = vector.broadcast %80 : vector<1x128xf32> to vector<256x128xf32>
      %89 = arith.subf %74, %88 : vector<256x128xf32>
      %cst_37 = arith.constant 9.99999974E-6 : f32
      %90 = vector.broadcast %cst_37 : f32 to vector<1x128xf32>
      %91 = arith.addf %87, %90 : vector<1x128xf32>
      %92 = math.rsqrt %91 : vector<1x128xf32>
      %93 = vector.broadcast %92 : vector<1x128xf32> to vector<256x128xf32>
      %94 = arith.mulf %89, %93 : vector<256x128xf32>
      %95 = vector.broadcast %75 : vector<1x128xf32> to vector<256x128xf32>
      %96 = arith.mulf %94, %95 : vector<256x128xf32>
      %97 = vector.broadcast %76 : vector<1x128xf32> to vector<256x128xf32>
      %98 = arith.addf %96, %97 : vector<256x128xf32>
      %c0_38 = arith.constant 0 : index
      %c0_39 = arith.constant 0 : index
      %99 = vector.load %arg12[%c0_38, %c0_39] : memref<256x128xf32, #tpu.memory_space<vmem>>, vector<256x128xf32>
      tpu.vector_store %arg12[%c0_38, %c0_39], %98 {strides = array<i32>} : memref<256x128xf32, #tpu.memory_space<vmem>>, vector<256x128xf32>,
      %100 = vector.extract_strided_slice %98 {offsets = [0, 0], sizes = [256, 2], strides = [1, 1]} : vector<256x128xf32> to vector<256x2xf32>
      %101 = vector.extract_strided_slice %98 {offsets = [0, 2], sizes = [256, 2], strides = [1, 1]} : vector<256x128xf32> to vector<256x2xf32>
      %cst_40 = arith.constant 5.000000e-01 : f32
      %102 = vector.broadcast %cst_40 : f32 to vector<256x2xf32>
      %103 = arith.mulf %102, %101 : vector<256x2xf32>
      %104 = math.exp %103 : vector<256x2xf32>
      %c0_41 = arith.constant 0 : index
      %c0_42 = arith.constant 0 : index
      %105 = vector.load %arg2[%c0_41, %c0_42] : memref<256x2xf32, #tpu.memory_space<vmem>>, vector<256x2xf32>
      %106 = arith.mulf %104, %105 : vector<256x2xf32>
      %107 = arith.addf %100, %106 : vector<256x2xf32>
      %c0_43 = arith.constant 0 : index
      %c0_44 = arith.constant 0 : index
      %108 = vector.load %arg5[%c0_43, %c0_44] : memref<2x128xf32, #tpu.memory_space<vmem>>, vector<2x128xf32>
      %109 = vector.extract_strided_slice %107 {offsets = [0, 0], sizes = [256, 1], strides = [1, 1]} : vector<256x2xf32> to vector<256x1xf32>
      %110 = vector.extract_strided_slice %108 {offsets = [0, 0], sizes = [1, 128], strides = [1, 1]} : vector<2x128xf32> to vector<1x128xf32>
      %111 = vector.broadcast %109 : vector<256x1xf32> to vector<256x128xf32>
      %112 = vector.broadcast %110 : vector<1x128xf32> to vector<256x128xf32>
      %113 = arith.mulf %111, %112 : vector<256x128xf32>
      %114 = vector.extract_strided_slice %107 {offsets = [0, 1], sizes = [256, 1], strides = [1, 1]} : vector<256x2xf32> to vector<256x1xf32>
      %115 = vector.extract_strided_slice %108 {offsets = [1, 0], sizes = [1, 128], strides = [1, 1]} : vector<2x128xf32> to vector<1x128xf32>
      %116 = vector.broadcast %114 : vector<256x1xf32> to vector<256x128xf32>
      %117 = vector.broadcast %115 : vector<1x128xf32> to vector<256x128xf32>
      %118 = arith.mulf %116, %117 : vector<256x128xf32>
      %119 = arith.addf %113, %118 : vector<256x128xf32>
      %120 = vector.extract_strided_slice %37 {offsets = [0, 0], sizes = [1, 128], strides = [1, 1]} : vector<3x128xf32> to vector<1x128xf32>
      %121 = vector.broadcast %120 : vector<1x128xf32> to vector<256x128xf32>
      %122 = arith.addf %119, %121 : vector<256x128xf32>
      %123 = vector.extract_strided_slice %37 {offsets = [1, 0], sizes = [1, 128], strides = [1, 1]} : vector<3x128xf32> to vector<1x128xf32>
      %124 = vector.extract_strided_slice %37 {offsets = [2, 0], sizes = [1, 128], strides = [1, 1]} : vector<3x128xf32> to vector<1x128xf32>
      %cst_45 = arith.constant dense<0.000000e+00> : vector<128xf32>
      %125 = vector.multi_reduction <add>, %122, %cst_45 [0] : vector<256x128xf32> to vector<128xf32>
      %126 = vector.shape_cast %125 : vector<128xf32> to vector<1x128xf32>
      %cst_46 = arith.constant 3.906250e-03 : f32
      %127 = vector.broadcast %cst_46 : f32 to vector<1x128xf32>
      %128 = arith.mulf %126, %127 : vector<1x128xf32>
      %129 = arith.mulf %122, %122 : vector<256x128xf32>
      %cst_47 = arith.constant dense<0.000000e+00> : vector<128xf32>
      %130 = vector.multi_reduction <add>, %129, %cst_47 [0] : vector<256x128xf32> to vector<128xf32>
      %131 = vector.shape_cast %130 : vector<128xf32> to vector<1x128xf32>
      %cst_48 = arith.constant 3.906250e-03 : f32
      %132 = vector.broadcast %cst_48 : f32 to vector<1x128xf32>
      %133 = arith.mulf %131, %132 : vector<1x128xf32>
      %134 = arith.mulf %128, %128 : vector<1x128xf32>
      %135 = arith.subf %133, %134 : vector<1x128xf32>
      %136 = vector.broadcast %128 : vector<1x128xf32> to vector<256x128xf32>
      %137 = arith.subf %122, %136 : vector<256x128xf32>
      %cst_49 = arith.constant 9.99999974E-6 : f32
      %138 = vector.broadcast %cst_49 : f32 to vector<1x128xf32>
      %139 = arith.addf %135, %138 : vector<1x128xf32>
      %140 = math.rsqrt %139 : vector<1x128xf32>
      %141 = vector.broadcast %140 : vector<1x128xf32> to vector<256x128xf32>
      %142 = arith.mulf %137, %141 : vector<256x128xf32>
      %143 = vector.broadcast %123 : vector<1x128xf32> to vector<256x128xf32>
      %144 = arith.mulf %142, %143 : vector<256x128xf32>
      %145 = vector.broadcast %124 : vector<1x128xf32> to vector<256x128xf32>
      %146 = arith.addf %144, %145 : vector<256x128xf32>
      %cst_50 = arith.constant 0.000000e+00 : f32
      %147 = vector.broadcast %cst_50 : f32 to vector<256x128xf32>
      %148 = arith.maximumf %146, %147 : vector<256x128xf32>
      %c0_51 = arith.constant 0 : index
      %c0_52 = arith.constant 0 : index
      %149 = vector.load %arg13[%c0_51, %c0_52] : memref<256x128xf32, #tpu.memory_space<vmem>>, vector<256x128xf32>
      tpu.vector_store %arg13[%c0_51, %c0_52], %148 {strides = array<i32>} : memref<256x128xf32, #tpu.memory_space<vmem>>, vector<256x128xf32>,
    } else {
    }
    %c0 = arith.constant 0 : index
    %c0_1 = arith.constant 0 : index
    %3 = vector.load %arg10[%c0, %c0_1] : memref<3x256xf32, #tpu.memory_space<vmem>>, vector<3x256xf32>
    %c0_2 = arith.constant 0 : index
    %c0_3 = arith.constant 0 : index
    %4 = vector.load %arg13[%c0_2, %c0_3] : memref<256x128xf32, #tpu.memory_space<vmem>>, vector<256x128xf32>
    %c0_4 = arith.constant 0 : index
    %c0_5 = arith.constant 0 : index
    %5 = vector.load %arg6[%c0_4, %c0_5] : memref<128x256xf32, #tpu.memory_space<vmem>>, vector<128x256xf32>
    %cst = arith.constant dense<0.000000e+00> : vector<256x256xf32>
    %6 = tpu.matmul %4, %5, %cst {dimension_numbers = #tpu.dot_dimension_numbers<[1], [0], [0], [1], [0, 0, 1, 1], [], []>} : vector<256x128xf32>, vector<128x256xf32>, vector<256x256xf32> -> vector<256x256xf32>
    %7 = vector.extract_strided_slice %3 {offsets = [0, 0], sizes = [1, 256], strides = [1, 1]} : vector<3x256xf32> to vector<1x256xf32>
    %8 = vector.broadcast %7 : vector<1x256xf32> to vector<256x256xf32>
    %9 = arith.addf %6, %8 : vector<256x256xf32>
    %10 = vector.extract_strided_slice %3 {offsets = [1, 0], sizes = [1, 256], strides = [1, 1]} : vector<3x256xf32> to vector<1x256xf32>
    %11 = vector.extract_strided_slice %3 {offsets = [2, 0], sizes = [1, 256], strides = [1, 1]} : vector<3x256xf32> to vector<1x256xf32>
    %cst_6 = arith.constant dense<0.000000e+00> : vector<256xf32>
    %12 = vector.multi_reduction <add>, %9, %cst_6 [0] : vector<256x256xf32> to vector<256xf32>
    %13 = vector.shape_cast %12 : vector<256xf32> to vector<1x256xf32>
    %cst_7 = arith.constant 3.906250e-03 : f32
    %14 = vector.broadcast %cst_7 : f32 to vector<1x256xf32>
    %15 = arith.mulf %13, %14 : vector<1x256xf32>
    %16 = arith.mulf %9, %9 : vector<256x256xf32>
    %cst_8 = arith.constant dense<0.000000e+00> : vector<256xf32>
    %17 = vector.multi_reduction <add>, %16, %cst_8 [0] : vector<256x256xf32> to vector<256xf32>
    %18 = vector.shape_cast %17 : vector<256xf32> to vector<1x256xf32>
    %cst_9 = arith.constant 3.906250e-03 : f32
    %19 = vector.broadcast %cst_9 : f32 to vector<1x256xf32>
    %20 = arith.mulf %18, %19 : vector<1x256xf32>
    %21 = arith.mulf %15, %15 : vector<1x256xf32>
    %22 = arith.subf %20, %21 : vector<1x256xf32>
    %23 = vector.broadcast %15 : vector<1x256xf32> to vector<256x256xf32>
    %24 = arith.subf %9, %23 : vector<256x256xf32>
    %cst_10 = arith.constant 9.99999974E-6 : f32
    %25 = vector.broadcast %cst_10 : f32 to vector<1x256xf32>
    %26 = arith.addf %22, %25 : vector<1x256xf32>
    %27 = math.rsqrt %26 : vector<1x256xf32>
    %28 = vector.broadcast %27 : vector<1x256xf32> to vector<256x256xf32>
    %29 = arith.mulf %24, %28 : vector<256x256xf32>
    %30 = vector.broadcast %10 : vector<1x256xf32> to vector<256x256xf32>
    %31 = arith.mulf %29, %30 : vector<256x256xf32>
    %32 = vector.broadcast %11 : vector<1x256xf32> to vector<256x256xf32>
    %33 = arith.addf %31, %32 : vector<256x256xf32>
    %c0_11 = arith.constant 0 : index
    %c0_12 = arith.constant 0 : index
    %34 = vector.load %arg11[%c0_11, %c0_12] : memref<256x256xf32, #tpu.memory_space<vmem>>, vector<256x256xf32>
    tpu.vector_store %arg11[%c0_11, %c0_12], %33 {strides = array<i32>} : memref<256x256xf32, #tpu.memory_space<vmem>>, vector<256x256xf32>,
    return
  }
  func.func @transform_0(%arg0: i32) -> (i32, i32) {
    %c0_i32 = arith.constant 0 : i32
    %c0_i32_0 = arith.constant 0 : i32
    %c0_i32_1 = arith.constant 0 : i32
    return %c0_i32, %c0_i32_0 : i32, i32
  }
  func.func @transform_1(%arg0: i32) -> (i32, i32) {
    %c0_i32 = arith.constant 0 : i32
    %c0_i32_0 = arith.constant 0 : i32
    %c0_i32_1 = arith.constant 0 : i32
    return %c0_i32, %c0_i32_0 : i32, i32
  }
  func.func @transform_2(%arg0: i32) -> (i32, i32) {
    %c0_i32 = arith.constant 0 : i32
    %c0_i32_0 = arith.constant 0 : i32
    %c0_i32_1 = arith.constant 0 : i32
    return %c0_i32, %c0_i32_0 : i32, i32
  }
  func.func @transform_3(%arg0: i32) -> (i32, i32) {
    %c0_i32 = arith.constant 0 : i32
    %c0_i32_0 = arith.constant 0 : i32
    %c0_i32_1 = arith.constant 0 : i32
    return %c0_i32, %c0_i32_0 : i32, i32
  }
  func.func @transform_4(%arg0: i32) -> (i32, i32) {
    %c0_i32 = arith.constant 0 : i32
    %c0_i32_0 = arith.constant 0 : i32
    %c0_i32_1 = arith.constant 0 : i32
    return %c0_i32, %c0_i32_0 : i32, i32
  }
  func.func @transform_5(%arg0: i32) -> (i32, i32) {
    %c0_i32 = arith.constant 0 : i32
    %c0_i32_0 = arith.constant 0 : i32
    return %c0_i32, %arg0 : i32, i32
  }
  func.func @transform_6(%arg0: i32) -> (i32, i32) {
    %c0_i32 = arith.constant 0 : i32
    %c0_i32_0 = arith.constant 0 : i32
    %c0_i32_1 = arith.constant 0 : i32
    return %c0_i32, %c0_i32_0 : i32, i32
  }
  func.func @transform_7(%arg0: i32) -> (i32, i32) {
    %c0_i32 = arith.constant 0 : i32
    %c0_i32_0 = arith.constant 0 : i32
    %c0_i32_1 = arith.constant 0 : i32
    return %c0_i32, %c0_i32_0 : i32, i32
  }
  func.func @transform_8(%arg0: i32) -> (i32, i32) {
    %c0_i32 = arith.constant 0 : i32
    %c0_i32_0 = arith.constant 0 : i32
    %c0_i32_1 = arith.constant 0 : i32
    return %c0_i32, %c0_i32_0 : i32, i32
  }
  func.func @transform_9(%arg0: i32) -> (i32, i32) {
    %c0_i32 = arith.constant 0 : i32
    %c0_i32_0 = arith.constant 0 : i32
    return %c0_i32, %arg0 : i32, i32
  }
  func.func @transform_10(%arg0: i32) -> (i32, i32) {
    %c0_i32 = arith.constant 0 : i32
    %c0_i32_0 = arith.constant 0 : i32
    return %c0_i32, %arg0 : i32, i32
  }
  func.func @transform_11(%arg0: i32) -> (i32, i32) {
    %c0_i32 = arith.constant 0 : i32
    %c0_i32_0 = arith.constant 0 : i32
    %c0_i32_1 = arith.constant 0 : i32
    return %c0_i32, %c0_i32_0 : i32, i32
  }
}

</mosaic_0001>

<bundles_post_ra>
// kernel: vae_forward.1
= control target key start
LH: loop header
LB: loop body
LE: loop exit
PB: predicated region body
PF: predicated region fallthrough
CT: control target
= control target key end

     0   :  { %s9919_s0 = inlined_call_operand.vmem [shape: f32[256,784], index: 0, kind: input, shape index: {}]   ;;  %s9920_s1 = inlined_call_operand.vmem [shape: f32[256,2], index: 1, kind: input, shape index: {}]   ;;  %s9921_s2 = inlined_call_operand.vmem [shape: f32[784,128], index: 2, kind: input, shape index: {}]   ;;  %s9922_s3 = inlined_call_operand.vmem [shape: f32[128,128], index: 3, kind: input, shape index: {}]   ;;  %s9923_s4 = inlined_call_operand.vmem [shape: f32[2,128], index: 4, kind: input, shape index: {}]   ;;  %s9924_s5 = inlined_call_operand.vmem [shape: f32[128,1024], index: 5, kind: input, shape index: {}]   ;;  %s9925_s6 = inlined_call_operand.vmem [shape: f32[3,128], index: 6, kind: input, shape index: {}]   ;;  %s9926_s7 = inlined_call_operand.vmem [shape: f32[3,128], index: 7, kind: input, shape index: {}]   ;;  %s9927_s8 = inlined_call_operand.vmem [shape: f32[3,128], index: 8, kind: input, shape index: {}]   ;;  %s9928_s9 = inlined_call_operand.vmem [shape: f32[3,1024], index: 9, kind: input, shape index: {}]   ;;  %s9929_s10 = inlined_call_operand.hbm [shape: f32[256,1024], index: 10, kind: output, shape index: {0}]   ;;  %s9930_s11 = inlined_call_operand.vmem [shape: f32[256,128], index: 11, kind: output, shape index: {1}]  }
   0x1   :  { %9993 = sst [smem:[#allocation42_spill]] %s9924_s5 }
   0x2   :  { %17 = vsyncpa [#allocation5], 0 }
   0x3   :  { %19 = vsyncpa [#allocation5 + $0x1], 0  ;;  %s5405_s17 = smov 0   ;;  %s5407_s18 = smov 0  }
   0x4   :  { %s5409_s19 = smov 0   ;;  %s5411_s20 = smov 0  }
   0x5 LB: > { %9994 = sst [smem:[#allocation7_spill]] %s5325_s18  ;;  %s5426_s21 = sadd.s32 4294967295, %s5333_s20   ;;  %s5333_s20 = sphi %s5411_s20, %s10180_s20   ;;  %s5329_s19 = sphi %s5409_s19, %s10179_s19   ;;  %s5325_s18 = sphi %s5407_s18, %s10178_s18   ;;  %s5321_s17 = sphi %s5405_s17, %s10177_s17  }
   0x6   : > { %9995 = sst [smem:[#allocation8_spill]] %s5329_s19  ;;  %s4834_s22 = sadd.s32 4294967294, %s5333_s20  }
   0x7   : > { %s5430_s23 = sadd.s32 1, %s5333_s20   ;;  %s137_s24 = sadd.s32 1, %s5329_s19 }
   0x8   : > { %s134_s25 = ssub.s32 %s5333_s20, %s5430_s23  ;;  %p144_p0 = scmp.ne.s32.totalorder %s5329_s19, %s5325_s18 }
   0x9   : > { %p135_p1 = scmp.eq.s32.totalorder %s134_s25, 0  ;;  %p145_p2 = scmp.eq.s32.totalorder %s5333_s20, 0 }
   0xa   : > { %p263_p3 = scmp.eq.s32.totalorder %s5426_s21, 3  ;;  %p268_p4 = scmp.ne.s32.totalorder %s5325_s18, %s5321_s17 }
   0xb   : > { %s5442_s26 = scalar_select %p135_p1, %s5329_s19, %s137_s24  }
   0xc   : > { %p146_p5 = por %p145_p2, %p144_p0  ;;  %p5444_p6 = por %p263_p3, %p144_p0 }
   0xd   : > { %9996 = sst [smem:[#allocation9_spill]] %s5442_s26  ;;  %p269_p7 = scmp.eq.s32.totalorder %s4834_s22, 3 }
   0xe   : > { %p4836_p9 = scmp.ge.s32.totalorder %s5333_s20, 4 }
   0xf   : > { %p5448_p8 = por %p269_p7, %p268_p4 }
  0x10   : > { %330 = sbr.rel (%p4836_p9) target bundleno = 47 (0x2f), region = 48 }
  0x15   : > { %333 = sbr.rel (!%p146_p5) target bundleno = 47 (0x2f), region = 52  ;;  %s335_s29 = sand.u32 (%p146_p5), 1, %s5329_s19  }
  0x16   : > { %s4883_s30 = sshll.u32 (%p146_p5), %s5333_s20, 4  ;;  %s4837_s12 = sshll.u32 (%p146_p5), %s335_s29, 8 }
  0x17   : > { %s9999_s5 = sld [smem:[#allocation42_spill]] (%p146_p5)  ;;  %s5463_s16 = scalar_lea.vmem (%p146_p5), [#allocation3], %s4837_s12 }
  0x1d   : > { %s5458_s15 = scalar_lea.vmem %s9999_s5, %s4883_s30 }
  0x1e   : > { %v353_v0 = vld [vmem:[%s5458_s15] sm:$0xff]  ;;  %v355_v1 = vld [vmem:[%s5458_s15 + $0x8] sm:$0xff] }
  0x1f   : > { %v357_v2 = vld [vmem:[%s5458_s15 + $0x40] sm:$0xff]  ;;  %354 = vst [vmem:[%s5463_s16] sm:$0xff] %v353_v0  ;;  %356 = vst [vmem:[%s5463_s16 + $0x8] sm:$0xff] %v355_v1  ;;  %v359_v3 = vld [vmem:[%s5458_s15 + $0x48] sm:$0xff] }
  0x20   : > { %358 = vst [vmem:[%s5463_s16 + $0x10] sm:$0xff] %v357_v2  ;;  %v361_v4 = vld [vmem:[%s5458_s15 + $0x80] sm:$0xff]  ;;  %v363_v5 = vld [vmem:[%s5458_s15 + $0x88] sm:$0xff]  ;;  %360 = vst [vmem:[%s5463_s16 + $0x18] sm:$0xff] %v359_v3 }
  0x21   : > { %362 = vst [vmem:[%s5463_s16 + $0x20] sm:$0xff] %v361_v4  ;;  %364 = vst [vmem:[%s5463_s16 + $0x28] sm:$0xff] %v363_v5  ;;  %v365_v6 = vld [vmem:[%s5458_s15 + $0xc0] sm:$0xff]  ;;  %v367_v7 = vld [vmem:[%s5458_s15 + $0xc8] sm:$0xff] }
  0x22   : > { %v369_v8 = vld [vmem:[%s5458_s15 + $0x100] sm:$0xff]  ;;  %366 = vst [vmem:[%s5463_s16 + $0x30] sm:$0xff] %v365_v6  ;;  %368 = vst [vmem:[%s5463_s16 + $0x38] sm:$0xff] %v367_v7  ;;  %v371_v9 = vld [vmem:[%s5458_s15 + $0x108] sm:$0xff] }
  0x23   : > { %370 = vst [vmem:[%s5463_s16 + $0x40] sm:$0xff] %v369_v8  ;;  %v373_v10 = vld [vmem:[%s5458_s15 + $0x140] sm:$0xff]  ;;  %v375_v11 = vld [vmem:[%s5458_s15 + $0x148] sm:$0xff]  ;;  %372 = vst [vmem:[%s5463_s16 + $0x48] sm:$0xff] %v371_v9 }
  0x24   : > { %374 = vst [vmem:[%s5463_s16 + $0x50] sm:$0xff] %v373_v10  ;;  %376 = vst [vmem:[%s5463_s16 + $0x58] sm:$0xff] %v375_v11  ;;  %v377_v12 = vld [vmem:[%s5458_s15 + $0x180] sm:$0xff]  ;;  %v379_v13 = vld [vmem:[%s5458_s15 + $0x188] sm:$0xff] }
  0x25   : > { %v381_v14 = vld [vmem:[%s5458_s15 + $0x1c0] sm:$0xff]  ;;  %378 = vst [vmem:[%s5463_s16 + $0x60] sm:$0xff] %v377_v12  ;;  %380 = vst [vmem:[%s5463_s16 + $0x68] sm:$0xff] %v379_v13  ;;  %v383_v15 = vld [vmem:[%s5458_s15 + $0x1c8] sm:$0xff] }
  0x26   : > { %382 = vst [vmem:[%s5463_s16 + $0x70] sm:$0xff] %v381_v14  ;;  %v385_v16 = vld [vmem:[%s5458_s15 + $0x200] sm:$0xff]  ;;  %v387_v17 = vld [vmem:[%s5458_s15 + $0x208] sm:$0xff]  ;;  %384 = vst [vmem:[%s5463_s16 + $0x78] sm:$0xff] %v383_v15 }
  0x27   : > { %386 = vst [vmem:[%s5463_s16 + $0x80] sm:$0xff] %v385_v16  ;;  %388 = vst [vmem:[%s5463_s16 + $0x88] sm:$0xff] %v387_v17  ;;  %v389_v18 = vld [vmem:[%s5458_s15 + $0x240] sm:$0xff]  ;;  %v391_v19 = vld [vmem:[%s5458_s15 + $0x248] sm:$0xff] }
  0x28   : > { %v393_v20 = vld [vmem:[%s5458_s15 + $0x280] sm:$0xff]  ;;  %390 = vst [vmem:[%s5463_s16 + $0x90] sm:$0xff] %v389_v18  ;;  %392 = vst [vmem:[%s5463_s16 + $0x98] sm:$0xff] %v391_v19  ;;  %v395_v21 = vld [vmem:[%s5458_s15 + $0x288] sm:$0xff] }
  0x29   : > { %394 = vst [vmem:[%s5463_s16 + $0xa0] sm:$0xff] %v393_v20  ;;  %v397_v22 = vld [vmem:[%s5458_s15 + $0x2c0] sm:$0xff]  ;;  %v399_v23 = vld [vmem:[%s5458_s15 + $0x2c8] sm:$0xff]  ;;  %396 = vst [vmem:[%s5463_s16 + $0xa8] sm:$0xff] %v395_v21 }
  0x2a   : > { %398 = vst [vmem:[%s5463_s16 + $0xb0] sm:$0xff] %v397_v22  ;;  %400 = vst [vmem:[%s5463_s16 + $0xb8] sm:$0xff] %v399_v23  ;;  %v401_v24 = vld [vmem:[%s5458_s15 + $0x300] sm:$0xff]  ;;  %v403_v25 = vld [vmem:[%s5458_s15 + $0x308] sm:$0xff] }
  0x2b   : > { %v405_v26 = vld [vmem:[%s5458_s15 + $0x340] sm:$0xff]  ;;  %402 = vst [vmem:[%s5463_s16 + $0xc0] sm:$0xff] %v401_v24  ;;  %404 = vst [vmem:[%s5463_s16 + $0xc8] sm:$0xff] %v403_v25  ;;  %v407_v27 = vld [vmem:[%s5458_s15 + $0x348] sm:$0xff] }
  0x2c   : > { %406 = vst [vmem:[%s5463_s16 + $0xd0] sm:$0xff] %v405_v26  ;;  %v409_v28 = vld [vmem:[%s5458_s15 + $0x380] sm:$0xff]  ;;  %v411_v29 = vld [vmem:[%s5458_s15 + $0x388] sm:$0xff]  ;;  %408 = vst [vmem:[%s5463_s16 + $0xd8] sm:$0xff] %v407_v27 }
  0x2d   : > { %410 = vst [vmem:[%s5463_s16 + $0xe0] sm:$0xff] %v409_v28  ;;  %412 = vst [vmem:[%s5463_s16 + $0xe8] sm:$0xff] %v411_v29  ;;  %v413_v30 = vld [vmem:[%s5458_s15 + $0x3c0] sm:$0xff]  ;;  %v415_v31 = vld [vmem:[%s5458_s15 + $0x3c8] sm:$0xff] }
  0x2e   : > { %414 = vst [vmem:[%s5463_s16 + $0xf0] sm:$0xff] %v413_v30  ;;  %416 = vst [vmem:[%s5463_s16 + $0xf8] sm:$0xff] %v415_v31 }
  0x2f PF: > { %p4840_p10 = scmp.ge.s32.totalorder %s5333_s20, 1  ;;  %p430_p11 = scmp.lt.s32.totalorder %s5333_s20, 5 }
  0x31   : > { %p431_p12 = pnand %p4840_p10, %p430_p11 }
  0x33   : > { %434 = sbr.rel (%p431_p12) target bundleno = 1891 (0x763), region = 79 }
  0x38   : > { %s5529_s22 = sand.u32 1, %s5325_s18   ;;  %s4843_s24 = sshll.u32 %s5426_s21, 1 }
  0x39   : > { %s4841_s25 = sshll.u32 %s5529_s22, 8  ;;  %s4842_s29 = sshll.u32 %s5529_s22, 9 }
  0x3a   : > { %p483_p13 = scmp.lt.s32.totalorder %s4843_s24, 7  ;;  %s5539_s15 = scalar_lea.vmem [#allocation3], %s4841_s25 }
  0x3b   : > { %s5541_s16 = scalar_lea.vmem [#allocation4], %s4842_s29  ;;  %p4845_p0 = scmp.ne.s32.totalorder %s5426_s21, 0 }
  0x3c   : > { %s10182_s24 = smov (!%p483_p13, %s4843_s24), 7  ;;  %s5336_s12 = smov (!%p4845_p0), 2  }
  0x3d   : > { %s4844_s30 = sshll.u32 %s10182_s24, 2  ;;  %492 = sbr.rel (%p4845_p0) target bundleno = 1440 (0x5a0), region = 87 }
  0x3e   : > { %s5537_s14 = scalar_lea.vmem %s9928_s9, %s4844_s30  ;;  %s5337_s30 = smov (!%p4845_p0), 126  }
  0x42   : > { %v735_v32 = vld [vmem:[%s9921_s2 + $0x78] sm:$0xff]  ;;  %v5335_v34 = vmov 0.0   ;;  %v734_v35 = vld [vmem:[%s9921_s2 + $0x70] sm:$0xff]  ;;  %v733_v37 = vld [vmem:[%s9921_s2 + $0x68] sm:$0xff]  ;;  %vm822_vm0 = vcmask 130048  }
  0x43   : > { %v767_v33 = vld [vmem:[%s9921_s2 + $0x178] sm:$0xff]  ;;  %919 = vmatprep.subr.mxu0 %v5335_v34  ;;  %1144 = vmatprep.subr.mxu1 %v5335_v34  ;;  %v766_v36 = vld [vmem:[%s9921_s2 + $0x170] sm:$0xff]  ;;  %v765_v38 = vld [vmem:[%s9921_s2 + $0x168] sm:$0xff] }
  0x44   : > { %920 = vmatpush1.msra.mxu0 %v735_v32  ;;  %1145 = vmatpush1.msra.mxu1 %v767_v33  ;;  %v732_v39 = vld [vmem:[%s9921_s2 + $0x60] sm:$0xff]  ;;  %v731_v41 = vld [vmem:[%s9921_s2 + $0x58] sm:$0xff]  ;;  %v730_v43 = vld [vmem:[%s9921_s2 + $0x50] sm:$0xff] }
  0x45   : > { %921 = vmatprep.subr.mxu0 %v5335_v34  ;;  %1146 = vmatprep.subr.mxu1 %v5335_v34  ;;  %v764_v40 = vld [vmem:[%s9921_s2 + $0x160] sm:$0xff]  ;;  %v763_v42 = vld [vmem:[%s9921_s2 + $0x158] sm:$0xff]  ;;  %v762_v44 = vld [vmem:[%s9921_s2 + $0x150] sm:$0xff] }
  0x46   : > { %922 = vmatpush1.msra.mxu0 %v734_v35  ;;  %1147 = vmatpush1.msra.mxu1 %v766_v36  ;;  %v729_v45 = vld [vmem:[%s9921_s2 + $0x48] sm:$0xff]  ;;  %v728_v47 = vld [vmem:[%s9921_s2 + $0x40] sm:$0xff]  ;;  %v727_v49 = vld [vmem:[%s9921_s2 + $0x38] sm:$0xff] }
  0x47   : > { %923 = vmatprep.subr.mxu0 %v5335_v34  ;;  %1148 = vmatprep.subr.mxu1 %v5335_v34  ;;  %v761_v46 = vld [vmem:[%s9921_s2 + $0x148] sm:$0xff]  ;;  %v760_v48 = vld [vmem:[%s9921_s2 + $0x140] sm:$0xff]  ;;  %v759_v50 = vld [vmem:[%s9921_s2 + $0x138] sm:$0xff] }
  0x48   : > { %924 = vmatpush1.msra.mxu0 %v733_v37  ;;  %1149 = vmatpush1.msra.mxu1 %v765_v38  ;;  %v726_v51 = vld [vmem:[%s9921_s2 + $0x30] sm:$0xff]  ;;  %v725_v53 = vld [vmem:[%s9921_s2 + $0x28] sm:$0xff]  ;;  %v724_v55 = vld [vmem:[%s9921_s2 + $0x20] sm:$0xff] }
  0x49   : > { %925 = vmatprep.subr.mxu0 %v5335_v34  ;;  %1150 = vmatprep.subr.mxu1 %v5335_v34  ;;  %v758_v52 = vld [vmem:[%s9921_s2 + $0x130] sm:$0xff]  ;;  %v757_v54 = vld [vmem:[%s9921_s2 + $0x128] sm:$0xff]  ;;  %v756_v56 = vld [vmem:[%s9921_s2 + $0x120] sm:$0xff] }
  0x4a   : > { %926 = vmatpush1.msra.mxu0 %v732_v39  ;;  %1151 = vmatpush1.msra.mxu1 %v764_v40  ;;  %v723_v57 = vld [vmem:[%s9921_s2 + $0x18] sm:$0xff]  ;;  %v722_v59 = vld [vmem:[%s9921_s2 + $0x10] sm:$0xff]  ;;  %v721_v61 = vld [vmem:[%s9921_s2 + $0x8] sm:$0xff] }
  0x4b   : > { %927 = vmatprep.subr.mxu0 %v5335_v34  ;;  %1152 = vmatprep.subr.mxu1 %v5335_v34  ;;  %v755_v58 = vld [vmem:[%s9921_s2 + $0x118] sm:$0xff]  ;;  %v754_v60 = vld [vmem:[%s9921_s2 + $0x110] sm:$0xff]  ;;  %v753_v62 = vld [vmem:[%s9921_s2 + $0x108] sm:$0xff] }
  0x4c   : > { %928 = vmatpush1.msra.mxu0 %v731_v41  ;;  %1153 = vmatpush1.msra.mxu1 %v763_v42  ;;  %v720_v63 = vld [vmem:[%s9921_s2] sm:$0xff]  ;;  %v751_v1 = vld [vmem:[%s9921_s2 + $0xf8] sm:$0xff]  ;;  %v750_v3 = vld [vmem:[%s9921_s2 + $0xf0] sm:$0xff] }
  0x4d   : > { %929 = vmatprep.subr.mxu0 %v5335_v34  ;;  %1154 = vmatprep.subr.mxu1 %v5335_v34  ;;  %v752_v0 = vld [vmem:[%s9921_s2 + $0x100] sm:$0xff]  ;;  %v783_v2 = vld [vmem:[%s9921_s2 + $0x1f8] sm:$0xff]  ;;  %v782_v4 = vld [vmem:[%s9921_s2 + $0x1f0] sm:$0xff] }
  0x4e   : > { %930 = vmatpush1.msra.mxu0 %v730_v43  ;;  %1155 = vmatpush1.msra.mxu1 %v762_v44  ;;  %v749_v5 = vld [vmem:[%s9921_s2 + $0xe8] sm:$0xff]  ;;  %v748_v7 = vld [vmem:[%s9921_s2 + $0xe0] sm:$0xff]  ;;  %v747_v9 = vld [vmem:[%s9921_s2 + $0xd8] sm:$0xff] }
  0x4f   : > { %931 = vmatprep.subr.mxu0 %v5335_v34  ;;  %1156 = vmatprep.subr.mxu1 %v5335_v34  ;;  %v781_v6 = vld [vmem:[%s9921_s2 + $0x1e8] sm:$0xff]  ;;  %v780_v8 = vld [vmem:[%s9921_s2 + $0x1e0] sm:$0xff]  ;;  %v779_v10 = vld [vmem:[%s9921_s2 + $0x1d8] sm:$0xff] }
  0x50   : > { %932 = vmatpush1.msra.mxu0 %v729_v45  ;;  %1157 = vmatpush1.msra.mxu1 %v761_v46  ;;  %v746_v11 = vld [vmem:[%s9921_s2 + $0xd0] sm:$0xff]  ;;  %v745_v13 = vld [vmem:[%s9921_s2 + $0xc8] sm:$0xff]  ;;  %v744_v15 = vld [vmem:[%s9921_s2 + $0xc0] sm:$0xff] }
  0x51   : > { %933 = vmatprep.subr.mxu0 %v5335_v34  ;;  %1158 = vmatprep.subr.mxu1 %v5335_v34  ;;  %v778_v12 = vld [vmem:[%s9921_s2 + $0x1d0] sm:$0xff]  ;;  %v777_v14 = vld [vmem:[%s9921_s2 + $0x1c8] sm:$0xff]  ;;  %v776_v16 = vld [vmem:[%s9921_s2 + $0x1c0] sm:$0xff] }
  0x52   : > { %934 = vmatpush1.msra.mxu0 %v728_v47  ;;  %1159 = vmatpush1.msra.mxu1 %v760_v48  ;;  %v743_v17 = vld [vmem:[%s9921_s2 + $0xb8] sm:$0xff]  ;;  %v742_v19 = vld [vmem:[%s9921_s2 + $0xb0] sm:$0xff]  ;;  %v741_v21 = vld [vmem:[%s9921_s2 + $0xa8] sm:$0xff] }
  0x53   : > { %935 = vmatprep.subr.mxu0 %v5335_v34  ;;  %1160 = vmatprep.subr.mxu1 %v5335_v34  ;;  %v775_v18 = vld [vmem:[%s9921_s2 + $0x1b8] sm:$0xff]  ;;  %v774_v20 = vld [vmem:[%s9921_s2 + $0x1b0] sm:$0xff]  ;;  %v773_v22 = vld [vmem:[%s9921_s2 + $0x1a8] sm:$0xff] }
  0x54   : > { %936 = vmatpush1.msra.mxu0 %v727_v49  ;;  %1161 = vmatpush1.msra.mxu1 %v759_v50  ;;  %v740_v23 = vld [vmem:[%s9921_s2 + $0xa0] sm:$0xff]  ;;  %v739_v25 = vld [vmem:[%s9921_s2 + $0x98] sm:$0xff]  ;;  %v738_v27 = vld [vmem:[%s9921_s2 + $0x90] sm:$0xff] }
  0x55   : > { %937 = vmatprep.subr.mxu0 %v5335_v34  ;;  %1162 = vmatprep.subr.mxu1 %v5335_v34  ;;  %v772_v24 = vld [vmem:[%s9921_s2 + $0x1a0] sm:$0xff]  ;;  %v771_v26 = vld [vmem:[%s9921_s2 + $0x198] sm:$0xff]  ;;  %v770_v28 = vld [vmem:[%s9921_s2 + $0x190] sm:$0xff] }
  0x56   : > { %938 = vmatpush1.msra.mxu0 %v726_v51  ;;  %1163 = vmatpush1.msra.mxu1 %v758_v52  ;;  %v737_v29 = vld [vmem:[%s9921_s2 + $0x88] sm:$0xff]  ;;  %v736_v31 = vld [vmem:[%s9921_s2 + $0x80] sm:$0xff]  ;;  %v499_v35 = vld [vmem:[%s9919_s0 + $0x18] sm:$0xff] }
  0x57   : > { %939 = vmatprep.subr.mxu0 %v5335_v34  ;;  %1164 = vmatprep.subr.mxu1 %v5335_v34  ;;  %v769_v30 = vld [vmem:[%s9921_s2 + $0x188] sm:$0xff]  ;;  %v768_v33 = vld [vmem:[%s9921_s2 + $0x180] sm:$0xff]  ;;  %v498_v37 = vld [vmem:[%s9919_s0 + $0x10] sm:$0xff] }
  0x58   : > { %940 = vmatpush1.msra.mxu0 %v725_v53  ;;  %1165 = vmatpush1.msra.mxu1 %v757_v54  ;;  %v497_v32 = vld [vmem:[%s9919_s0 + $0x8] sm:$0xff]  ;;  %v496_v36 = vld [vmem:[%s9919_s0] sm:$0xff]  ;;  %v799_v39 = vld [vmem:[%s9921_s2 + $0x278] sm:$0xff] }
  0x59   : > { %941 = vmatprep.subr.mxu0 %v5335_v34  ;;  %1166 = vmatprep.subr.mxu1 %v5335_v34  ;;  %v504_v38 = vld [vmem:[%s9919_s0 + $0x40] sm:$0xff]  ;;  %v506_v40 = vld [vmem:[%s9919_s0 + $0x50] sm:$0xff]  ;;  %v817_v41 = vld [vmem:[%s9921_s2 + $0x308] sm:$0xff] }
  0x5a   : > { %942 = vmatpush1.msra.mxu0 %v724_v55  ;;  %1167 = vmatpush1.msra.mxu1 %v756_v56  ;;  %v503_v42 = vld [vmem:[%s9919_s0 + $0x38] sm:$0xff]  ;;  %v505_v43 = vld [vmem:[%s9919_s0 + $0x48] sm:$0xff]  ;;  %v798_v44 = vld [vmem:[%s9921_s2 + $0x270] sm:$0xff] }
  0x5b   : > { %943 = vmatprep.subr.mxu0 %v5335_v34  ;;  %1168 = vmatprep.subr.mxu1 %v5335_v34  ;;  %v511_v45 = vld [vmem:[%s9919_s0 + $0x78] sm:$0xff]  ;;  %v513_v46 = vld [vmem:[%s9919_s0 + $0x88] sm:$0xff]  ;;  %v510_v48 = vld [vmem:[%s9919_s0 + $0x70] sm:$0xff] }
  0x5c   : > { %944 = vmatpush1.msra.mxu0 %v723_v57  ;;  %1169 = vmatpush1.msra.mxu1 %v755_v58  ;;  %v797_v47 = vld [vmem:[%s9921_s2 + $0x268] sm:$0xff]  ;;  %v512_v49 = vld [vmem:[%s9919_s0 + $0x80] sm:$0xff]  ;;  %v518_v50 = vld [vmem:[%s9919_s0 + $0xb0] sm:$0xff] }
  0x5d   : > { %945 = vmatprep.subr.mxu0 %v5335_v34  ;;  %1170 = vmatprep.subr.mxu1 %v5335_v34  ;;  %v520_v51 = vld [vmem:[%s9919_s0 + $0xc0] sm:$0xff]  ;;  %v517_v53 = vld [vmem:[%s9919_s0 + $0xa8] sm:$0xff]  ;;  %v519_v54 = vld [vmem:[%s9919_s0 + $0xb8] sm:$0xff] }
  0x5e   : > { %946 = vmatpush1.msra.mxu0 %v722_v59  ;;  %1171 = vmatpush1.msra.mxu1 %v754_v60  ;;  %v796_v52 = vld [vmem:[%s9921_s2 + $0x260] sm:$0xff]  ;;  %v525_v56 = vld [vmem:[%s9919_s0 + $0xe8] sm:$0xff]  ;;  %v527_v57 = vld [vmem:[%s9919_s0 + $0xf8] sm:$0xff] }
  0x5f   : > { %947 = vmatprep.subr.mxu0 %v5335_v34  ;;  %1172 = vmatprep.subr.mxu1 %v5335_v34  ;;  %v816_v55 = vld [vmem:[%s9921_s2 + $0x300] sm:$0xff]  ;;  %v795_v58 = vld [vmem:[%s9921_s2 + $0x258] sm:$0xff]  ;;  %v526_v60 = vld [vmem:[%s9919_s0 + $0xf0] sm:$0xff] }
  0x60   : > { %948 = vmatpush1.msra.mxu0 %v721_v61  ;;  %1173 = vmatpush1.msra.mxu1 %v753_v62  ;;  %v524_v59 = vld [vmem:[%s9919_s0 + $0xe0] sm:$0xff]  ;;  %v534_v62 = vld [vmem:[%s9919_s0 + $0x130] sm:$0xff] }
  0x61   : > { %949 = vmatprep.subr.mxu0 %v5335_v34  ;;  %1174 = vmatprep.subr.mxu1 %v5335_v34  ;;  %v532_v61 = vld [vmem:[%s9919_s0 + $0x120] sm:$0xff] }
  0x62   : > { %950 = vmatpush1.msra.mxu0 %v720_v63  ;;  %1175 = vmatpush1.msra.mxu1 %v752_v0  ;;  %v794_v63 = vld [vmem:[%s9921_s2 + $0x250] sm:$0xff]  ;;  %v531_v0 = vld [vmem:[%s9919_s0 + $0x118] sm:$0xff] }
  0x63   : > { %951 = vmatprep.subr.mxu0 %v5335_v34  ;;  %1176 = vmatprep.subr.mxu1 %v5335_v34 }
  0x64   : > { %952 = vmatpush2.msra.mxu0 %v751_v1  ;;  %1177 = vmatpush2.msra.mxu1 %v783_v2  ;;  %v533_v1 = vld [vmem:[%s9919_s0 + $0x128] sm:$0xff]  ;;  %v539_v2 = vld [vmem:[%s9919_s0 + $0x158] sm:$0xff] }
  0x65   : > { %953 = vmatprep.subr.mxu0 %v5335_v34  ;;  %1178 = vmatprep.subr.mxu1 %v5335_v34 }
  0x66   : > { %954 = vmatpush2.msra.mxu0 %v750_v3  ;;  %1179 = vmatpush2.msra.mxu1 %v782_v4  ;;  %v541_v3 = vld [vmem:[%s9919_s0 + $0x168] sm:$0xff] }
  0x67   : > { %955 = vmatprep.subr.mxu0 %v5335_v34  ;;  %1180 = vmatprep.subr.mxu1 %v5335_v34  ;;  %v793_v4 = vld [vmem:[%s9921_s2 + $0x248] sm:$0xff] }
  0x68   : > { %956 = vmatpush2.msra.mxu0 %v749_v5  ;;  %1181 = vmatpush2.msra.mxu1 %v781_v6  ;;  %v538_v5 = vld [vmem:[%s9919_s0 + $0x150] sm:$0xff]  ;;  %v540_v6 = vld [vmem:[%s9919_s0 + $0x160] sm:$0xff] }
  0x69   : > { %957 = vmatprep.subr.mxu0 %v5335_v34  ;;  %1182 = vmatprep.subr.mxu1 %v5335_v34 }
  0x6a   : > { %958 = vmatpush2.msra.mxu0 %v748_v7  ;;  %1183 = vmatpush2.msra.mxu1 %v780_v8  ;;  %v546_v7 = vld [vmem:[%s9919_s0 + $0x190] sm:$0xff]  ;;  %v548_v8 = vld [vmem:[%s9919_s0 + $0x1a0] sm:$0xff] }
  0x6b   : > { %959 = vmatprep.subr.mxu0 %v5335_v34  ;;  %1184 = vmatprep.subr.mxu1 %v5335_v34 }
  0x6c   : > { %960 = vmatpush2.msra.mxu0 %v747_v9  ;;  %1185 = vmatpush2.msra.mxu1 %v779_v10  ;;  %v792_v9 = vld [vmem:[%s9921_s2 + $0x240] sm:$0xff]  ;;  %v545_v10 = vld [vmem:[%s9919_s0 + $0x188] sm:$0xff] }
  0x6d   : > { %961 = vmatprep.subr.mxu0 %v5335_v34  ;;  %1186 = vmatprep.subr.mxu1 %v5335_v34 }
  0x6e   : > { %962 = vmatpush2.msra.mxu0 %v746_v11  ;;  %1187 = vmatpush2.msra.mxu1 %v778_v12  ;;  %v547_v11 = vld [vmem:[%s9919_s0 + $0x198] sm:$0xff]  ;;  %v553_v12 = vld [vmem:[%s9919_s0 + $0x1c8] sm:$0xff] }
  0x6f   : > { %963 = vmatprep.subr.mxu0 %v5335_v34  ;;  %1188 = vmatprep.subr.mxu1 %v5335_v34 }
  0x70   : > { %964 = vmatpush2.msra.mxu0 %v745_v13  ;;  %1189 = vmatpush2.msra.mxu1 %v777_v14  ;;  %v555_v13 = vld [vmem:[%s9919_s0 + $0x1d8] sm:$0xff] }
  0x71   : > { %965 = vmatprep.subr.mxu0 %v5335_v34  ;;  %1190 = vmatprep.subr.mxu1 %v5335_v34  ;;  %v791_v14 = vld [vmem:[%s9921_s2 + $0x238] sm:$0xff] }
  0x72   : > { %966 = vmatpush2.msra.mxu0 %v744_v15  ;;  %1191 = vmatpush2.msra.mxu1 %v776_v16  ;;  %v552_v15 = vld [vmem:[%s9919_s0 + $0x1c0] sm:$0xff]  ;;  %v554_v16 = vld [vmem:[%s9919_s0 + $0x1d0] sm:$0xff] }
  0x73   : > { %967 = vmatprep.subr.mxu0 %v5335_v34  ;;  %1192 = vmatprep.subr.mxu1 %v5335_v34 }
  0x74   : > { %968 = vmatpush2.msra.mxu0 %v743_v17  ;;  %1193 = vmatpush2.msra.mxu1 %v775_v18  ;;  %v560_v17 = vld [vmem:[%s9919_s0 + $0x200] sm:$0xff]  ;;  %v562_v18 = vld [vmem:[%s9919_s0 + $0x210] sm:$0xff] }
  0x75   : > { %969 = vmatprep.subr.mxu0 %v5335_v34  ;;  %1194 = vmatprep.subr.mxu1 %v5335_v34 }
  0x76   : > { %970 = vmatpush2.msra.mxu0 %v742_v19  ;;  %1195 = vmatpush2.msra.mxu1 %v774_v20  ;;  %v790_v19 = vld [vmem:[%s9921_s2 + $0x230] sm:$0xff]  ;;  %v559_v20 = vld [vmem:[%s9919_s0 + $0x1f8] sm:$0xff] }
  0x77   : > { %971 = vmatprep.subr.mxu0 %v5335_v34  ;;  %1196 = vmatprep.subr.mxu1 %v5335_v34 }
  0x78   : > { %972 = vmatpush2.msra.mxu0 %v741_v21  ;;  %1197 = vmatpush2.msra.mxu1 %v773_v22  ;;  %v561_v21 = vld [vmem:[%s9919_s0 + $0x208] sm:$0xff]  ;;  %v567_v22 = vld [vmem:[%s9919_s0 + $0x238] sm:$0xff] }
  0x79   : > { %973 = vmatprep.subr.mxu0 %v5335_v34  ;;  %1198 = vmatprep.subr.mxu1 %v5335_v34 }
  0x7a   : > { %974 = vmatpush2.msra.mxu0 %v740_v23  ;;  %1199 = vmatpush2.msra.mxu1 %v772_v24  ;;  %v569_v23 = vld [vmem:[%s9919_s0 + $0x248] sm:$0xff] }
  0x7b   : > { %975 = vmatprep.subr.mxu0 %v5335_v34  ;;  %1200 = vmatprep.subr.mxu1 %v5335_v34  ;;  %v789_v24 = vld [vmem:[%s9921_s2 + $0x228] sm:$0xff] }
  0x7c   : > { %976 = vmatpush2.msra.mxu0 %v739_v25  ;;  %1201 = vmatpush2.msra.mxu1 %v771_v26  ;;  %v566_v25 = vld [vmem:[%s9919_s0 + $0x230] sm:$0xff]  ;;  %v568_v26 = vld [vmem:[%s9919_s0 + $0x240] sm:$0xff] }
  0x7d   : > { %977 = vmatprep.subr.mxu0 %v5335_v34  ;;  %1202 = vmatprep.subr.mxu1 %v5335_v34 }
  0x7e   : > { %978 = vmatpush2.msra.mxu0 %v738_v27  ;;  %1203 = vmatpush2.msra.mxu1 %v770_v28  ;;  %v574_v27 = vld [vmem:[%s9919_s0 + $0x270] sm:$0xff]  ;;  %v576_v28 = vld [vmem:[%s9919_s0 + $0x280] sm:$0xff] }
  0x7f   : > { %979 = vmatprep.subr.mxu0 %v5335_v34  ;;  %1204 = vmatprep.subr.mxu1 %v5335_v34 }
  0x80   : > { %980 = vmatpush2.msra.mxu0 %v737_v29  ;;  %1205 = vmatpush2.msra.mxu1 %v769_v30  ;;  %v788_v29 = vld [vmem:[%s9921_s2 + $0x220] sm:$0xff]  ;;  %v573_v30 = vld [vmem:[%s9919_s0 + $0x268] sm:$0xff] }
  0x81   : > { %981 = vmatprep.subr.mxu0 %v5335_v34  ;;  %1206 = vmatprep.subr.mxu1 %v5335_v34 }
  0x82   : > { %982 = vmatpush2.msra.mxu0 %v736_v31  ;;  %983 = vmatprep.mubr.f32.mxu0 %v497_v32  ;;  %v575_v31 = vld [vmem:[%s9919_s0 + $0x278] sm:$0xff]  ;;  %v581_v32 = vld [vmem:[%s9919_s0 + $0x2a8] sm:$0xff] }
  0x83   : > { %1207 = vmatpush2.msra.mxu1 %v768_v33  ;;  %1208 = vmatprep.mubr.f32.mxu1 %v499_v35  ;;  %v583_v33 = vld [vmem:[%s9919_s0 + $0x2b8] sm:$0xff] }
  0x84   : > { %984 = vmatmul.mubr.f32.vlgmr.msra.gmra.mxu0 %v496_v36  ;;  %1209 = vmatmul.mubr.f32.vlgmr.msra.gmra.mxu1 %v498_v37  ;;  %v787_v35 = vld [vmem:[%s9921_s2 + $0x218] sm:$0xff]  ;;  %v580_v36 = vld [vmem:[%s9919_s0 + $0x2a0] sm:$0xff]  ;;  %v582_v37 = vld [vmem:[%s9919_s0 + $0x2b0] sm:$0xff] }
  0x85   : > { %1369 = vmatprep.subr.mxu0 %v5335_v34  ;;  %988 = vmatprep.mubr.f32.mxu0 %v504_v38  ;;  %v588_v38 = vld [vmem:[%s9919_s0 + $0x2e0] sm:$0xff] }
  0x86   : > { %1370 = vmatpush1.msra.mxu0 %v799_v39  ;;  %1213 = vmatprep.mubr.f32.mxu1 %v506_v40  ;;  %v590_v39 = vld [vmem:[%s9919_s0 + $0x2f0] sm:$0xff] }
  0x87   : > { %1371 = vmatprep.subr.mxu0 %v5335_v34  ;;  %4967 = vmatprep.subr.mxu1 %v817_v41  ;;  %v786_v40 = vld [vmem:[%s9921_s2 + $0x210] sm:$0xff] }
  0x88   : > { %989 = vmatmul.mubr.f32.gmra.mxu0 %v503_v42  ;;  %1214 = vmatmul.mubr.f32.gmra.mxu1 %v505_v43  ;;  %v589_v42 = vld [vmem:[%s9919_s0 + $0x2e8] sm:$0xff]  ;;  %v595_v43 = vld [vmem:[%s9919_s0 + $0x318] sm:$0xff] }
  0x89   : > { %1372 = vmatpush1.msra.mxu0 %v798_v44  ;;  %993 = vmatprep.mubr.f32.mxu0 %v511_v45  ;;  %v597_v44 = vld [vmem:[%s9919_s0 + $0x328] sm:$0xff] }
  0x8a   : > { %1218 = vmatprep.mubr.f32.mxu1 %v513_v46  ;;  %1373 = vmatprep.subr.mxu0 %v5335_v34  ;;  %v785_v45 = vld [vmem:[%s9921_s2 + $0x208] sm:$0xff]  ;;  %v594_v46 = vld [vmem:[%s9919_s0 + $0x310] sm:$0xff] }
  0x8b   : > { %1374 = vmatpush1.msra.mxu0 %v797_v47  ;;  %4968 = vmatpush3.msra.mxu1 %v817_v41  ;;  %v587_v41 = vld [vmem:[%s9919_s0 + $0x2d8] sm:$0xff]  ;;  %v596_v47 = vld [vmem:[%s9919_s0 + $0x320] sm:$0xff] }
  0x8c   : > { %994 = vmatmul.mubr.f32.gmra.mxu0 %v510_v48  ;;  %1219 = vmatmul.mubr.f32.gmra.mxu1 %v512_v49  ;;  %v602_v48 = vld [vmem:[%s9919_s0 + $0x350] sm:$0xff]  ;;  %v604_v49 = vld [vmem:[%s9919_s0 + $0x360] sm:$0xff] }
  0x8d   : > { %998 = vmatprep.mubr.f32.mxu0 %v518_v50  ;;  %1223 = vmatprep.mubr.f32.mxu1 %v520_v51  ;;  %v784_v50 = vld [vmem:[%s9921_s2 + $0x200] sm:$0xff]  ;;  %v601_v51 = vld [vmem:[%s9919_s0 + $0x348] sm:$0xff] }
  0x8e   : > { %1375 = vmatprep.subr.mxu0 %v5335_v34  ;;  %4969 = vmatprep.subr.mxu1 %v816_v55 }
  0x8f   : > { %1376 = vmatpush1.msra.mxu0 %v796_v52  ;;  %4970 = vmatpush3.msra.mxu1 %v816_v55  ;;  %v603_v52 = vld [vmem:[%s9919_s0 + $0x358] sm:$0xff] }
  0x90   : > { %999 = vmatmul.mubr.f32.gmra.mxu0 %v517_v53  ;;  %1224 = vmatmul.mubr.f32.gmra.mxu1 %v519_v54  ;;  %v609_v53 = vld [vmem:[%s9919_s0 + $0x388] sm:$0xff]  ;;  %v611_v54 = vld [vmem:[%s9919_s0 + $0x398] sm:$0xff] }
  0x91   : > { %1003 = vmatprep.mubr.f32.mxu0 %v525_v56  ;;  %1228 = vmatprep.mubr.f32.mxu1 %v527_v57  ;;  %v815_v55 = vld [vmem:[%s9921_s2 + $0x2f8] sm:$0xff]  ;;  %v608_v56 = vld [vmem:[%s9919_s0 + $0x380] sm:$0xff]  ;;  %v610_v57 = vld [vmem:[%s9919_s0 + $0x390] sm:$0xff] }
  0x92   : > { %1377 = vmatprep.subr.mxu0 %v5335_v34 }
  0x93   : > { %1378 = vmatpush1.msra.mxu0 %v795_v58  ;;  %v616_v58 = vld [vmem:[%s9919_s0 + $0x3c0] sm:$0xff] }
  0x94   : > { %1004 = vmatmul.mubr.f32.gmra.mxu0 %v524_v59  ;;  %1229 = vmatmul.mubr.f32.gmra.mxu1 %v526_v60  ;;  %v618_v59 = vld [vmem:[%s9919_s0 + $0x3d0] sm:$0xff] }
  0x95   : > { %1008 = vmatprep.mubr.f32.mxu0 %v532_v61  ;;  %1233 = vmatprep.mubr.f32.mxu1 %v534_v62  ;;  %v814_v60 = vld [vmem:[%s9921_s2 + $0x2f0] sm:$0xff]  ;;  %v615_v61 = vld [vmem:[%s9919_s0 + $0x3b8] sm:$0xff]  ;;  %v617_v62 = vld [vmem:[%s9919_s0 + $0x3c8] sm:$0xff] }
  0x96   : > { %1379 = vmatprep.subr.mxu0 %v5335_v34 }
  0x97   : > { %1380 = vmatpush1.msra.mxu0 %v794_v63  ;;  %v623_v63 = vld [vmem:[%s9919_s0 + $0x3f8] sm:$0xff] }
  0x98   : > { %1009 = vmatmul.mubr.f32.gmra.mxu0 %v531_v0  ;;  %1234 = vmatmul.mubr.f32.gmra.mxu1 %v533_v1  ;;  %v625_v0 = vld [vmem:[%s9919_s0 + $0x408] sm:$0xff] }
  0x99   : > { %1013 = vmatprep.mubr.f32.mxu0 %v539_v2  ;;  %1238 = vmatprep.mubr.f32.mxu1 %v541_v3  ;;  %v813_v1 = vld [vmem:[%s9921_s2 + $0x2e8] sm:$0xff]  ;;  %v622_v2 = vld [vmem:[%s9919_s0 + $0x3f0] sm:$0xff]  ;;  %v624_v3 = vld [vmem:[%s9919_s0 + $0x400] sm:$0xff] }
  0x9a   : > { %1381 = vmatprep.subr.mxu0 %v5335_v34 }
  0x9b   : > { %1382 = vmatpush1.msra.mxu0 %v793_v4  ;;  %v630_v4 = vld [vmem:[%s9919_s0 + $0x430] sm:$0xff] }
  0x9c   : > { %1014 = vmatmul.mubr.f32.gmra.mxu0 %v538_v5  ;;  %1239 = vmatmul.mubr.f32.gmra.mxu1 %v540_v6  ;;  %v632_v5 = vld [vmem:[%s9919_s0 + $0x440] sm:$0xff] }
  0x9d   : > { %1018 = vmatprep.mubr.f32.mxu0 %v546_v7  ;;  %1243 = vmatprep.mubr.f32.mxu1 %v548_v8  ;;  %v812_v6 = vld [vmem:[%s9921_s2 + $0x2e0] sm:$0xff]  ;;  %v629_v7 = vld [vmem:[%s9919_s0 + $0x428] sm:$0xff]  ;;  %v631_v8 = vld [vmem:[%s9919_s0 + $0x438] sm:$0xff] }
  0x9e   : > { %1383 = vmatprep.subr.mxu0 %v5335_v34 }
  0x9f   : > { %1384 = vmatpush1.msra.mxu0 %v792_v9  ;;  %v637_v9 = vld [vmem:[%s9919_s0 + $0x468] sm:$0xff] }
  0xa0   : > { %1019 = vmatmul.mubr.f32.gmra.mxu0 %v545_v10  ;;  %1244 = vmatmul.mubr.f32.gmra.mxu1 %v547_v11  ;;  %v639_v10 = vld [vmem:[%s9919_s0 + $0x478] sm:$0xff] }
  0xa1   : > { %1023 = vmatprep.mubr.f32.mxu0 %v553_v12  ;;  %1248 = vmatprep.mubr.f32.mxu1 %v555_v13  ;;  %v811_v11 = vld [vmem:[%s9921_s2 + $0x2d8] sm:$0xff]  ;;  %v636_v12 = vld [vmem:[%s9919_s0 + $0x460] sm:$0xff]  ;;  %v638_v13 = vld [vmem:[%s9919_s0 + $0x470] sm:$0xff] }
  0xa2   : > { %1385 = vmatprep.subr.mxu0 %v5335_v34 }
  0xa3   : > { %1386 = vmatpush1.msra.mxu0 %v791_v14  ;;  %v644_v14 = vld [vmem:[%s9919_s0 + $0x4a0] sm:$0xff] }
  0xa4   : > { %1024 = vmatmul.mubr.f32.gmra.mxu0 %v552_v15  ;;  %1249 = vmatmul.mubr.f32.gmra.mxu1 %v554_v16  ;;  %v646_v15 = vld [vmem:[%s9919_s0 + $0x4b0] sm:$0xff] }
  0xa5   : > { %1028 = vmatprep.mubr.f32.mxu0 %v560_v17  ;;  %1253 = vmatprep.mubr.f32.mxu1 %v562_v18  ;;  %v810_v16 = vld [vmem:[%s9921_s2 + $0x2d0] sm:$0xff]  ;;  %v643_v17 = vld [vmem:[%s9919_s0 + $0x498] sm:$0xff]  ;;  %v645_v18 = vld [vmem:[%s9919_s0 + $0x4a8] sm:$0xff] }
  0xa6   : > { %1387 = vmatprep.subr.mxu0 %v5335_v34 }
  0xa7   : > { %1388 = vmatpush1.msra.mxu0 %v790_v19  ;;  %v651_v19 = vld [vmem:[%s9919_s0 + $0x4d8] sm:$0xff] }
  0xa8   : > { %1029 = vmatmul.mubr.f32.gmra.mxu0 %v559_v20  ;;  %1254 = vmatmul.mubr.f32.gmra.mxu1 %v561_v21  ;;  %v653_v20 = vld [vmem:[%s9919_s0 + $0x4e8] sm:$0xff] }
  0xa9   : > { %1033 = vmatprep.mubr.f32.mxu0 %v567_v22  ;;  %1258 = vmatprep.mubr.f32.mxu1 %v569_v23  ;;  %v809_v21 = vld [vmem:[%s9921_s2 + $0x2c8] sm:$0xff]  ;;  %v650_v22 = vld [vmem:[%s9919_s0 + $0x4d0] sm:$0xff]  ;;  %v652_v23 = vld [vmem:[%s9919_s0 + $0x4e0] sm:$0xff] }
  0xaa   : > { %1389 = vmatprep.subr.mxu0 %v5335_v34 }
  0xab   : > { %1390 = vmatpush1.msra.mxu0 %v789_v24  ;;  %v658_v24 = vld [vmem:[%s9919_s0 + $0x510] sm:$0xff] }
  0xac   : > { %1034 = vmatmul.mubr.f32.gmra.mxu0 %v566_v25  ;;  %1259 = vmatmul.mubr.f32.gmra.mxu1 %v568_v26  ;;  %v660_v25 = vld [vmem:[%s9919_s0 + $0x520] sm:$0xff] }
  0xad   : > { %1038 = vmatprep.mubr.f32.mxu0 %v574_v27  ;;  %1263 = vmatprep.mubr.f32.mxu1 %v576_v28  ;;  %v808_v26 = vld [vmem:[%s9921_s2 + $0x2c0] sm:$0xff]  ;;  %v657_v27 = vld [vmem:[%s9919_s0 + $0x508] sm:$0xff]  ;;  %v659_v28 = vld [vmem:[%s9919_s0 + $0x518] sm:$0xff] }
  0xae   : > { %1391 = vmatprep.subr.mxu0 %v5335_v34 }
  0xaf   : > { %1392 = vmatpush1.msra.mxu0 %v788_v29  ;;  %v665_v29 = vld [vmem:[%s9919_s0 + $0x548] sm:$0xff] }
  0xb0   : > { %1039 = vmatmul.mubr.f32.gmra.mxu0 %v573_v30  ;;  %1264 = vmatmul.mubr.f32.gmra.mxu1 %v575_v31  ;;  %v667_v30 = vld [vmem:[%s9919_s0 + $0x558] sm:$0xff] }
  0xb1   : > { %1043 = vmatprep.mubr.f32.mxu0 %v581_v32  ;;  %1268 = vmatprep.mubr.f32.mxu1 %v583_v33  ;;  %v807_v31 = vld [vmem:[%s9921_s2 + $0x2b8] sm:$0xff]  ;;  %v664_v32 = vld [vmem:[%s9919_s0 + $0x540] sm:$0xff]  ;;  %v666_v33 = vld [vmem:[%s9919_s0 + $0x550] sm:$0xff] }
  0xb2   : > { %1393 = vmatprep.subr.mxu0 %v5335_v34 }
  0xb3   : > { %1394 = vmatpush1.msra.mxu0 %v787_v35  ;;  %v672_v35 = vld [vmem:[%s9919_s0 + $0x580] sm:$0xff] }
  0xb4   : > { %1044 = vmatmul.mubr.f32.gmra.mxu0 %v580_v36  ;;  %1269 = vmatmul.mubr.f32.gmra.mxu1 %v582_v37  ;;  %v674_v36 = vld [vmem:[%s9919_s0 + $0x590] sm:$0xff] }
  0xb5   : > { %1048 = vmatprep.mubr.f32.mxu0 %v588_v38  ;;  %1273 = vmatprep.mubr.f32.mxu1 %v590_v39  ;;  %v806_v37 = vld [vmem:[%s9921_s2 + $0x2b0] sm:$0xff]  ;;  %v671_v38 = vld [vmem:[%s9919_s0 + $0x578] sm:$0xff]  ;;  %v673_v39 = vld [vmem:[%s9919_s0 + $0x588] sm:$0xff] }
  0xb6   : > { %1395 = vmatprep.subr.mxu0 %v5335_v34 }
  0xb7   : > { %1396 = vmatpush1.msra.mxu0 %v786_v40  ;;  %v679_v40 = vld [vmem:[%s9919_s0 + $0x5b8] sm:$0xff] }
  0xb8   : > { %1049 = vmatmul.mubr.f32.gmra.mxu0 %v587_v41  ;;  %1274 = vmatmul.mubr.f32.gmra.mxu1 %v589_v42  ;;  %v681_v41 = vld [vmem:[%s9919_s0 + $0x5c8] sm:$0xff] }
  0xb9   : > { %1053 = vmatprep.mubr.f32.mxu0 %v595_v43  ;;  %1278 = vmatprep.mubr.f32.mxu1 %v597_v44  ;;  %v805_v42 = vld [vmem:[%s9921_s2 + $0x2a8] sm:$0xff]  ;;  %v678_v43 = vld [vmem:[%s9919_s0 + $0x5b0] sm:$0xff]  ;;  %v680_v44 = vld [vmem:[%s9919_s0 + $0x5c0] sm:$0xff] }
  0xba   : > { %1397 = vmatprep.subr.mxu0 %v5335_v34 }
  0xbb   : > { %1398 = vmatpush1.msra.mxu0 %v785_v45  ;;  %v686_v45 = vld [vmem:[%s9919_s0 + $0x5f0] sm:$0xff] }
  0xbc   : > { %1054 = vmatmul.mubr.f32.gmra.mxu0 %v594_v46  ;;  %1279 = vmatmul.mubr.f32.gmra.mxu1 %v596_v47  ;;  %v688_v46 = vld [vmem:[%s9919_s0 + $0x600] sm:$0xff] }
  0xbd   : > { %1058 = vmatprep.mubr.f32.mxu0 %v602_v48  ;;  %1283 = vmatprep.mubr.f32.mxu1 %v604_v49  ;;  %v804_v47 = vld [vmem:[%s9921_s2 + $0x2a0] sm:$0xff]  ;;  %v685_v48 = vld [vmem:[%s9919_s0 + $0x5e8] sm:$0xff]  ;;  %v687_v49 = vld [vmem:[%s9919_s0 + $0x5f8] sm:$0xff] }
  0xbe   : > { %1399 = vmatprep.subr.mxu0 %v5335_v34 }
  0xbf   : > { %1400 = vmatpush1.msra.mxu0 %v784_v50  ;;  %v693_v50 = vld [vmem:[%s9919_s0 + $0x628] sm:$0xff] }
  0xc0   : > { %1059 = vmatmul.mubr.f32.gmra.mxu0 %v601_v51  ;;  %1284 = vmatmul.mubr.f32.gmra.mxu1 %v603_v52  ;;  %v695_v51 = vld [vmem:[%s9919_s0 + $0x638] sm:$0xff] }
  0xc1   : > { %1063 = vmatprep.mubr.f32.mxu0 %v609_v53  ;;  %1288 = vmatprep.mubr.f32.mxu1 %v611_v54  ;;  %v803_v52 = vld [vmem:[%s9921_s2 + $0x298] sm:$0xff]  ;;  %v692_v53 = vld [vmem:[%s9919_s0 + $0x620] sm:$0xff]  ;;  %v694_v54 = vld [vmem:[%s9919_s0 + $0x630] sm:$0xff] }
  0xc2   : > { %1401 = vmatprep.subr.mxu0 %v5335_v34 }
  0xc3   : > { %1402 = vmatpush2.msra.mxu0 %v815_v55  ;;  %v700_v55 = vld [vmem:[%s9919_s0 + $0x660] sm:$0xff] }
  0xc4   : > { %1064 = vmatmul.mubr.f32.gmra.mxu0 %v608_v56  ;;  %1289 = vmatmul.mubr.f32.gmra.mxu1 %v610_v57  ;;  %v702_v56 = vld [vmem:[%s9919_s0 + $0x670] sm:$0xff] }
  0xc5   : > { %1068 = vmatprep.mubr.f32.mxu0 %v616_v58  ;;  %1293 = vmatprep.mubr.f32.mxu1 %v618_v59  ;;  %v802_v57 = vld [vmem:[%s9921_s2 + $0x290] sm:$0xff]  ;;  %v699_v58 = vld [vmem:[%s9919_s0 + $0x658] sm:$0xff]  ;;  %v701_v59 = vld [vmem:[%s9919_s0 + $0x668] sm:$0xff] }
  0xc6   : > { %1403 = vmatprep.subr.mxu0 %v5335_v34 }
  0xc7   : > { %1404 = vmatpush2.msra.mxu0 %v814_v60  ;;  %v707_v60 = vld [vmem:[%s9919_s0 + $0x698] sm:$0xff] }
  0xc8   : > { %1069 = vmatmul.mubr.f32.gmra.mxu0 %v615_v61  ;;  %1294 = vmatmul.mubr.f32.gmra.mxu1 %v617_v62  ;;  %v709_v61 = vld [vmem:[%s9919_s0 + $0x6a8] sm:$0xff] }
  0xc9   : > { %1073 = vmatprep.mubr.f32.mxu0 %v623_v63  ;;  %1298 = vmatprep.mubr.f32.mxu1 %v625_v0  ;;  %v801_v62 = vld [vmem:[%s9921_s2 + $0x288] sm:$0xff]  ;;  %v706_v63 = vld [vmem:[%s9919_s0 + $0x690] sm:$0xff]  ;;  %v708_v0 = vld [vmem:[%s9919_s0 + $0x6a0] sm:$0xff] }
  0xca   : > { %1405 = vmatprep.subr.mxu0 %v5335_v34 }
  0xcb   : > { %1406 = vmatpush2.msra.mxu0 %v813_v1  ;;  %v714_v1 = vld [vmem:[%s9919_s0 + $0x6d0] sm:$0xff] }
  0xcc   : > { %1074 = vmatmul.mubr.f32.gmra.mxu0 %v622_v2  ;;  %1299 = vmatmul.mubr.f32.gmra.mxu1 %v624_v3  ;;  %v716_v2 = vld [vmem:[%s9919_s0 + $0x6e0] sm:$0xff] }
  0xcd   : > { %1078 = vmatprep.mubr.f32.mxu0 %v630_v4  ;;  %1303 = vmatprep.mubr.f32.mxu1 %v632_v5  ;;  %v800_v3 = vld [vmem:[%s9921_s2 + $0x280] sm:$0xff]  ;;  %v713_v4 = vld [vmem:[%s9919_s0 + $0x6c8] sm:$0xff]  ;;  %v715_v5 = vld [vmem:[%s9919_s0 + $0x6d8] sm:$0xff] }
  0xce   : > { %1407 = vmatprep.subr.mxu0 %v5335_v34 }
  0xcf   : > { %1408 = vmatpush2.msra.mxu0 %v812_v6  ;;  %v501_v6 = vld [vmem:[%s9919_s0 + $0x28] sm:$0xff] }
  0xd0   : > { %1079 = vmatmul.mubr.f32.gmra.mxu0 %v629_v7  ;;  %1304 = vmatmul.mubr.f32.gmra.mxu1 %v631_v8  ;;  %v502_v7 = vld [vmem:[%s9919_s0 + $0x30] sm:$0xff]  ;;  %v500_v8 = vld [vmem:[%s9919_s0 + $0x20] sm:$0xff] }
  0xd1   : > { %1083 = vmatprep.mubr.f32.mxu0 %v637_v9  ;;  %1308 = vmatprep.mubr.f32.mxu1 %v639_v10  ;;  %v508_v9 = vld [vmem:[%s9919_s0 + $0x60] sm:$0xff] }
  0xd2   : > { %1409 = vmatprep.subr.mxu0 %v5335_v34  ;;  %v516_v10 = vld [vmem:[%s9919_s0 + $0xa0] sm:$0xff] }
  0xd3   : > { %1410 = vmatpush2.msra.mxu0 %v811_v11  ;;  %v507_v11 = vld [vmem:[%s9919_s0 + $0x58] sm:$0xff] }
  0xd4   : > { %1084 = vmatmul.mubr.f32.gmra.mxu0 %v636_v12  ;;  %1309 = vmatmul.mubr.f32.gmra.mxu1 %v638_v13  ;;  %v523_v12 = vld [vmem:[%s9919_s0 + $0xd8] sm:$0xff] }
  0xd5   : > { %1088 = vmatprep.mubr.f32.mxu0 %v644_v14  ;;  %1313 = vmatprep.mubr.f32.mxu1 %v646_v15  ;;  %v515_v13 = vld [vmem:[%s9919_s0 + $0x98] sm:$0xff]  ;;  %v530_v14 = vld [vmem:[%s9919_s0 + $0x110] sm:$0xff] }
  0xd6   : > { %1411 = vmatprep.subr.mxu0 %v5335_v34  ;;  %v514_v15 = vld [vmem:[%s9919_s0 + $0x90] sm:$0xff] }
  0xd7   : > { %1412 = vmatpush2.msra.mxu0 %v810_v16  ;;  %v537_v16 = vld [vmem:[%s9919_s0 + $0x148] sm:$0xff] }
  0xd8   : > { %1089 = vmatmul.mubr.f32.gmra.mxu0 %v643_v17  ;;  %1314 = vmatmul.mubr.f32.gmra.mxu1 %v645_v18  ;;  %v522_v17 = vld [vmem:[%s9919_s0 + $0xd0] sm:$0xff]  ;;  %v544_v18 = vld [vmem:[%s9919_s0 + $0x180] sm:$0xff] }
  0xd9   : > { %1093 = vmatprep.mubr.f32.mxu0 %v651_v19  ;;  %1318 = vmatprep.mubr.f32.mxu1 %v653_v20  ;;  %v521_v19 = vld [vmem:[%s9919_s0 + $0xc8] sm:$0xff]  ;;  %v551_v20 = vld [vmem:[%s9919_s0 + $0x1b8] sm:$0xff] }
  0xda   : > { %1413 = vmatprep.subr.mxu0 %v5335_v34 }
  0xdb   : > { %1414 = vmatpush2.msra.mxu0 %v809_v21  ;;  %v529_v21 = vld [vmem:[%s9919_s0 + $0x108] sm:$0xff] }
  0xdc   : > { %1094 = vmatmul.mubr.f32.gmra.mxu0 %v650_v22  ;;  %1319 = vmatmul.mubr.f32.gmra.mxu1 %v652_v23  ;;  %v558_v22 = vld [vmem:[%s9919_s0 + $0x1f0] sm:$0xff]  ;;  %v528_v23 = vld [vmem:[%s9919_s0 + $0x100] sm:$0xff] }
  0xdd   : > { %1098 = vmatprep.mubr.f32.mxu0 %v658_v24  ;;  %1323 = vmatprep.mubr.f32.mxu1 %v660_v25  ;;  %v565_v24 = vld [vmem:[%s9919_s0 + $0x228] sm:$0xff]  ;;  %v536_v25 = vld [vmem:[%s9919_s0 + $0x140] sm:$0xff] }
  0xde   : > { %1415 = vmatprep.subr.mxu0 %v5335_v34 }
  0xdf   : > { %1416 = vmatpush2.msra.mxu0 %v808_v26  ;;  %v572_v26 = vld [vmem:[%s9919_s0 + $0x260] sm:$0xff] }
  0xe0   : > { %1099 = vmatmul.mubr.f32.gmra.mxu0 %v657_v27  ;;  %1324 = vmatmul.mubr.f32.gmra.mxu1 %v659_v28  ;;  %v535_v27 = vld [vmem:[%s9919_s0 + $0x138] sm:$0xff] }
  0xe1   : > { %1103 = vmatprep.mubr.f32.mxu0 %v665_v29  ;;  %1328 = vmatprep.mubr.f32.mxu1 %v667_v30  ;;  %v579_v28 = vld [vmem:[%s9919_s0 + $0x298] sm:$0xff]  ;;  %v586_v30 = vld [vmem:[%s9919_s0 + $0x2d0] sm:$0xff] }
  0xe2   : > { %1417 = vmatprep.subr.mxu0 %v5335_v34  ;;  %v543_v29 = vld [vmem:[%s9919_s0 + $0x178] sm:$0xff] }
  0xe3   : > { %1418 = vmatpush2.msra.mxu0 %v807_v31  ;;  %v542_v31 = vld [vmem:[%s9919_s0 + $0x170] sm:$0xff] }
  0xe4   : > { %1104 = vmatmul.mubr.f32.gmra.mxu0 %v664_v32  ;;  %1329 = vmatmul.mubr.f32.gmra.mxu1 %v666_v33  ;;  %v593_v32 = vld [vmem:[%s9919_s0 + $0x308] sm:$0xff]  ;;  %v550_v33 = vld [vmem:[%s9919_s0 + $0x1b0] sm:$0xff] }
  0xe5   : > { %1108 = vmatprep.mubr.f32.mxu0 %v672_v35  ;;  %1333 = vmatprep.mubr.f32.mxu1 %v674_v36  ;;  %v600_v35 = vld [vmem:[%s9919_s0 + $0x340] sm:$0xff]  ;;  %v549_v36 = vld [vmem:[%s9919_s0 + $0x1a8] sm:$0xff] }
  0xe6   : > { %1419 = vmatprep.subr.mxu0 %v5335_v34 }
  0xe7   : > { %1420 = vmatpush2.msra.mxu0 %v806_v37  ;;  %v607_v37 = vld [vmem:[%s9919_s0 + $0x378] sm:$0xff] }
  0xe8   : > { %1109 = vmatmul.mubr.f32.gmra.mxu0 %v671_v38  ;;  %1334 = vmatmul.mubr.f32.gmra.mxu1 %v673_v39  ;;  %v557_v38 = vld [vmem:[%s9919_s0 + $0x1e8] sm:$0xff]  ;;  %v614_v39 = vld [vmem:[%s9919_s0 + $0x3b0] sm:$0xff] }
  0xe9   : > { %1113 = vmatprep.mubr.f32.mxu0 %v679_v40  ;;  %1338 = vmatprep.mubr.f32.mxu1 %v681_v41  ;;  %v556_v40 = vld [vmem:[%s9919_s0 + $0x1e0] sm:$0xff]  ;;  %v621_v41 = vld [vmem:[%s9919_s0 + $0x3e8] sm:$0xff] }
  0xea   : > { %1421 = vmatprep.subr.mxu0 %v5335_v34 }
  0xeb   : > { %1422 = vmatpush2.msra.mxu0 %v805_v42  ;;  %v564_v42 = vld [vmem:[%s9919_s0 + $0x220] sm:$0xff] }
  0xec   : > { %1114 = vmatmul.mubr.f32.gmra.mxu0 %v678_v43  ;;  %1339 = vmatmul.mubr.f32.gmra.mxu1 %v680_v44  ;;  %v628_v43 = vld [vmem:[%s9919_s0 + $0x420] sm:$0xff]  ;;  %v563_v44 = vld [vmem:[%s9919_s0 + $0x218] sm:$0xff] }
  0xed   : > { %1118 = vmatprep.mubr.f32.mxu0 %v686_v45  ;;  %1343 = vmatprep.mubr.f32.mxu1 %v688_v46  ;;  %v635_v45 = vld [vmem:[%s9919_s0 + $0x458] sm:$0xff] }
  0xee   : > { %1423 = vmatprep.subr.mxu0 %v5335_v34  ;;  %v571_v46 = vld [vmem:[%s9919_s0 + $0x258] sm:$0xff] }
  0xef   : > { %1424 = vmatpush2.msra.mxu0 %v804_v47  ;;  %v642_v47 = vld [vmem:[%s9919_s0 + $0x490] sm:$0xff] }
  0xf0   : > { %1119 = vmatmul.mubr.f32.gmra.mxu0 %v685_v48  ;;  %1344 = vmatmul.mubr.f32.gmra.mxu1 %v687_v49  ;;  %v570_v48 = vld [vmem:[%s9919_s0 + $0x250] sm:$0xff]  ;;  %v649_v49 = vld [vmem:[%s9919_s0 + $0x4c8] sm:$0xff] }
  0xf1   : > { %1123 = vmatprep.mubr.f32.mxu0 %v693_v50  ;;  %1348 = vmatprep.mubr.f32.mxu1 %v695_v51  ;;  %v578_v50 = vld [vmem:[%s9919_s0 + $0x290] sm:$0xff]  ;;  %v656_v51 = vld [vmem:[%s9919_s0 + $0x500] sm:$0xff] }
  0xf2   : > { %1425 = vmatprep.subr.mxu0 %v5335_v34 }
  0xf3   : > { %1426 = vmatpush2.msra.mxu0 %v803_v52  ;;  %v577_v52 = vld [vmem:[%s9919_s0 + $0x288] sm:$0xff] }
  0xf4   : > { %1124 = vmatmul.mubr.f32.gmra.mxu0 %v692_v53  ;;  %1349 = vmatmul.mubr.f32.gmra.mxu1 %v694_v54  ;;  %v663_v53 = vld [vmem:[%s9919_s0 + $0x538] sm:$0xff]  ;;  %v585_v54 = vld [vmem:[%s9919_s0 + $0x2c8] sm:$0xff] }
  0xf5   : > { %1128 = vmatprep.mubr.f32.mxu0 %v700_v55  ;;  %1353 = vmatprep.mubr.f32.mxu1 %v702_v56  ;;  %v670_v55 = vld [vmem:[%s9919_s0 + $0x570] sm:$0xff]  ;;  %v584_v56 = vld [vmem:[%s9919_s0 + $0x2c0] sm:$0xff] }
  0xf6   : > { %1427 = vmatprep.subr.mxu0 %v5335_v34 }
  0xf7   : > { %1428 = vmatpush2.msra.mxu0 %v802_v57  ;;  %v677_v57 = vld [vmem:[%s9919_s0 + $0x5a8] sm:$0xff] }
  0xf8   : > { %1129 = vmatmul.mubr.f32.gmra.mxu0 %v699_v58  ;;  %1354 = vmatmul.mubr.f32.gmra.mxu1 %v701_v59  ;;  %v592_v58 = vld [vmem:[%s9919_s0 + $0x300] sm:$0xff] }
  0xf9   : > { %1133 = vmatprep.mubr.f32.mxu0 %v707_v60  ;;  %1358 = vmatprep.mubr.f32.mxu1 %v709_v61  ;;  %v684_v59 = vld [vmem:[%s9919_s0 + $0x5e0] sm:$0xff]  ;;  %v591_v60 = vld [vmem:[%s9919_s0 + $0x2f8] sm:$0xff]  ;;  %v818_v61 = vlaneseq }
  0xfa   : > { %1429 = vmatprep.subr.mxu0 %v5335_v34 }
  0xfb   : > { %1430 = vmatpush2.msra.mxu0 %v801_v62  ;;  %v691_v62 = vld [vmem:[%s9919_s0 + $0x618] sm:$0xff] }
  0xfc   : > { %1134 = vmatmul.mubr.f32.gmra.mxu0 %v706_v63  ;;  %1359 = vmatmul.mubr.f32.gmra.mxu1 %v708_v0  ;;  %v599_v63 = vld [vmem:[%s9919_s0 + $0x338] sm:$0xff]  ;;  %v698_v0 = vld [vmem:[%s9919_s0 + $0x650] sm:$0xff] }
  0xfd   : > { %1138 = vmatprep.mubr.f32.mxu0 %v714_v1  ;;  %1363 = vmatprep.mubr.f32.mxu1 %v716_v2  ;;  %v598_v1 = vld [vmem:[%s9919_s0 + $0x330] sm:$0xff]  ;;  %v6523_v2 = vshrl.u32 %v818_v61, 7 }
  0xfe   : > { %1431 = vmatprep.subr.mxu0 %v5335_v34  ;;  %v509_v34 = vld [vmem:[%s9919_s0 + $0x68] sm:$0xff] }
  0xff   : > { %1432 = vmatpush2.msra.mxu0 %v800_v3  ;;  %v705_v3 = vld [vmem:[%s9919_s0 + $0x688] sm:$0xff] }
 0x100   : > { %1139 = vmatmul.mubr.f32.gmra.mxu0 %v713_v4  ;;  %1364 = vmatmul.mubr.f32.gmra.mxu1 %v715_v5  ;;  %v606_v4 = vld [vmem:[%s9919_s0 + $0x370] sm:$0xff]  ;;  %v712_v5 = vld [vmem:[%s9919_s0 + $0x6c0] sm:$0xff] }
 0x101   : > { %1433 = vmatprep.mubr.f32.mxu0 %v501_v6  ;;  %4971 = vmatprep.mubr.msk.f32.mxu1 %vm822_vm0, %v502_v7  ;;  %v605_v6 = vld [vmem:[%s9919_s0 + $0x368] sm:$0xff]  ;;  %v6540_v7 = vsub.s32 0, %v6523_v2 }
 0x104   : > { %1434 = vmatmul.mubr.f32.vlgmr.msra.gmra.mxu0 %v500_v8  ;;  %4972 = vmatmul.mubr.msk.f32.vlgmr.msra.gmra.mxu1 %vm822_vm0, %v509_v34  ;;  %v719_v8 = vld [vmem:[%s9919_s0 + $0x6f8] sm:$0xff]  ;;  %v613_v34 = vld [vmem:[%s9919_s0 + $0x3a8] sm:$0xff] }
 0x105   : > { %1438 = vmatprep.mubr.f32.mxu0 %v508_v9  ;;  %4974 = vmatprep.mubr.msk.f32.mxu1 %vm822_vm0, %v516_v10  ;;  %v493_v9 = vld [vmem:[%s9925_s6] sm:$0x7] }
 0x106   : > { %v6554_v10 = vrot.slane %v493_v9, %v6540_v7 }
 0x108   : > { %1439 = vmatmul.mubr.f32.gmra.mxu0 %v507_v11  ;;  %4975 = vmatmul.mubr.msk.f32.gmra.mxu1 %vm822_vm0, %v523_v12  ;;  %v612_v11 = vld [vmem:[%s9919_s0 + $0x3a0] sm:$0xff] }
 0x109   : > { %1443 = vmatprep.mubr.f32.mxu0 %v515_v13  ;;  %4977 = vmatprep.mubr.msk.f32.mxu1 %vm822_vm0, %v530_v14  ;;  %v620_v12 = vld [vmem:[%s9919_s0 + $0x3e0] sm:$0xff] }
 0x10c   : > { %1444 = vmatmul.mubr.f32.gmra.mxu0 %v514_v15  ;;  %4978 = vmatmul.mubr.msk.f32.gmra.mxu1 %vm822_vm0, %v537_v16  ;;  %v619_v16 = vld [vmem:[%s9919_s0 + $0x3d8] sm:$0xff] }
 0x10d   : > { %1448 = vmatprep.mubr.f32.mxu0 %v522_v17  ;;  %4980 = vmatprep.mubr.msk.f32.mxu1 %vm822_vm0, %v544_v18 }
 0x110   : > { %1449 = vmatmul.mubr.f32.gmra.mxu0 %v521_v19  ;;  %4981 = vmatmul.mubr.msk.f32.gmra.mxu1 %vm822_vm0, %v551_v20  ;;  %v627_v19 = vld [vmem:[%s9919_s0 + $0x418] sm:$0xff] }
 0x111   : > { %1453 = vmatprep.mubr.f32.mxu0 %v529_v21  ;;  %4983 = vmatprep.mubr.msk.f32.mxu1 %vm822_vm0, %v558_v22 }
 0x114   : > { %1454 = vmatmul.mubr.f32.gmra.mxu0 %v528_v23  ;;  %4984 = vmatmul.mubr.msk.f32.gmra.mxu1 %vm822_vm0, %v565_v24  ;;  %v626_v24 = vld [vmem:[%s9919_s0 + $0x410] sm:$0xff] }
 0x115   : > { %1458 = vmatprep.mubr.f32.mxu0 %v536_v25  ;;  %4986 = vmatprep.mubr.msk.f32.mxu1 %vm822_vm0, %v572_v26 }
 0x118   : > { %1459 = vmatmul.mubr.f32.gmra.mxu0 %v535_v27  ;;  %4987 = vmatmul.mubr.msk.f32.gmra.mxu1 %vm822_vm0, %v579_v28  ;;  %v634_v27 = vld [vmem:[%s9919_s0 + $0x450] sm:$0xff] }
 0x119   : > { %1463 = vmatprep.mubr.f32.mxu0 %v543_v29  ;;  %4989 = vmatprep.mubr.msk.f32.mxu1 %vm822_vm0, %v586_v30 }
 0x11c   : > { %1464 = vmatmul.mubr.f32.gmra.mxu0 %v542_v31  ;;  %4990 = vmatmul.mubr.msk.f32.gmra.mxu1 %vm822_vm0, %v593_v32  ;;  %v633_v32 = vld [vmem:[%s9919_s0 + $0x448] sm:$0xff] }
 0x11d   : > { %1468 = vmatprep.mubr.f32.mxu0 %v550_v33  ;;  %4992 = vmatprep.mubr.msk.f32.mxu1 %vm822_vm0, %v600_v35 }
 0x120   : > { %1469 = vmatmul.mubr.f32.gmra.mxu0 %v549_v36  ;;  %4993 = vmatmul.mubr.msk.f32.gmra.mxu1 %vm822_vm0, %v607_v37  ;;  %v641_v36 = vld [vmem:[%s9919_s0 + $0x488] sm:$0xff] }
 0x121   : > { %1473 = vmatprep.mubr.f32.mxu0 %v557_v38  ;;  %4995 = vmatprep.mubr.msk.f32.mxu1 %vm822_vm0, %v614_v39 }
 0x124   : > { %1474 = vmatmul.mubr.f32.gmra.mxu0 %v556_v40  ;;  %4996 = vmatmul.mubr.msk.f32.gmra.mxu1 %vm822_vm0, %v621_v41  ;;  %v640_v41 = vld [vmem:[%s9919_s0 + $0x480] sm:$0xff] }
 0x125   : > { %1478 = vmatprep.mubr.f32.mxu0 %v564_v42  ;;  %4998 = vmatprep.mubr.msk.f32.mxu1 %vm822_vm0, %v628_v43 }
 0x128   : > { %1479 = vmatmul.mubr.f32.gmra.mxu0 %v563_v44  ;;  %4999 = vmatmul.mubr.msk.f32.gmra.mxu1 %vm822_vm0, %v635_v45  ;;  %v648_v44 = vld [vmem:[%s9919_s0 + $0x4c0] sm:$0xff] }
 0x129   : > { %1483 = vmatprep.mubr.f32.mxu0 %v571_v46  ;;  %5001 = vmatprep.mubr.msk.f32.mxu1 %vm822_vm0, %v642_v47 }
 0x12c   : > { %1484 = vmatmul.mubr.f32.gmra.mxu0 %v570_v48  ;;  %5002 = vmatmul.mubr.msk.f32.gmra.mxu1 %vm822_vm0, %v649_v49  ;;  %v647_v49 = vld [vmem:[%s9919_s0 + $0x4b8] sm:$0xff] }
 0x12d   : > { %1488 = vmatprep.mubr.f32.mxu0 %v578_v50  ;;  %5004 = vmatprep.mubr.msk.f32.mxu1 %vm822_vm0, %v656_v51 }
 0x130   : > { %1489 = vmatmul.mubr.f32.gmra.mxu0 %v577_v52  ;;  %5005 = vmatmul.mubr.msk.f32.gmra.mxu1 %vm822_vm0, %v663_v53  ;;  %v655_v52 = vld [vmem:[%s9919_s0 + $0x4f8] sm:$0xff] }
 0x131   : > { %1493 = vmatprep.mubr.f32.mxu0 %v585_v54  ;;  %5007 = vmatprep.mubr.msk.f32.mxu1 %vm822_vm0, %v670_v55 }
 0x134   : > { %1494 = vmatmul.mubr.f32.gmra.mxu0 %v584_v56  ;;  %5008 = vmatmul.mubr.msk.f32.gmra.mxu1 %vm822_vm0, %v677_v57  ;;  %v654_v57 = vld [vmem:[%s9919_s0 + $0x4f0] sm:$0xff] }
 0x135   : > { %1498 = vmatprep.mubr.f32.mxu0 %v592_v58  ;;  %5010 = vmatprep.mubr.msk.f32.mxu1 %vm822_vm0, %v684_v59 }
 0x138   : > { %1499 = vmatmul.mubr.f32.gmra.mxu0 %v591_v60  ;;  %5011 = vmatmul.mubr.msk.f32.gmra.mxu1 %vm822_vm0, %v691_v62  ;;  %v662_v60 = vld [vmem:[%s9919_s0 + $0x530] sm:$0xff] }
 0x139   : > { %1503 = vmatprep.mubr.f32.mxu0 %v599_v63  ;;  %5013 = vmatprep.mubr.msk.f32.mxu1 %vm822_vm0, %v698_v0 }
 0x13c   : > { %1504 = vmatmul.mubr.f32.gmra.mxu0 %v598_v1  ;;  %5014 = vmatmul.mubr.msk.f32.gmra.mxu1 %vm822_vm0, %v705_v3  ;;  %v661_v1 = vld [vmem:[%s9919_s0 + $0x528] sm:$0xff] }
 0x13d   : > { %1508 = vmatprep.mubr.f32.mxu0 %v606_v4  ;;  %5016 = vmatprep.mubr.msk.f32.mxu1 %vm822_vm0, %v712_v5  ;;  %v669_v5 = vld [vmem:[%s9919_s0 + $0x568] sm:$0xff] }
 0x140   : > { %1509 = vmatmul.mubr.f32.gmra.mxu0 %v605_v6  ;;  %5017 = vmatmul.mubr.msk.f32.gmra.mxu1 %vm822_vm0, %v719_v8 }
 0x141   : > { %1513 = vmatprep.mubr.f32.mxu0 %v613_v34 }
 0x144   : > { %v985_v13 = vpop.f32.mrf.mxu0  ;;  %v1210_v14 = vpop.f32.mrf.mxu1  ;;  %1514 = vmatmul.mubr.f32.gmra.mxu0 %v612_v11  ;;  %v668_v11 = vld [vmem:[%s9919_s0 + $0x560] sm:$0xff] }
 0x145   : > { %v986_v15 = vadd.f32 %v985_v13, %v6554_v10  ;;  %1518 = vmatprep.mubr.f32.mxu0 %v620_v12 }
 0x146   : > { %v987_v17 = vpop.f32.mrf.mxu0  ;;  %v1212_v18 = vpop.f32.mrf.mxu1 }
 0x147   : > { %v6569_v20 = vadd.f32 %v1210_v14, %v986_v15  ;;  %v676_v14 = vld [vmem:[%s9919_s0 + $0x5a0] sm:$0xff] }
 0x148   : > { %v990_v21 = vpop.f32.mrf.mxu0  ;;  %v1215_v22 = vpop.f32.mrf.mxu1  ;;  %1519 = vmatmul.mubr.f32.gmra.mxu0 %v619_v16 }
 0x149   : > { %v991_v23 = vadd.f32 %v990_v21, %v6554_v10  ;;  %1523 = vmatprep.mubr.f32.mxu0 %v627_v19  ;;  %v675_v19 = vld [vmem:[%s9919_s0 + $0x598] sm:$0xff] }
 0x14a   : > { %v992_v25 = vpop.f32.mrf.mxu0  ;;  %v1217_v26 = vpop.f32.mrf.mxu1 }
 0x14b   : > { %v6578_v28 = vadd.f32 %v1215_v22, %v991_v23  ;;  %v683_v23 = vld [vmem:[%s9919_s0 + $0x5d8] sm:$0xff] }
 0x14c   : > { %v995_v29 = vpop.f32.mrf.mxu0  ;;  %v1220_v30 = vpop.f32.mrf.mxu1  ;;  %1524 = vmatmul.mubr.f32.gmra.mxu0 %v626_v24 }
 0x14d   : > { %v996_v31 = vadd.f32 %v995_v29, %v6554_v10  ;;  %1528 = vmatprep.mubr.f32.mxu0 %v634_v27  ;;  %v682_v29 = vld [vmem:[%s9919_s0 + $0x5d0] sm:$0xff] }
 0x14e   : > { %v997_v33 = vpop.f32.mrf.mxu0  ;;  %v1222_v35 = vpop.f32.mrf.mxu1 }
 0x14f   : > { %v6587_v37 = vadd.f32 %v1220_v30, %v996_v31 }
 0x150   : > { %v1000_v38 = vpop.f32.mrf.mxu0  ;;  %v1225_v39 = vpop.f32.mrf.mxu1  ;;  %1529 = vmatmul.mubr.f32.gmra.mxu0 %v633_v32  ;;  %v690_v32 = vld [vmem:[%s9919_s0 + $0x610] sm:$0xff] }
 0x151   : > { %v1001_v40 = vadd.f32 %v1000_v38, %v6554_v10  ;;  %1533 = vmatprep.mubr.f32.mxu0 %v641_v36 }
 0x152   : > { %v1002_v42 = vpop.f32.mrf.mxu0  ;;  %v1227_v43 = vpop.f32.mrf.mxu1 }
 0x153   : > { %v6596_v45 = vadd.f32 %v1225_v39, %v1001_v40  ;;  %v689_v39 = vld [vmem:[%s9919_s0 + $0x608] sm:$0xff] }
 0x154   : > { %v1005_v46 = vpop.f32.mrf.mxu0  ;;  %v1230_v47 = vpop.f32.mrf.mxu1  ;;  %1534 = vmatmul.mubr.f32.gmra.mxu0 %v640_v41  ;;  %v697_v42 = vld [vmem:[%s9919_s0 + $0x648] sm:$0xff] }
 0x155   : > { %v1006_v48 = vadd.f32 %v1005_v46, %v6554_v10  ;;  %1538 = vmatprep.mubr.f32.mxu0 %v648_v44 }
 0x156   : > { %v1007_v50 = vpop.f32.mrf.mxu0  ;;  %v1232_v51 = vpop.f32.mrf.mxu1 }
 0x157   : > { %v6605_v53 = vadd.f32 %v1230_v47, %v1006_v48  ;;  %v696_v48 = vld [vmem:[%s9919_s0 + $0x640] sm:$0xff] }
 0x158   : > { %v1010_v54 = vpop.f32.mrf.mxu0  ;;  %v1235_v55 = vpop.f32.mrf.mxu1  ;;  %1539 = vmatmul.mubr.f32.gmra.mxu0 %v647_v49  ;;  %v704_v51 = vld [vmem:[%s9919_s0 + $0x680] sm:$0xff] }
 0x159   : > { %v1011_v56 = vadd.f32 %v1010_v54, %v6554_v10  ;;  %1543 = vmatprep.mubr.f32.mxu0 %v655_v52 }
 0x15a   : > { %v1012_v58 = vpop.f32.mrf.mxu0  ;;  %v1237_v59 = vpop.f32.mrf.mxu1 }
 0x15b   : > { %v6614_v61 = vadd.f32 %v1235_v55, %v1011_v56 }
 0x15c   : > { %v1015_v62 = vpop.f32.mrf.mxu0  ;;  %v1240_v63 = vpop.f32.mrf.mxu1  ;;  %1544 = vmatmul.mubr.f32.gmra.mxu0 %v654_v57  ;;  %v703_v57 = vld [vmem:[%s9919_s0 + $0x678] sm:$0xff] }
 0x15d   : > { %v1016_v0 = vadd.f32 %v1015_v62, %v6554_v10  ;;  %1548 = vmatprep.mubr.f32.mxu0 %v662_v60  ;;  %v711_v60 = vld [vmem:[%s9919_s0 + $0x6b8] sm:$0xff] }
 0x15e   : > { %v1017_v3 = vpop.f32.mrf.mxu0  ;;  %v1242_v4 = vpop.f32.mrf.mxu1 }
 0x15f   : > { %v6623_v6 = vadd.f32 %v1240_v63, %v1016_v0  ;;  %v710_v3 = vld [vmem:[%s9919_s0 + $0x6b0] sm:$0xff] }
 0x160   : > { %v1020_v8 = vpop.f32.mrf.mxu0  ;;  %v1245_v34 = vpop.f32.mrf.mxu1  ;;  %1549 = vmatmul.mubr.f32.gmra.mxu0 %v661_v1 }
 0x161   : > { %v1021_v9 = vadd.f32 %v1020_v8, %v6554_v10  ;;  %1553 = vmatprep.mubr.f32.mxu0 %v669_v5  ;;  %v718_v8 = vld [vmem:[%s9919_s0 + $0x6f0] sm:$0xff] }
 0x162   : > { %v1022_v12 = vpop.f32.mrf.mxu0  ;;  %v1247_v13 = vpop.f32.mrf.mxu1 }
 0x163   : > { %v6632_v15 = vadd.f32 %v1245_v34, %v1021_v9  ;;  %v717_v13 = vld [vmem:[%s9919_s0 + $0x6e8] sm:$0xff] }
 0x164   : > { %v1025_v16 = vpop.f32.mrf.mxu0  ;;  %v1250_v17 = vpop.f32.mrf.mxu1  ;;  %1554 = vmatmul.mubr.f32.gmra.mxu0 %v668_v11 }
 0x165   : > { %v1026_v18 = vadd.f32 %v1025_v16, %v6554_v10  ;;  %1558 = vmatprep.mubr.f32.mxu0 %v676_v14 }
 0x166   : > { %v1027_v21 = vpop.f32.mrf.mxu0  ;;  %v1252_v22 = vpop.f32.mrf.mxu1 }
 0x167   : > { %v6641_v24 = vadd.f32 %v1250_v17, %v1026_v18 }
 0x168   : > { %v1030_v25 = vpop.f32.mrf.mxu0  ;;  %v1255_v26 = vpop.f32.mrf.mxu1  ;;  %1559 = vmatmul.mubr.f32.gmra.mxu0 %v675_v19 }
 0x169   : > { %v1031_v27 = vadd.f32 %v1030_v25, %v6554_v10  ;;  %1563 = vmatprep.mubr.f32.mxu0 %v683_v23 }
 0x16a   : > { %v1032_v30 = vpop.f32.mrf.mxu0  ;;  %v1257_v31 = vpop.f32.mrf.mxu1 }
 0x16b   : > { %v6650_v33 = vadd.f32 %v1255_v26, %v1031_v27 }
 0x16c   : > { %v1035_v35 = vpop.f32.mrf.mxu0  ;;  %v1260_v36 = vpop.f32.mrf.mxu1  ;;  %1564 = vmatmul.mubr.f32.gmra.mxu0 %v682_v29 }
 0x16d   : > { %v1036_v38 = vadd.f32 %v1035_v35, %v6554_v10  ;;  %1568 = vmatprep.mubr.f32.mxu0 %v690_v32 }
 0x16e   : > { %v1037_v40 = vpop.f32.mrf.mxu0  ;;  %v1262_v41 = vpop.f32.mrf.mxu1 }
 0x16f   : > { %v6659_v43 = vadd.f32 %v1260_v36, %v1036_v38 }
 0x170   : > { %v1040_v44 = vpop.f32.mrf.mxu0  ;;  %v1265_v46 = vpop.f32.mrf.mxu1  ;;  %1569 = vmatmul.mubr.f32.gmra.mxu0 %v689_v39 }
 0x171   : > { %v1041_v47 = vadd.f32 %v1040_v44, %v6554_v10  ;;  %1573 = vmatprep.mubr.f32.mxu0 %v697_v42 }
 0x172   : > { %v1042_v49 = vpop.f32.mrf.mxu0  ;;  %v1267_v50 = vpop.f32.mrf.mxu1 }
 0x173   : > { %v6668_v52 = vadd.f32 %v1265_v46, %v1041_v47 }
 0x174   : > { %v1045_v54 = vpop.f32.mrf.mxu0  ;;  %v1270_v55 = vpop.f32.mrf.mxu1  ;;  %1574 = vmatmul.mubr.f32.gmra.mxu0 %v696_v48 }
 0x175   : > { %v1046_v56 = vadd.f32 %v1045_v54, %v6554_v10  ;;  %1578 = vmatprep.mubr.f32.mxu0 %v704_v51 }
 0x176   : > { %v1047_v58 = vpop.f32.mrf.mxu0  ;;  %v1272_v59 = vpop.f32.mrf.mxu1 }
 0x177   : > { %v6677_v62 = vadd.f32 %v1270_v55, %v1046_v56 }
 0x178   : > { %v1050_v63 = vpop.f32.mrf.mxu0  ;;  %v1275_v0 = vpop.f32.mrf.mxu1  ;;  %1579 = vmatmul.mubr.f32.gmra.mxu0 %v703_v57 }
 0x179   : > { %v1051_v1 = vadd.f32 %v1050_v63, %v6554_v10  ;;  %1583 = vmatprep.mubr.f32.mxu0 %v711_v60 }
 0x17a   : > { %v1052_v4 = vpop.f32.mrf.mxu0  ;;  %v1277_v5 = vpop.f32.mrf.mxu1 }
 0x17b   : > { %v6686_v34 = vadd.f32 %v1275_v0, %v1051_v1 }
 0x17c   : > { %v1055_v9 = vpop.f32.mrf.mxu0  ;;  %v1280_v11 = vpop.f32.mrf.mxu1  ;;  %1584 = vmatmul.mubr.f32.gmra.mxu0 %v710_v3 }
 0x17d   : > { %v1056_v12 = vadd.f32 %v1055_v9, %v6554_v10  ;;  %1588 = vmatprep.mubr.f32.mxu0 %v718_v8 }
 0x17e   : > { %v1057_v14 = vpop.f32.mrf.mxu0  ;;  %v1282_v16 = vpop.f32.mrf.mxu1 }
 0x17f   : > { %v6692_v17 = vadd.f32 %v1280_v11, %v1056_v12 }
 0x180   : > { %v1060_v18 = vpop.f32.mrf.mxu0  ;;  %v1285_v19 = vpop.f32.mrf.mxu1  ;;  %1589 = vmatmul.mubr.f32.gmra.mxu0 %v717_v13 }
 0x181   : > { %v1061_v21 = vadd.f32 %v1060_v18, %v6554_v10 }
 0x182   : > { %v1062_v22 = vpop.f32.mrf.mxu0  ;;  %v1287_v23 = vpop.f32.mrf.mxu1 }
 0x183   : > { %v6695_v25 = vadd.f32 %v1285_v19, %v1061_v21 }
 0x184   : > { %v1065_v26 = vpop.f32.mrf.mxu0  ;;  %v1290_v27 = vpop.f32.mrf.mxu1 }
 0x185   : > { %v1066_v29 = vadd.f32 %v1065_v26, %v6554_v10 }
 0x186   : > { %v1067_v30 = vpop.f32.mrf.mxu0  ;;  %v1292_v31 = vpop.f32.mrf.mxu1 }
 0x187   : > { %v6698_v32 = vadd.f32 %v1290_v27, %v1066_v29 }
 0x188   : > { %v1070_v35 = vpop.f32.mrf.mxu0  ;;  %v1295_v36 = vpop.f32.mrf.mxu1 }
 0x189   : > { %v1071_v38 = vadd.f32 %v1070_v35, %v6554_v10 }
 0x18a   : > { %v1072_v39 = vpop.f32.mrf.mxu0  ;;  %v1297_v40 = vpop.f32.mrf.mxu1 }
 0x18b   : > { %v6701_v41 = vadd.f32 %v1295_v36, %v1071_v38 }
 0x18c   : > { %v1075_v42 = vpop.f32.mrf.mxu0  ;;  %v1300_v44 = vpop.f32.mrf.mxu1 }
 0x18d   : > { %v1076_v46 = vadd.f32 %v1075_v42, %v6554_v10 }
 0x18e   : > { %v1077_v47 = vpop.f32.mrf.mxu0  ;;  %v1302_v48 = vpop.f32.mrf.mxu1 }
 0x18f   : > { %v6704_v49 = vadd.f32 %v1300_v44, %v1076_v46 }
 0x190   : > { %v1080_v50 = vpop.f32.mrf.mxu0  ;;  %v1305_v51 = vpop.f32.mrf.mxu1 }
 0x191   : > { %v1081_v54 = vadd.f32 %v1080_v50, %v6554_v10 }
 0x192   : > { %v1082_v55 = vpop.f32.mrf.mxu0  ;;  %v1307_v56 = vpop.f32.mrf.mxu1 }
 0x193   : > { %v6707_v57 = vadd.f32 %v1305_v51, %v1081_v54 }
 0x194   : > { %v1085_v58 = vpop.f32.mrf.mxu0  ;;  %v1310_v59 = vpop.f32.mrf.mxu1 }
 0x195   : > { %v1086_v60 = vadd.f32 %v1085_v58, %v6554_v10 }
 0x196   : > { %v1087_v63 = vpop.f32.mrf.mxu0  ;;  %v1312_v0 = vpop.f32.mrf.mxu1 }
 0x197   : > { %v6710_v1 = vadd.f32 %v1310_v59, %v1086_v60 }
 0x198   : > { %v1090_v3 = vpop.f32.mrf.mxu0  ;;  %v1315_v4 = vpop.f32.mrf.mxu1 }
 0x199   : > { %v1091_v5 = vadd.f32 %v1090_v3, %v6554_v10 }
 0x19a   : > { %v1092_v8 = vpop.f32.mrf.mxu0  ;;  %v1317_v9 = vpop.f32.mrf.mxu1 }
 0x19b   : > { %v6713_v11 = vadd.f32 %v1315_v4, %v1091_v5 }
 0x19c   : > { %v1095_v12 = vpop.f32.mrf.mxu0  ;;  %v1320_v13 = vpop.f32.mrf.mxu1 }
 0x19d   : > { %v1096_v14 = vadd.f32 %v1095_v12, %v6554_v10  ;;  %v2114_v12 = vld [vmem:[%s9922_s3 + $0x78] sm:$0xff] }
 0x19e   : > { %v1097_v16 = vpop.f32.mrf.mxu0  ;;  %v1322_v18 = vpop.f32.mrf.mxu1  ;;  %5019 = vmatprep.subr.mxu1 %v2114_v12 }
 0x19f   : > { %v6716_v19 = vadd.f32 %v1320_v13, %v1096_v14  ;;  %5020 = vmatpush3.msra.mxu1 %v2114_v12 }
 0x1a0   : > { %v1100_v21 = vpop.f32.mrf.mxu0  ;;  %v1325_v22 = vpop.f32.mrf.mxu1 }
 0x1a1   : > { %v1101_v23 = vadd.f32 %v1100_v21, %v6554_v10 }
 0x1a2   : > { %v1102_v26 = vpop.f32.mrf.mxu0  ;;  %v1327_v27 = vpop.f32.mrf.mxu1 }
 0x1a3   : > { %v6719_v29 = vadd.f32 %v1325_v22, %v1101_v23 }
 0x1a4   : > { %v1105_v30 = vpop.f32.mrf.mxu0  ;;  %v1330_v31 = vpop.f32.mrf.mxu1 }
 0x1a5   : > { %v1106_v35 = vadd.f32 %v1105_v30, %v6554_v10  ;;  %v2113_v30 = vld [vmem:[%s9922_s3 + $0x70] sm:$0xff] }
 0x1a6   : > { %v1107_v36 = vpop.f32.mrf.mxu0  ;;  %v1332_v38 = vpop.f32.mrf.mxu1  ;;  %5021 = vmatprep.subr.mxu1 %v2113_v30 }
 0x1a7   : > { %v6722_v39 = vadd.f32 %v1330_v31, %v1106_v35  ;;  %5022 = vmatpush3.msra.mxu1 %v2113_v30  ;;  %v2112_v38 = vld [vmem:[%s9922_s3 + $0x68] sm:$0xff] }
 0x1a8   : > { %v1110_v40 = vpop.f32.mrf.mxu0  ;;  %v1335_v42 = vpop.f32.mrf.mxu1  ;;  %5023 = vmatprep.subr.mxu1 %v2112_v38 }
 0x1a9   : > { %v1111_v44 = vadd.f32 %v1110_v40, %v6554_v10  ;;  %5024 = vmatpush3.msra.mxu1 %v2112_v38  ;;  %v2110_v38 = vld [vmem:[%s9922_s3 + $0x58] sm:$0xff] }
 0x1aa   : > { %v1112_v46 = vpop.f32.mrf.mxu0  ;;  %v1337_v47 = vpop.f32.mrf.mxu1 }
 0x1ab   : > { %v6725_v48 = vadd.f32 %v1335_v42, %v1111_v44 }
 0x1ac   : > { %v1115_v50 = vpop.f32.mrf.mxu0  ;;  %v1340_v51 = vpop.f32.mrf.mxu1 }
 0x1ad   : > { %v1116_v54 = vadd.f32 %v1115_v50, %v6554_v10 }
 0x1ae   : > { %v1117_v55 = vpop.f32.mrf.mxu0  ;;  %v1342_v56 = vpop.f32.mrf.mxu1 }
 0x1af   : > { %v6728_v58 = vadd.f32 %v1340_v51, %v1116_v54  ;;  %v2111_v56 = vld [vmem:[%s9922_s3 + $0x60] sm:$0xff] }
 0x1b0   : > { %v1120_v59 = vpop.f32.mrf.mxu0  ;;  %v1345_v60 = vpop.f32.mrf.mxu1  ;;  %5025 = vmatprep.subr.mxu1 %v2111_v56 }
 0x1b1   : > { %v1121_v63 = vadd.f32 %v1120_v59, %v6554_v10  ;;  %5026 = vmatpush3.msra.mxu1 %v2111_v56  ;;  %v2107_v56 = vld [vmem:[%s9922_s3 + $0x40] sm:$0xff] }
 0x1b2   : > { %v1122_v0 = vpop.f32.mrf.mxu0  ;;  %v1347_v3 = vpop.f32.mrf.mxu1  ;;  %5027 = vmatprep.subr.mxu1 %v2110_v38 }
 0x1b3   : > { %v6731_v4 = vadd.f32 %v1345_v60, %v1121_v63  ;;  %5028 = vmatpush3.msra.mxu1 %v2110_v38 }
 0x1b4   : > { %v1125_v5 = vpop.f32.mrf.mxu0  ;;  %v1350_v8 = vpop.f32.mrf.mxu1 }
 0x1b5   : > { %v1126_v9 = vadd.f32 %v1125_v5, %v6554_v10 }
 0x1b6   : > { %v1127_v13 = vpop.f32.mrf.mxu0  ;;  %v1352_v14 = vpop.f32.mrf.mxu1 }
 0x1b7   : > { %v6737_v16 = vadd.f32 %v1350_v8, %v1126_v9 }
 0x1b8   : > { %v1130_v18 = vpop.f32.mrf.mxu0  ;;  %v1355_v21 = vpop.f32.mrf.mxu1 }
 0x1b9   : > { %v1131_v22 = vadd.f32 %v1130_v18, %v6554_v10 }
 0x1ba   : > { %v1132_v23 = vpop.f32.mrf.mxu0  ;;  %v1357_v26 = vpop.f32.mrf.mxu1 }
 0x1bb   : > { %v6740_v27 = vadd.f32 %v1355_v21, %v1131_v22 }
 0x1bc   : > { %v1135_v31 = vpop.f32.mrf.mxu0  ;;  %v1360_v35 = vpop.f32.mrf.mxu1 }
 0x1bd   : > { %v1136_v36 = vadd.f32 %v1135_v31, %v6554_v10 }
 0x1be   : > { %v1137_v40 = vpop.f32.mrf.mxu0  ;;  %v1362_v42 = vpop.f32.mrf.mxu1 }
 0x1bf   : > { %v6749_v44 = vadd.f32 %v1360_v35, %v1136_v36 }
 0x1c0   : > { %v1140_v46 = vpop.f32.mrf.mxu0  ;;  %v1365_v47 = vpop.f32.mrf.mxu1 }
 0x1c1   : > { %v1141_v50 = vadd.f32 %v1140_v46, %v6554_v10  ;;  %v2109_v46 = vld [vmem:[%s9922_s3 + $0x50] sm:$0xff] }
 0x1c2   : > { %v1142_v51 = vpop.f32.mrf.mxu0  ;;  %v1367_v54 = vpop.f32.mrf.mxu1  ;;  %5029 = vmatprep.subr.mxu1 %v2109_v46 }
 0x1c3   : > { %v6752_v55 = vadd.f32 %v1365_v47, %v1141_v50  ;;  %5030 = vmatpush3.msra.mxu1 %v2109_v46  ;;  %v2108_v51 = vld [vmem:[%s9922_s3 + $0x48] sm:$0xff] }
 0x1c4   : > { %v1435_v59 = vpop.f32.mrf.mxu0  ;;  %v4973_v13 = vpop.f32.mrf.mxu1  ;;  %5031 = vmatprep.subr.mxu1 %v2108_v51 }
 0x1c5   : > { %v1436_v60 = vadd.f32 %v1435_v59, %v6569_v20  ;;  %5032 = vmatpush3.msra.mxu1 %v2108_v51 }
 0x1c6   : > { %v1437_v63 = vpop.f32.mrf.mxu0  ;;  %v1660_v21 = vpop.f32.mrf.mxu1  ;;  %5033 = vmatprep.subr.mxu1 %v2107_v56 }
 0x1c7   : > { %5034 = vmatpush3.msra.mxu1 %v2107_v56 }
 0x1c8   : > { %v1440_v0 = vpop.f32.mrf.mxu0  ;;  %v4976_v23 = vpop.f32.mrf.mxu1 }
 0x1c9   : > { %v1441_v3 = vadd.f32 %v1440_v0, %v6578_v28  ;;  %v2106_v0 = vld [vmem:[%s9922_s3 + $0x38] sm:$0xff] }
 0x1ca   : > { %v1442_v5 = vpop.f32.mrf.mxu0  ;;  %v1670_v20 = vpop.f32.mrf.mxu1  ;;  %5035 = vmatprep.subr.mxu1 %v2106_v0 }
 0x1cb   : > { %5036 = vmatpush3.msra.mxu1 %v2106_v0  ;;  %v6800_v38 = vadd.f32 %v4973_v13, %v1441_v3 }
 0x1cc   : > { %v1445_v8 = vpop.f32.mrf.mxu0  ;;  %v6761_v35 = vpop.f32.mrf.mxu1 }
 0x1ce   : > { %v1447_v10 = vpop.f32.mrf.mxu0  ;;  %v1680_v40 = vpop.f32.mrf.mxu1 }
 0x1d0   : > { %v1450_v9 = vpop.f32.mrf.mxu0  ;;  %v6773_v47 = vpop.f32.mrf.mxu1 }
 0x1d1   : > { %v1451_v46 = vadd.f32 %v1450_v9, %v6596_v45  ;;  %v2101_v45 = vld [vmem:[%s9922_s3 + $0x10] sm:$0xff]  ;;  %v1858_v9 = vmul.f32 %v6800_v38, %v6800_v38 }
 0x1d2   : > { %v1452_v12 = vpop.f32.mrf.mxu0  ;;  %v1690_v59 = vpop.f32.mrf.mxu1 }
 0x1d3   : > { %v2105_v12 = vld [vmem:[%s9922_s3 + $0x30] sm:$0xff]  ;;  %v6818_v13 = vadd.f32 %v4976_v23, %v1451_v46 }
 0x1d4   : > { %v1455_v14 = vpop.f32.mrf.mxu0  ;;  %v6786_v5 = vpop.f32.mrf.mxu1  ;;  %5037 = vmatprep.subr.mxu1 %v2105_v12 }
 0x1d5   : > { %5038 = vmatpush3.msra.mxu1 %v2105_v12 }
 0x1d6   : > { %v1457_v18 = vpop.f32.mrf.mxu0 }
 0x1d7   : > { %v1446_v18 = vadd.f32 %v1445_v8, %v6587_v37  ;;  %v2102_v37 = vld [vmem:[%s9922_s3 + $0x18] sm:$0xff]  ;;  %v6806_v8 = vadd.f32 %v1660_v21, %v1436_v60 }
 0x1d8   : > { %v1460_v22 = vpop.f32.mrf.mxu0 }
 0x1d9   : > { %v6808_v56 = vadd.f32 %v1670_v20, %v1446_v18  ;;  %v1461_v60 = vadd.f32 %v1460_v22, %v6614_v61  ;;  %v2099_v22 = vld [vmem:[%s9922_s3] sm:$0xff] }
 0x1da   : > { %v1462_v26 = vpop.f32.mrf.mxu0 }
 0x1db   : > { %v1859_v20 = vmul.f32 %v6808_v56, %v6808_v56 }
 0x1dc   : > { %v6759_v30 = vpop.f32.mrf.mxu0 }
 0x1dd   : > { %v1466_v23 = vadd.f32 %v6759_v30, %v6623_v6 }
 0x1de   : > { %v1467_v31 = vpop.f32.mrf.mxu0 }
 0x1df   : > { %v2104_v31 = vld [vmem:[%s9922_s3 + $0x28] sm:$0xff] }
 0x1e0   : > { %v6763_v36 = vpop.f32.mrf.mxu0  ;;  %5039 = vmatprep.subr.mxu1 %v2104_v31 }
 0x1e1   : > { %5040 = vmatpush3.msra.mxu1 %v2104_v31  ;;  %v1471_v6 = vadd.f32 %v6763_v36, %v6632_v15 }
 0x1e2   : > { %v1472_v28 = vpop.f32.mrf.mxu0 }
 0x1e3   : > { %v2103_v28 = vld [vmem:[%s9922_s3 + $0x20] sm:$0xff] }
 0x1e4   : > { %v6768_v42 = vpop.f32.mrf.mxu0  ;;  %5041 = vmatprep.subr.mxu1 %v2103_v28 }
 0x1e5   : > { %5042 = vmatpush3.msra.mxu1 %v2103_v28  ;;  %v1860_v28 = vmul.f32 %v6818_v13, %v6818_v13 }
 0x1e6   : > { %v1477_v50 = vpop.f32.mrf.mxu0  ;;  %5043 = vmatprep.subr.mxu1 %v2102_v37 }
 0x1e7   : > { %v1700_v50 = vpop.f32.mrf.mxu1  ;;  %5044 = vmatpush3.msra.mxu1 %v2102_v37 }
 0x1e8   : > { %v6778_v54 = vpop.f32.mrf.mxu0  ;;  %5045 = vmatprep.subr.mxu1 %v2101_v45 }
 0x1e9   : > { %v6811_v0 = vpop.f32.mrf.mxu1  ;;  %5046 = vmatpush3.msra.mxu1 %v2101_v45  ;;  %v6847_v45 = vadd.f32 %v1690_v59, %v1466_v23 }
 0x1ea   : > { %v1482_v63 = vpop.f32.mrf.mxu0 }
 0x1eb   : > { %v1456_v63 = vadd.f32 %v1455_v14, %v6605_v53  ;;  %v2100_v53 = vld [vmem:[%s9922_s3 + $0x8] sm:$0xff]  ;;  %v1857_v14 = vmul.f32 %v6806_v8, %v6806_v8  ;;  %v1710_v18 = vpop.f32.mrf.mxu1 }
 0x1ec   : > { %v6788_v10 = vpop.f32.mrf.mxu0  ;;  %5047 = vmatprep.subr.mxu1 %v2100_v53 }
 0x1ed   : > { %v6828_v12 = vadd.f32 %v1680_v40, %v1456_v63  ;;  %v1889_v31 = vadd.f32 %v1858_v9, %v1857_v14  ;;  %v6840_v40 = vadd.f32 %v6761_v35, %v1461_v60  ;;  %v4991_v30 = vpop.f32.mrf.mxu1  ;;  %5048 = vmatpush3.msra.mxu1 %v2100_v53  ;;  %v1476_v9 = vadd.f32 %v6768_v42, %v6641_v24 }
 0x1ee   : > { %v1487_v26 = vpop.f32.mrf.mxu0  ;;  %5049 = vmatprep.subr.mxu1 %v2099_v22  ;;  %v6855_v53 = vadd.f32 %v6773_v47, %v1471_v6  ;;  %v1481_v14 = vadd.f32 %v6778_v54, %v6650_v33  ;;  %v1863_v24 = vmul.f32 %v6847_v45, %v6847_v45 }
 0x1ef   : > { %v1819_v26 = vadd.f32 %v6800_v38, %v6806_v8  ;;  %v1890_v63 = vadd.f32 %v1889_v31, %v1859_v20  ;;  %5050 = vmatpush3.msra.mxu1 %v2099_v22  ;;  %v1862_v36 = vmul.f32 %v6840_v40, %v6840_v40  ;;  %v1720_v20 = vpop.f32.mrf.mxu1  ;;  %v6862_v42 = vadd.f32 %v1700_v50, %v1476_v9 }
 0x1f0   : > { %v1490_v51 = vpop.f32.mrf.mxu0  ;;  %v1486_v22 = vadd.f32 %v6788_v10, %v6659_v43  ;;  %v1864_v33 = vmul.f32 %v6855_v53, %v6855_v53  ;;  %v6870_v54 = vadd.f32 %v6786_v5, %v1481_v14 }
 0x1f1   : > { %v1820_v37 = vadd.f32 %v1819_v26, %v6808_v56  ;;  %v1891_v15 = vadd.f32 %v1890_v63, %v1860_v28  ;;  %v4994_v26 = vpop.f32.mrf.mxu1  ;;  %v1491_v6 = vadd.f32 %v1490_v51, %v6668_v52  ;;  %v1865_v43 = vmul.f32 %v6862_v42, %v6862_v42 }
 0x1f2   : > { %v1492_v3 = vpop.f32.mrf.mxu0  ;;  %v6876_v10 = vadd.f32 %v1710_v18, %v1486_v22  ;;  %v1866_v5 = vmul.f32 %v6870_v54, %v6870_v54 }
 0x1f3   : > { %v1861_v3 = vmul.f32 %v6828_v12, %v6828_v12  ;;  %v1821_v60 = vadd.f32 %v1820_v37, %v6818_v13  ;;  %v1730_v9 = vpop.f32.mrf.mxu1  ;;  %v6883_v52 = vadd.f32 %v6811_v0, %v1491_v6 }
 0x1f4   : > { %v1495_v21 = vpop.f32.mrf.mxu0 }
 0x1f5   : > { %v1822_v23 = vadd.f32 %v1821_v60, %v6828_v12  ;;  %v4997_v14 = vpop.f32.mrf.mxu1  ;;  %v1868_v0 = vmul.f32 %v6883_v52, %v6883_v52 }
 0x1f6   : > { %v1497_v61 = vpop.f32.mrf.mxu0 }
 0x1f7   : > { %v1892_v61 = vadd.f32 %v1891_v15, %v1861_v3  ;;  %v1823_v47 = vadd.f32 %v1822_v23, %v6840_v40  ;;  %v1496_v3 = vadd.f32 %v1495_v21, %v6677_v62  ;;  %v1867_v62 = vmul.f32 %v6876_v10, %v6876_v10 }
 0x1f8   : > { %v1500_v46 = vpop.f32.mrf.mxu0 }
 0x1f9   : > { %v1893_v28 = vadd.f32 %v1892_v61, %v1862_v36  ;;  %v1824_v50 = vadd.f32 %v1823_v47, %v6847_v45  ;;  %v1501_v51 = vadd.f32 %v1500_v46, %v6686_v34  ;;  %v6889_v21 = vadd.f32 %v1720_v20, %v1496_v3  ;;  %v1740_v47 = vpop.f32.mrf.mxu1 }
 0x1fa   : > { %v1502_v35 = vpop.f32.mrf.mxu0 }
 0x1fb   : > { %v1894_v63 = vadd.f32 %v1893_v28, %v1863_v24  ;;  %v1825_v60 = vadd.f32 %v1824_v50, %v6855_v53  ;;  %v6895_v34 = vadd.f32 %v4991_v30, %v1501_v51  ;;  %v1869_v20 = vmul.f32 %v6889_v21, %v6889_v21  ;;  %v5000_v50 = vpop.f32.mrf.mxu1 }
 0x1fc   : > { %v1505_v59 = vpop.f32.mrf.mxu0 }
 0x1fd   : > { %v1895_v15 = vadd.f32 %v1894_v63, %v1864_v33  ;;  %v1826_v18 = vadd.f32 %v1825_v60, %v6862_v42  ;;  %v1506_v61 = vadd.f32 %v1505_v59, %v6692_v17  ;;  %v1750_v51 = vpop.f32.mrf.mxu1 }
 0x1fe   : > { %v1507_v31 = vpop.f32.mrf.mxu0 }
 0x1ff   : > { %v1896_v23 = vadd.f32 %v1895_v15, %v1865_v43  ;;  %v1827_v22 = vadd.f32 %v1826_v18, %v6870_v54  ;;  %v6901_v17 = vadd.f32 %v1730_v9, %v1506_v61  ;;  %v5003_v61 = vpop.f32.mrf.mxu1 }
 0x200   : > { %v1510_v37 = vpop.f32.mrf.mxu0 }
 0x201   : > { %v1897_v31 = vadd.f32 %v1896_v23, %v1866_v5  ;;  %v1511_v46 = vadd.f32 %v1510_v37, %v6695_v25  ;;  %v1828_v33 = vadd.f32 %v1827_v22, %v6876_v10  ;;  %v1870_v25 = vmul.f32 %v6895_v34, %v6895_v34 }
 0x202   : > { %v1512_v35 = vpop.f32.mrf.mxu0  ;;  %v1871_v9 = vmul.f32 %v6901_v17, %v6901_v17 }
 0x203   : > { %v1898_v6 = vadd.f32 %v1897_v31, %v1867_v62  ;;  %v1829_v63 = vadd.f32 %v1828_v33, %v6883_v52  ;;  %v6907_v37 = vadd.f32 %v4994_v26, %v1511_v46 }
 0x204   : > { %v1515_v36 = vpop.f32.mrf.mxu0 }
 0x205   : > { %v1516_v43 = vadd.f32 %v1515_v36, %v6698_v32  ;;  %v1899_v30 = vadd.f32 %v1898_v6, %v1868_v0  ;;  %v1830_v35 = vadd.f32 %v1829_v63, %v6889_v21  ;;  %v1872_v26 = vmul.f32 %v6907_v37, %v6907_v37  ;;  %v1760_v6 = vpop.f32.mrf.mxu1 }
 0x206   : > { %v1517_v24 = vpop.f32.mrf.mxu0 }
 0x207   : > { %v1900_v15 = vadd.f32 %v1899_v30, %v1869_v20  ;;  %v1831_v18 = vadd.f32 %v1830_v35, %v6895_v34  ;;  %v6914_v32 = vadd.f32 %v1740_v47, %v1516_v43 }
 0x208   : > { %v1520_v28 = vpop.f32.mrf.mxu0 }
 0x209   : > { %v1521_v60 = vadd.f32 %v1520_v28, %v6701_v41  ;;  %v1901_v23 = vadd.f32 %v1900_v15, %v1870_v25  ;;  %v1832_v41 = vadd.f32 %v1831_v18, %v6901_v17  ;;  %v1873_v47 = vmul.f32 %v6914_v32, %v6914_v32 }
 0x20a   : > { %v1522_v59 = vpop.f32.mrf.mxu0 }
 0x20b   : > { %v6920_v24 = vadd.f32 %v4997_v14, %v1521_v60  ;;  %v1902_v31 = vadd.f32 %v1901_v23, %v1871_v9  ;;  %v1833_v46 = vadd.f32 %v1832_v41, %v6907_v37  ;;  %v5006_v60 = vpop.f32.mrf.mxu1 }
 0x20c   : > { %v1525_v3 = vpop.f32.mrf.mxu0 }
 0x20d   : > { %v1526_v36 = vadd.f32 %v1525_v3, %v6704_v49  ;;  %v1903_v28 = vadd.f32 %v1902_v31, %v1872_v26  ;;  %v1834_v20 = vadd.f32 %v1833_v46, %v6914_v32  ;;  %v1874_v14 = vmul.f32 %v6920_v24, %v6920_v24 }
 0x20e   : > { %v1527_v5 = vpop.f32.mrf.mxu0 }
 0x20f   : > { %v6926_v49 = vadd.f32 %v1750_v51, %v1526_v36  ;;  %v1904_v43 = vadd.f32 %v1903_v28, %v1873_v47  ;;  %v1835_v30 = vadd.f32 %v1834_v20, %v6920_v24 }
 0x210   : > { %v1530_v62 = vpop.f32.mrf.mxu0 }
 0x211   : > { %v1531_v22 = vadd.f32 %v1530_v62, %v6707_v57  ;;  %v1875_v25 = vmul.f32 %v6926_v49, %v6926_v49  ;;  %v1836_v15 = vadd.f32 %v1835_v30, %v6926_v49  ;;  %v1905_v9 = vadd.f32 %v1904_v43, %v1874_v14  ;;  %v1770_v62 = vpop.f32.mrf.mxu1 }
 0x212   : > { %v1532_v0 = vpop.f32.mrf.mxu0 }
 0x213   : > { %v6931_v59 = vadd.f32 %v5000_v50, %v1531_v22  ;;  %v1906_v51 = vadd.f32 %v1905_v9, %v1875_v25 }
 0x214   : > { %v1535_v33 = vpop.f32.mrf.mxu0 }
 0x215   : > { %v1536_v57 = vadd.f32 %v1535_v33, %v6710_v1  ;;  %v1876_v50 = vmul.f32 %v6931_v59, %v6931_v59  ;;  %v1837_v18 = vadd.f32 %v1836_v15, %v6931_v59 }
 0x216   : > { %v1537_v63 = vpop.f32.mrf.mxu0 }
 0x217   : > { %v6937_v3 = vadd.f32 %v1760_v6, %v1536_v57  ;;  %v1907_v22 = vadd.f32 %v1906_v51, %v1876_v50  ;;  %v5009_v6 = vpop.f32.mrf.mxu1 }
 0x218   : > { %v1540_v35 = vpop.f32.mrf.mxu0 }
 0x219   : > { %v1541_v5 = vadd.f32 %v1540_v35, %v6713_v11  ;;  %v1877_v36 = vmul.f32 %v6937_v3, %v6937_v3  ;;  %v1838_v41 = vadd.f32 %v1837_v18, %v6937_v3  ;;  %v1780_v25 = vpop.f32.mrf.mxu1 }
 0x21a   : > { %v1542_v1 = vpop.f32.mrf.mxu0 }
 0x21b   : > { %v6946_v23 = vadd.f32 %v5003_v61, %v1541_v5  ;;  %v1908_v46 = vadd.f32 %v1907_v22, %v1877_v36  ;;  %v5012_v18 = vpop.f32.mrf.mxu1 }
 0x21c   : > { %v1545_v26 = vpop.f32.mrf.mxu0 }
 0x21d   : > { %v1878_v31 = vmul.f32 %v6946_v23, %v6946_v23  ;;  %v1546_v0 = vadd.f32 %v1545_v26, %v6716_v19  ;;  %v1839_v28 = vadd.f32 %v1838_v41, %v6946_v23  ;;  %v1790_v22 = vpop.f32.mrf.mxu1 }
 0x21e   : > { %v1547_v11 = vpop.f32.mrf.mxu0 }
 0x21f   : > { %v6952_v47 = vadd.f32 %v1770_v62, %v1546_v0  ;;  %v1909_v14 = vadd.f32 %v1908_v46, %v1878_v31 }
 0x220   : > { %v1550_v33 = vpop.f32.mrf.mxu0 }
 0x221   : > { %v1840_v61 = vadd.f32 %v1839_v28, %v6952_v47  ;;  %v1879_v20 = vmul.f32 %v6952_v47, %v6952_v47  ;;  %v1551_v57 = vadd.f32 %v1550_v33, %v6719_v29 }
 0x222   : > { %v1552_v63 = vpop.f32.mrf.mxu0 }
 0x223   : > { %v1910_v43 = vadd.f32 %v1909_v14, %v1879_v20  ;;  %v6959_v30 = vadd.f32 %v5006_v60, %v1551_v57  ;;  %v5015_v20 = vpop.f32.mrf.mxu1  ;;  %v2720_v63 = vld [vmem:[%s9920_s1] sm:$0xff] }
 0x224   : > { %v1555_v19 = vpop.f32.mrf.mxu0  ;;  %2784 = vrot.lane.b32.xlu0 %v2720_v63, %s5336_s12 }
 0x225   : > { %v1880_v35 = vmul.f32 %v6959_v30, %v6959_v30  ;;  %v1556_v15 = vadd.f32 %v1555_v19, %v6722_v39  ;;  %v1841_v9 = vadd.f32 %v1840_v61, %v6959_v30 }
 0x226   : > { %v1557_v50 = vpop.f32.mrf.mxu0 }
 0x227   : > { %v6965_v5 = vadd.f32 %v1780_v25, %v1556_v15  ;;  %v1911_v1 = vadd.f32 %v1910_v43, %v1880_v35  ;;  %v1800_v35 = vpop.f32.mrf.mxu1  ;;  %v2721_v15 = vld [vmem:[%s9920_s1 + $0x8] sm:$0xff] }
 0x228   : > { %v1560_v51 = vpop.f32.mrf.mxu0  ;;  %2786 = vrot.lane.b32.xlu0 %v2721_v15, %s5336_s12 }
 0x229   : > { %v1842_v29 = vadd.f32 %v1841_v9, %v6965_v5  ;;  %v1881_v60 = vmul.f32 %v6965_v5, %v6965_v5  ;;  %v1561_v36 = vadd.f32 %v1560_v51, %v6725_v48 }
 0x22a   : > { %v1562_v26 = vpop.f32.mrf.mxu0 }
 0x22b   : > { %v1912_v62 = vadd.f32 %v1911_v1, %v1881_v60  ;;  %v6971_v41 = vadd.f32 %v5009_v6, %v1561_v36  ;;  %v5018_v36 = vpop.f32.mrf.mxu1  ;;  %v2725_v26 = vld [vmem:[%s9920_s1 + $0x28] sm:$0xff] }
 0x22c   : > { %v1565_v39 = vpop.f32.mrf.mxu0 }
 0x22d   : > { %v1882_v31 = vmul.f32 %v6971_v41, %v6971_v41  ;;  %v1566_v0 = vadd.f32 %v1565_v39, %v6728_v58  ;;  %v1843_v11 = vadd.f32 %v1842_v29, %v6971_v41  ;;  %v2722_v58 = vld [vmem:[%s9920_s1 + $0x10] sm:$0xff] }
 0x22e   : > { %v1567_v46 = vpop.f32.mrf.mxu0  ;;  %2788 = vrot.lane.b32.xlu1 %v2722_v58, %s5336_s12 }
 0x22f   : > { %v6977_v28 = vadd.f32 %v1790_v22, %v1566_v0  ;;  %v1913_v33 = vadd.f32 %v1912_v62, %v1882_v31 }
 0x230   : > { %v1570_v61 = vpop.f32.mrf.mxu0 }
 0x231   : > { %v1844_v48 = vadd.f32 %v1843_v11, %v6977_v28  ;;  %v1883_v6 = vmul.f32 %v6977_v28, %v6977_v28  ;;  %v1571_v14 = vadd.f32 %v1570_v61, %v6731_v4  ;;  %v2723_v4 = vld [vmem:[%s9920_s1 + $0x18] sm:$0xff] }
 0x232   : > { %v1572_v57 = vpop.f32.mrf.mxu0  ;;  %2790 = vrot.lane.b32.xlu1 %v2723_v4, %s5336_s12  ;;  %v2727_v61 = vld [vmem:[%s9920_s1 + $0x38] sm:$0xff] }
 0x233   : > { %v1914_v43 = vadd.f32 %v1913_v33, %v1883_v6  ;;  %v6989_v19 = vadd.f32 %v5012_v18, %v1571_v14  ;;  %v1810_v33 = vpop.f32.mrf.mxu1 }
 0x234   : > { %v1575_v25 = vpop.f32.mrf.mxu0 }
 0x235   : > { %v1884_v9 = vmul.f32 %v6989_v19, %v6989_v19  ;;  %v1576_v50 = vadd.f32 %v1575_v25, %v6737_v16  ;;  %v1845_v1 = vadd.f32 %v1844_v48, %v6989_v19  ;;  %v2724_v16 = vld [vmem:[%s9920_s1 + $0x20] sm:$0xff]  ;;  %v2726_v48 = vld [vmem:[%s9920_s1 + $0x30] sm:$0xff] }
 0x236   : > { %v1577_v51 = vpop.f32.mrf.mxu0  ;;  %2794 = vrot.lane.b32.xlu1 %v2725_v26, %s5336_s12  ;;  %2792 = vrot.lane.b32.xlu0 %v2724_v16, %s5336_s12  ;;  %v2728_v25 = vld [vmem:[%s9920_s1 + $0x40] sm:$0xff]  ;;  %v2733_v26 = vld [vmem:[%s9920_s1 + $0x68] sm:$0xff] }
 0x237   : > { %v7003_v18 = vadd.f32 %v1800_v35, %v1576_v50  ;;  %v1915_v29 = vadd.f32 %v1914_v43, %v1884_v9  ;;  %v2729_v43 = vld [vmem:[%s9920_s1 + $0x48] sm:$0xff]  ;;  %v2730_v51 = vld [vmem:[%s9920_s1 + $0x50] sm:$0xff]  ;;  %v2732_v16 = vld [vmem:[%s9920_s1 + $0x60] sm:$0xff] }
 0x238   : > { %v1580_v60 = vpop.f32.mrf.mxu0 }
 0x239   : > { %v1846_v62 = vadd.f32 %v1845_v1, %v7003_v18  ;;  %v1885_v39 = vmul.f32 %v7003_v18, %v7003_v18  ;;  %v1581_v22 = vadd.f32 %v1580_v60, %v6740_v27  ;;  %v2731_v1 = vld [vmem:[%s9920_s1 + $0x58] sm:$0xff] }
 0x23a   : > { %v1582_v31 = vpop.f32.mrf.mxu0  ;;  %2798 = vrot.lane.b32.xlu1 %v2727_v61, %s5336_s12  ;;  %2796 = vrot.lane.b32.xlu0 %v2726_v48, %s5336_s12 }
 0x23b   : > { %v1916_v0 = vadd.f32 %v1915_v29, %v1885_v39  ;;  %v7017_v11 = vadd.f32 %v5015_v20, %v1581_v22 }
 0x23c   : > { %v1585_v46 = vpop.f32.mrf.mxu0 }
 0x23d   : > { %v1886_v27 = vmul.f32 %v7017_v11, %v7017_v11  ;;  %v1586_v20 = vadd.f32 %v1585_v46, %v6749_v44  ;;  %v1847_v6 = vadd.f32 %v1846_v62, %v7017_v11  ;;  %v2734_v46 = vld [vmem:[%s9920_s1 + $0x70] sm:$0xff] }
 0x23e   : > { %v1587_v14 = vpop.f32.mrf.mxu0  ;;  %2802 = vrot.lane.b32.xlu1 %v2729_v43, %s5336_s12  ;;  %2800 = vrot.lane.b32.xlu0 %v2728_v25, %s5336_s12  ;;  %v2739_v25 = vld [vmem:[%s9920_s1 + $0x98] sm:$0xff] }
 0x23f   : > { %v7031_v57 = vadd.f32 %v1810_v33, %v1586_v20  ;;  %v1917_v58 = vadd.f32 %v1916_v0, %v1886_v27  ;;  %v2735_v0 = vld [vmem:[%s9920_s1 + $0x78] sm:$0xff]  ;;  %v2737_v20 = vld [vmem:[%s9920_s1 + $0x88] sm:$0xff] }
 0x240   : > { %v1590_v63 = vpop.f32.mrf.mxu0 }
 0x241   : > { %v1848_v44 = vadd.f32 %v1847_v6, %v7031_v57  ;;  %v1887_v35 = vmul.f32 %v7031_v57, %v7031_v57  ;;  %v1591_v4 = vadd.f32 %v1590_v63, %v6752_v55  ;;  %v2736_v6 = vld [vmem:[%s9920_s1 + $0x80] sm:$0xff] }
 0x242   : > { %v1592_v15 = vpop.f32.mrf.mxu0  ;;  %2806 = vrot.lane.b32.xlu1 %v2731_v1, %s5336_s12  ;;  %2804 = vrot.lane.b32.xlu0 %v2730_v51, %s5336_s12  ;;  %v2741_v1 = vld [vmem:[%s9920_s1 + $0xa8] sm:$0xff] }
 0x243   : > { %v1918_v9 = vadd.f32 %v1917_v58, %v1887_v35  ;;  %v7045_v50 = vadd.f32 %v5018_v36, %v1591_v4  ;;  %v2738_v15 = vld [vmem:[%s9920_s1 + $0x90] sm:$0xff] }
 0x245   : > { %v1849_v29 = vadd.f32 %v1848_v44, %v7045_v50  ;;  %v1888_v55 = vmul.f32 %v7045_v50, %v7045_v50 }
 0x246   : > { %2810 = vrot.lane.b32.xlu1 %v2733_v26, %s5336_s12  ;;  %2808 = vrot.lane.b32.xlu0 %v2732_v16, %s5336_s12 }
 0x247   : > { %v1850_v60 = vrot.slane %v1849_v29, 4  ;;  %v1919_v36 = vadd.f32 %v1918_v9, %v1888_v55 }
 0x249   : > { %v1851_v62 = vadd.f32 %v1850_v60, %v1849_v29  ;;  %v1920_v39 = vrot.slane %v1919_v36, 4  ;;  %v2740_v29 = vld [vmem:[%s9920_s1 + $0xa0] sm:$0xff] }
 0x24a   : > { %2814 = vrot.lane.b32.xlu1 %v2735_v0, %s5336_s12  ;;  %2812 = vrot.lane.b32.xlu0 %v2734_v46, %s5336_s12 }
 0x24b   : > { %v1852_v22 = vrot.slane %v1851_v62, 2  ;;  %v1921_v31 = vadd.f32 %v1920_v39, %v1919_v36 }
 0x24d   : > { %v1853_v33 = vadd.f32 %v1852_v22, %v1851_v62  ;;  %v1922_v61 = vrot.slane %v1921_v31, 2 }
 0x24e   : > { %2818 = vrot.lane.b32.xlu1 %v2737_v20, %s5336_s12  ;;  %2816 = vrot.lane.b32.xlu0 %v2736_v6, %s5336_s12 }
 0x24f   : > { %v1854_v48 = vrot.slane %v1853_v33, 1  ;;  %v1923_v27 = vadd.f32 %v1922_v61, %v1921_v31 }
 0x251   : > { %v1855_v14 = vadd.f32 %v1854_v48, %v1853_v33  ;;  %v1924_v58 = vrot.slane %v1923_v27, 1 }
 0x252   : > { %2822 = vrot.lane.b32.xlu1 %v2739_v25, %s5336_s12  ;;  %2820 = vrot.lane.b32.xlu0 %v2738_v15, %s5336_s12 }
 0x253   : > { %v7082_v63 = vmul.f32 0.00390625, %v1855_v14  ;;  %v1925_v43 = vadd.f32 %v1924_v58, %v1923_v27 }
 0x255   : > { %v1926_v44 = vmul.f32 0.00390625, %v1925_v43  ;;  %v1927_v35 = vmul.f32 %v7082_v63, %v7082_v63  ;;  %v1960_v4 = vsub.f32 %v7045_v50, %v7082_v63  ;;  %v1950_v50 = vsub.f32 %v6946_v23, %v7082_v63  ;;  %v2743_v23 = vld [vmem:[%s9920_s1 + $0xb8] sm:$0xff] }
 0x256   : > { %2826 = vrot.lane.b32.xlu1 %v2741_v1, %s5336_s12  ;;  %v1951_v55 = vsub.f32 %v6952_v47, %v7082_v63  ;;  %v1952_v60 = vsub.f32 %v6959_v30, %v7082_v63  ;;  %v1953_v36 = vsub.f32 %v6965_v5, %v7082_v63  ;;  %v1954_v26 = vsub.f32 %v6971_v41, %v7082_v63  ;;  %v2742_v41 = vld [vmem:[%s9920_s1 + $0xb0] sm:$0xff] }
 0x257   : > { %v1928_v9 = vsub.f32 %v1926_v44, %v1927_v35  ;;  %2824 = vrot.lane.b32.xlu0 %v2740_v29, %s5336_s12  ;;  %v1955_v16 = vsub.f32 %v6977_v28, %v7082_v63  ;;  %v1956_v47 = vsub.f32 %v6989_v19, %v7082_v63  ;;  %v1957_v30 = vsub.f32 %v7003_v18, %v7082_v63  ;;  %v2745_v18 = vld [vmem:[%s9920_s1 + $0xc8] sm:$0xff] }
 0x258   : > { %v1958_v5 = vsub.f32 %v7017_v11, %v7082_v63  ;;  %v1959_v62 = vsub.f32 %v7031_v57, %v7082_v63  ;;  %v7134_v28 = vsub.s32 1, %v6523_v2  ;;  %v7137_v19 = vsub.s32 2, %v6523_v2  ;;  %v2744_v11 = vld [vmem:[%s9920_s1 + $0xc0] sm:$0xff] }
 0x259   : > { %v1961_v51 = vadd.f32 1e-05, %v1928_v9  ;;  %v5268_v57 = vld [vmem:[%s9925_s6] sm:$0x7]  ;;  %v1929_v2 = vsub.f32 %v6806_v8, %v7082_v63  ;;  %v1930_v31 = vsub.f32 %v6800_v38, %v7082_v63  ;;  %v1931_v0 = vsub.f32 %v6808_v56, %v7082_v63 }
 0x25a   : > { %2830 = vrot.lane.b32.xlu1 %v2743_v23, %s5336_s12  ;;  %v7151_v39 = vrot.slane %v5268_v57, %v7134_v28  ;;  %v7156_v22 = vrot.slane %v5268_v57, %v7137_v19  ;;  %v1932_v46 = vsub.f32 %v6818_v13, %v7082_v63  ;;  %v1933_v33 = vsub.f32 %v6828_v12, %v7082_v63 }
 0x25b   : > { %5198 = vrsqrt.f32 %v1961_v51  ;;  %2828 = vrot.lane.b32.xlu0 %v2742_v41, %s5336_s12  ;;  %v1934_v8 = vsub.f32 %v6840_v40, %v7082_v63  ;;  %v1935_v61 = vsub.f32 %v6847_v45, %v7082_v63  ;;  %v1936_v48 = vsub.f32 %v6855_v53, %v7082_v63 }
 0x25c   : > { %v1937_v38 = vsub.f32 %v6862_v42, %v7082_v63  ;;  %v1939_v56 = vsub.f32 %v6876_v10, %v7082_v63  ;;  %v1941_v13 = vsub.f32 %v6889_v21, %v7082_v63  ;;  %v1943_v12 = vsub.f32 %v6901_v17, %v7082_v63 }
 0x25d   : > { %v1945_v40 = vsub.f32 %v6914_v32, %v7082_v63  ;;  %v1946_v45 = vsub.f32 %v6920_v24, %v7082_v63  ;;  %v1947_v53 = vsub.f32 %v6926_v49, %v7082_v63  ;;  %v1948_v42 = vsub.f32 %v6931_v59, %v7082_v63 }
 0x25e   : > { %2834 = vrot.lane.b32.xlu1 %v2745_v18, %s5336_s12  ;;  %v1949_v10 = vsub.f32 %v6937_v3, %v7082_v63 }
 0x25f   : > { %2832 = vrot.lane.b32.xlu0 %v2744_v11, %s5336_s12 }
 0x268   : > { %v7183_v27 = vpop.eup %5198 }
 0x269   : > { %v7194_v21 = vmul.f32 %v7183_v27, %v1960_v4  ;;  %v1963_v17 = vmul.f32 %v7183_v27, %v1929_v2  ;;  %v1964_v32 = vmul.f32 %v7183_v27, %v1930_v31  ;;  %v1965_v20 = vmul.f32 %v7183_v27, %v1931_v0 }
 0x26a   : > { %v1967_v24 = vmul.f32 %v7183_v27, %v1933_v33  ;;  %v1969_v6 = vmul.f32 %v7183_v27, %v1935_v61  ;;  %v1971_v49 = vmul.f32 %v7183_v27, %v1937_v38  ;;  %v1973_v59 = vmul.f32 %v7183_v27, %v1939_v56 }
 0x26b   : > { %v7204_v14 = vmul.f32 %v7183_v27, %v1941_v13  ;;  %v7207_v3 = vmul.f32 %v7183_v27, %v1943_v12  ;;  %v7210_v58 = vmul.f32 %v7183_v27, %v1945_v40  ;;  %v7213_v43 = vmul.f32 %v7183_v27, %v1946_v45 }
 0x26c   : > { %v7216_v25 = vmul.f32 %v7183_v27, %v1947_v53  ;;  %v7219_v44 = vmul.f32 %v7183_v27, %v1948_v42  ;;  %v7222_v35 = vmul.f32 %v7183_v27, %v1949_v10  ;;  %v7225_v4 = vmul.f32 %v7183_v27, %v1950_v50 }
 0x26d   : > { %v7228_v15 = vmul.f32 %v7183_v27, %v1951_v55  ;;  %v7231_v9 = vmul.f32 %v7183_v27, %v1952_v60  ;;  %v7234_v1 = vmul.f32 %v7183_v27, %v1953_v36  ;;  %v7237_v51 = vmul.f32 %v7183_v27, %v1954_v26 }
 0x26e   : > { %v7240_v29 = vmul.f32 %v7183_v27, %v1955_v16  ;;  %v7243_v23 = vmul.f32 %v7183_v27, %v1956_v47  ;;  %v7246_v50 = vmul.f32 %v7183_v27, %v1957_v30  ;;  %v7249_v55 = vmul.f32 %v7183_v27, %v1958_v5 }
 0x26f   : > { %v7252_v60 = vmul.f32 %v7183_v27, %v1959_v62  ;;  %v2000_v36 = vmul.f32 %v7151_v39, %v1964_v32  ;;  %v1999_v26 = vmul.f32 %v7151_v39, %v1963_v17  ;;  %v2001_v41 = vmul.f32 %v7151_v39, %v1965_v20 }
 0x270   : > { %v1966_v16 = vmul.f32 %v7183_v27, %v1932_v46  ;;  %v2003_v47 = vmul.f32 %v7151_v39, %v1967_v24  ;;  %v1968_v18 = vmul.f32 %v7183_v27, %v1934_v8  ;;  %v1970_v62 = vmul.f32 %v7183_v27, %v1936_v48 }
 0x271   : > { %v2035_v30 = vadd.f32 %v7156_v22, %v1999_v26  ;;  %v2036_v5 = vadd.f32 %v7156_v22, %v2000_v36  ;;  %v2037_v11 = vadd.f32 %v7156_v22, %v2001_v41  ;;  %v1938_v2 = vsub.f32 %v6870_v54, %v7082_v63 }
 0x272   : > { %v2002_v57 = vmul.f32 %v7151_v39, %v1966_v16  ;;  %v1940_v46 = vsub.f32 %v6883_v52, %v7082_v63  ;;  %v2004_v8 = vmul.f32 %v7151_v39, %v1968_v18  ;;  %v2039_v38 = vadd.f32 %v7156_v22, %v2003_v47 }
 0x273   : > { %v2067_v31 = vmax.f32 %v2035_v30, 0.0  ;;  %v2068_v0 = vmax.f32 %v2036_v5, 0.0  ;;  %v2069_v61 = vmax.f32 %v2037_v11, 0.0  ;;  %v2005_v48 = vmul.f32 %v7151_v39, %v1969_v6 }
 0x274   : > { %v2038_v33 = vadd.f32 %v7156_v22, %v2002_v57  ;;  %v1972_v56 = vmul.f32 %v7183_v27, %v1938_v2  ;;  %v1942_v54 = vsub.f32 %v6895_v34, %v7082_v63  ;;  %v1974_v13 = vmul.f32 %v7183_v27, %v1940_v46 }
 0x275   : > { %5051 = vmatprep.mubr.f32.mxu1 %v2067_v31  ;;  %v1944_v52 = vsub.f32 %v6907_v37, %v7082_v63  ;;  %v2040_v40 = vadd.f32 %v7156_v22, %v2004_v8  ;;  %v2006_v45 = vmul.f32 %v7151_v39, %v1970_v62  ;;  %v2071_v42 = vmax.f32 %v2039_v38, 0.0 }
 0x276   : > { %5052 = vmatmul.mubr.f32.vlgmr.msra.gmra.mxu1 %v2068_v0  ;;  %v2070_v12 = vmax.f32 %v2038_v33, 0.0  ;;  %v1976_v53 = vmul.f32 %v7183_v27, %v1942_v54  ;;  %v2041_v10 = vadd.f32 %v7156_v22, %v2005_v48  ;;  %v2007_v17 = vmul.f32 %v7151_v39, %v1971_v49 }
 0x277   : > { %5054 = vmatprep.mubr.f32.mxu1 %v2069_v61  ;;  %v1978_v34 = vmul.f32 %v7183_v27, %v1944_v52  ;;  %v2072_v32 = vmax.f32 %v2040_v40, 0.0  ;;  %v2042_v37 = vadd.f32 %v7156_v22, %v2006_v45  ;;  %v2008_v63 = vmul.f32 %v7151_v39, %v1972_v56 }
 0x278   : > { %v2073_v20 = vmax.f32 %v2041_v10, 0.0  ;;  %v2043_v24 = vadd.f32 %v7156_v22, %v2007_v17  ;;  %v2009_v6 = vmul.f32 %v7151_v39, %v1973_v59  ;;  %v2010_v49 = vmul.f32 %v7151_v39, %v1974_v13 }
 0x279   : > { %v2074_v36 = vmax.f32 %v2042_v37, 0.0  ;;  %v2044_v26 = vadd.f32 %v7156_v22, %v2008_v63  ;;  %v2011_v16 = vmul.f32 %v7151_v39, %v7204_v14  ;;  %v2012_v59 = vmul.f32 %v7151_v39, %v1976_v53 }
 0x27a   : > { %5055 = vmatmul.mubr.f32.gmra.mxu1 %v2070_v12  ;;  %v2075_v27 = vmax.f32 %v2043_v24, 0.0  ;;  %v2045_v41 = vadd.f32 %v7156_v22, %v2009_v6  ;;  %v2046_v18 = vadd.f32 %v7156_v22, %v2010_v49  ;;  %v2013_v11 = vmul.f32 %v7151_v39, %v7207_v3 }
 0x27b   : > { %5057 = vmatprep.mubr.f32.mxu1 %v2071_v42  ;;  %v2076_v47 = vmax.f32 %v2044_v26, 0.0  ;;  %v2047_v5 = vadd.f32 %v7156_v22, %v2011_v16  ;;  %v2048_v57 = vadd.f32 %v7156_v22, %v2012_v59  ;;  %v2014_v14 = vmul.f32 %v7151_v39, %v1978_v34 }
 0x27c   : > { %v2077_v30 = vmax.f32 %v2045_v41, 0.0  ;;  %v2078_v62 = vmax.f32 %v2046_v18, 0.0  ;;  %v2049_v31 = vadd.f32 %v7156_v22, %v2013_v11  ;;  %v2015_v0 = vmul.f32 %v7151_v39, %v7210_v58  ;;  %v2747_v11 = vld [vmem:[%s9920_s1 + $0xd8] sm:$0xff] }
 0x27d   : > { %v2079_v2 = vmax.f32 %v2047_v5, 0.0  ;;  %v2080_v46 = vmax.f32 %v2048_v57, 0.0  ;;  %v2050_v33 = vadd.f32 %v7156_v22, %v2014_v14  ;;  %v2016_v3 = vmul.f32 %v7151_v39, %v7213_v43  ;;  %2838 = vrot.lane.b32.xlu1 %v2747_v11, %s5336_s12  ;;  %v2750_v57 = vld [vmem:[%s9920_s1 + $0xf0] sm:$0xff]  ;;  %v7378_v14 = vld [vmem:[%s9926_s7] sm:$0x7] }
 0x27e   : > { %5058 = vmatmul.mubr.f32.gmra.mxu1 %v2072_v32  ;;  %v2081_v8 = vmax.f32 %v2049_v31, 0.0  ;;  %v2051_v61 = vadd.f32 %v7156_v22, %v2015_v0  ;;  %v2017_v38 = vmul.f32 %v7151_v39, %v7216_v25  ;;  %v2018_v58 = vmul.f32 %v7151_v39, %v7219_v44 }
 0x27f   : > { %5060 = vmatprep.mubr.f32.mxu1 %v2073_v20  ;;  %v2082_v48 = vmax.f32 %v2050_v33, 0.0  ;;  %v2052_v56 = vadd.f32 %v7156_v22, %v2016_v3  ;;  %v2019_v43 = vmul.f32 %v7151_v39, %v7222_v35  ;;  %v2020_v25 = vmul.f32 %v7151_v39, %v7225_v4 }
 0x280   : > { %v2083_v54 = vmax.f32 %v2051_v61, 0.0  ;;  %v2053_v13 = vadd.f32 %v7156_v22, %v2017_v38  ;;  %v2054_v12 = vadd.f32 %v7156_v22, %v2018_v58  ;;  %v2021_v44 = vmul.f32 %v7151_v39, %v7228_v15 }
 0x281   : > { %v2084_v52 = vmax.f32 %v2052_v56, 0.0  ;;  %v2055_v45 = vadd.f32 %v7156_v22, %v2019_v43  ;;  %v2056_v42 = vadd.f32 %v7156_v22, %v2020_v25  ;;  %v2022_v35 = vmul.f32 %v7151_v39, %v7231_v9 }
 0x282   : > { %5061 = vmatmul.mubr.f32.gmra.mxu1 %v2074_v36  ;;  %v2085_v40 = vmax.f32 %v2053_v13, 0.0  ;;  %v2086_v53 = vmax.f32 %v2054_v12, 0.0  ;;  %v2057_v17 = vadd.f32 %v7156_v22, %v2021_v44  ;;  %v2023_v4 = vmul.f32 %v7151_v39, %v7234_v1 }
 0x283   : > { %5063 = vmatprep.mubr.f32.mxu1 %v2075_v27  ;;  %v2087_v10 = vmax.f32 %v2055_v45, 0.0  ;;  %v2088_v34 = vmax.f32 %v2056_v42, 0.0  ;;  %v2058_v32 = vadd.f32 %v7156_v22, %v2022_v35  ;;  %v2024_v15 = vmul.f32 %v7151_v39, %v7237_v51 }
 0x284   : > { %v2089_v37 = vmax.f32 %v2057_v17, 0.0  ;;  %v2059_v63 = vadd.f32 %v7156_v22, %v2023_v4  ;;  %v2025_v9 = vmul.f32 %v7151_v39, %v7240_v29  ;;  %v2026_v1 = vmul.f32 %v7151_v39, %v7243_v23 }
 0x285   : > { %v2090_v20 = vmax.f32 %v2058_v32, 0.0  ;;  %v2060_v24 = vadd.f32 %v7156_v22, %v2024_v15  ;;  %v2027_v51 = vmul.f32 %v7151_v39, %v7246_v50  ;;  %v2028_v29 = vmul.f32 %v7151_v39, %v7249_v55 }
 0x286   : > { %5064 = vmatmul.mubr.f32.gmra.mxu1 %v2076_v47  ;;  %v2091_v6 = vmax.f32 %v2059_v63, 0.0  ;;  %v2061_v36 = vadd.f32 %v7156_v22, %v2025_v9  ;;  %v2062_v49 = vadd.f32 %v7156_v22, %v2026_v1  ;;  %v2029_v23 = vmul.f32 %v7151_v39, %v7252_v60 }
 0x287   : > { %5066 = vmatprep.mubr.f32.mxu1 %v2077_v30  ;;  %v2092_v26 = vmax.f32 %v2060_v24, 0.0  ;;  %v2063_v41 = vadd.f32 %v7156_v22, %v2027_v51  ;;  %v2064_v47 = vadd.f32 %v7156_v22, %v2028_v29  ;;  %v2030_v50 = vmul.f32 %v7151_v39, %v7194_v21  ;;  %v2746_v39 = vld [vmem:[%s9920_s1 + $0xd0] sm:$0xff]  ;;  %v2748_v21 = vld [vmem:[%s9920_s1 + $0xe0] sm:$0xff] }
 0x288   : > { %v2093_v27 = vmax.f32 %v2061_v36, 0.0  ;;  %v2094_v16 = vmax.f32 %v2062_v49, 0.0  ;;  %v2065_v59 = vadd.f32 %v7156_v22, %v2029_v23  ;;  %2836 = vrot.lane.b32.xlu0 %v2746_v39, %s5336_s12 }
 0x289   : > { %v2095_v18 = vmax.f32 %v2063_v41, 0.0  ;;  %v2096_v55 = vmax.f32 %v2064_v47, 0.0  ;;  %v2066_v30 = vadd.f32 %v7156_v22, %v2030_v50  ;;  %v2749_v22 = vld [vmem:[%s9920_s1 + $0xe8] sm:$0xff] }
 0x28a   : > { %5067 = vmatmul.mubr.f32.gmra.mxu1 %v2078_v62  ;;  %v2097_v5 = vmax.f32 %v2065_v59, 0.0  ;;  %2842 = vrot.lane.b32.xlu1 %v2749_v22, %s5336_s12  ;;  %v2751_v62 = vld [vmem:[%s9920_s1 + $0xf8] sm:$0xff] }
 0x28b   : > { %5069 = vmatprep.mubr.f32.mxu1 %v2079_v2  ;;  %v2098_v60 = vmax.f32 %v2066_v30, 0.0  ;;  %v7382_v2 = vrot.slane %v7378_v14, %v6540_v7 }
 0x28c   : > { %2840 = vrot.lane.b32.xlu0 %v2748_v21, %s5336_s12 }
 0x28e   : > { %5070 = vmatmul.mubr.f32.gmra.mxu1 %v2080_v46  ;;  %2846 = vrot.lane.b32.xlu1 %v2751_v62, %s5336_s12 }
 0x28f   : > { %5072 = vmatprep.mubr.f32.mxu1 %v2081_v8 }
 0x290   : > { %2844 = vrot.lane.b32.xlu0 %v2750_v57, %s5336_s12 }
 0x292   : > { %5073 = vmatmul.mubr.f32.gmra.mxu1 %v2082_v48 }
 0x293   : > { %5075 = vmatprep.mubr.f32.mxu1 %v2083_v54 }
 0x296   : > { %5076 = vmatmul.mubr.f32.gmra.mxu1 %v2084_v52 }
 0x297   : > { %5078 = vmatprep.mubr.f32.mxu1 %v2085_v40 }
 0x29a   : > { %5079 = vmatmul.mubr.f32.gmra.mxu1 %v2086_v53 }
 0x29b   : > { %5081 = vmatprep.mubr.f32.mxu1 %v2087_v10 }
 0x29e   : > { %5082 = vmatmul.mubr.f32.gmra.mxu1 %v2088_v34 }
 0x29f   : > { %5084 = vmatprep.mubr.f32.mxu1 %v2089_v37 }
 0x2a2   : > { %5085 = vmatmul.mubr.f32.gmra.mxu1 %v2090_v20 }
 0x2a3   : > { %5087 = vmatprep.mubr.f32.mxu1 %v2091_v6 }
 0x2a6   : > { %5088 = vmatmul.mubr.f32.gmra.mxu1 %v2092_v26 }
 0x2a7   : > { %5090 = vmatprep.mubr.f32.mxu1 %v2093_v27 }
 0x2aa   : > { %5091 = vmatmul.mubr.f32.gmra.mxu1 %v2094_v16 }
 0x2ab   : > { %5093 = vmatprep.mubr.f32.mxu1 %v2095_v18 }
 0x2ae   : > { %5094 = vmatmul.mubr.f32.gmra.mxu1 %v2096_v55 }
 0x2af   : > { %5096 = vmatprep.mubr.f32.mxu1 %v2097_v5 }
 0x2b2   : > { %5097 = vmatmul.mubr.f32.gmra.mxu1 %v2098_v60 }
 0x336   : > { %v5053_v31 = vpop.f32.mrf.mxu1 }
 0x337   : > { %v7385_v46 = vadd.f32 %v5053_v31, %v7382_v2 }
 0x338   : > { %v2185_v0 = vpop.f32.mrf.mxu1 }
 0x339   : > { %v7388_v33 = vadd.f32 %v2185_v0, %v7382_v2  ;;  %v2383_v38 = vmul.f32 %v7385_v46, %v7385_v46 }
 0x33a   : > { %v5056_v3 = vpop.f32.mrf.mxu1 }
 0x33b   : > { %v2382_v8 = vmul.f32 %v7388_v33, %v7388_v33  ;;  %v2344_v48 = vadd.f32 %v7385_v46, %v7388_v33  ;;  %v7397_v56 = vadd.f32 %v5056_v3, %v7382_v2 }
 0x33c   : > { %v2195_v61 = vpop.f32.mrf.mxu1 }
 0x33d   : > { %v7400_v58 = vadd.f32 %v2195_v61, %v7382_v2  ;;  %v2414_v13 = vadd.f32 %v2383_v38, %v2382_v8  ;;  %v2385_v40 = vmul.f32 %v7397_v56, %v7397_v56 }
 0x33e   : > { %v5059_v54 = vpop.f32.mrf.mxu1 }
 0x33f   : > { %v2345_v43 = vadd.f32 %v2344_v48, %v7400_v58  ;;  %v2384_v52 = vmul.f32 %v7400_v58, %v7400_v58  ;;  %v7406_v12 = vadd.f32 %v5059_v54, %v7382_v2 }
 0x340   : > { %v2205_v25 = vpop.f32.mrf.mxu1 }
 0x341   : > { %v2415_v45 = vadd.f32 %v2414_v13, %v2384_v52  ;;  %v7411_v44 = vadd.f32 %v2205_v25, %v7382_v2  ;;  %v2346_v53 = vadd.f32 %v2345_v43, %v7397_v56  ;;  %v2387_v4 = vmul.f32 %v7406_v12, %v7406_v12 }
 0x342   : > { %v5062_v42 = vpop.f32.mrf.mxu1 }
 0x343   : > { %v2347_v35 = vadd.f32 %v2346_v53, %v7411_v44  ;;  %v2386_v10 = vmul.f32 %v7411_v44, %v7411_v44  ;;  %v2416_v17 = vadd.f32 %v2415_v45, %v2385_v40  ;;  %v7420_v15 = vadd.f32 %v5062_v42, %v7382_v2 }
 0x344   : > { %v2215_v34 = vpop.f32.mrf.mxu1 }
 0x345   : > { %v2417_v32 = vadd.f32 %v2416_v17, %v2386_v10  ;;  %v7423_v37 = vadd.f32 %v2215_v34, %v7382_v2  ;;  %v2348_v63 = vadd.f32 %v2347_v35, %v7406_v12  ;;  %v2389_v51 = vmul.f32 %v7420_v15, %v7420_v15 }
 0x346   : > { %v5065_v9 = vpop.f32.mrf.mxu1 }
 0x347   : > { %v2349_v20 = vadd.f32 %v2348_v63, %v7423_v37  ;;  %v2388_v24 = vmul.f32 %v7423_v37, %v7423_v37  ;;  %v2418_v1 = vadd.f32 %v2417_v32, %v2387_v4  ;;  %v7430_v6 = vadd.f32 %v5065_v9, %v7382_v2 }
 0x348   : > { %v2225_v36 = vpop.f32.mrf.mxu1 }
 0x349   : > { %v2419_v26 = vadd.f32 %v2418_v1, %v2388_v24  ;;  %v7435_v49 = vadd.f32 %v2225_v36, %v7382_v2  ;;  %v2350_v29 = vadd.f32 %v2349_v20, %v7420_v15  ;;  %v2391_v47 = vmul.f32 %v7430_v6, %v7430_v6 }
 0x34a   : > { %v5068_v27 = vpop.f32.mrf.mxu1 }
 0x34b   : > { %v2351_v41 = vadd.f32 %v2350_v29, %v7435_v49  ;;  %v2390_v23 = vmul.f32 %v7435_v49, %v7435_v49  ;;  %v2420_v16 = vadd.f32 %v2419_v26, %v2389_v51  ;;  %v7444_v59 = vadd.f32 %v5068_v27, %v7382_v2 }
 0x34c   : > { %v2235_v50 = vpop.f32.mrf.mxu1 }
 0x34d   : > { %v2421_v18 = vadd.f32 %v2420_v16, %v2390_v23  ;;  %v7447_v55 = vadd.f32 %v2235_v50, %v7382_v2  ;;  %v2352_v30 = vadd.f32 %v2351_v41, %v7430_v6  ;;  %v2393_v62 = vmul.f32 %v7444_v59, %v7444_v59 }
 0x34e   : > { %v5071_v5 = vpop.f32.mrf.mxu1 }
 0x34f   : > { %v2353_v60 = vadd.f32 %v2352_v30, %v7447_v55  ;;  %v2392_v11 = vmul.f32 %v7447_v55, %v7447_v55  ;;  %v2422_v39 = vadd.f32 %v2421_v18, %v2391_v47  ;;  %v7454_v22 = vadd.f32 %v5071_v5, %v7382_v2 }
 0x350   : > { %v2245_v21 = vpop.f32.mrf.mxu1 }
 0x351   : > { %v2423_v57 = vadd.f32 %v2422_v39, %v2392_v11  ;;  %v7459_v31 = vadd.f32 %v2245_v21, %v7382_v2  ;;  %v2354_v0 = vadd.f32 %v2353_v60, %v7444_v59  ;;  %v2395_v48 = vmul.f32 %v7454_v22, %v7454_v22 }
 0x352   : > { %v5074_v3 = vpop.f32.mrf.mxu1 }
 0x353   : > { %v2355_v8 = vadd.f32 %v2354_v0, %v7459_v31  ;;  %v2394_v61 = vmul.f32 %v7459_v31, %v7459_v31  ;;  %v2424_v38 = vadd.f32 %v2423_v57, %v2393_v62  ;;  %v7468_v43 = vadd.f32 %v5074_v3, %v7382_v2 }
 0x354   : > { %v2255_v54 = vpop.f32.mrf.mxu1 }
 0x355   : > { %v2425_v13 = vadd.f32 %v2424_v38, %v2394_v61  ;;  %v7471_v52 = vadd.f32 %v2255_v54, %v7382_v2  ;;  %v2356_v25 = vadd.f32 %v2355_v8, %v7454_v22  ;;  %v2397_v17 = vmul.f32 %v7468_v43, %v7468_v43 }
 0x356   : > { %v5077_v40 = vpop.f32.mrf.mxu1 }
 0x357   : > { %v2357_v45 = vadd.f32 %v2356_v25, %v7471_v52  ;;  %v2396_v53 = vmul.f32 %v7471_v52, %v7471_v52  ;;  %v2426_v42 = vadd.f32 %v2425_v13, %v2395_v48  ;;  %v7478_v35 = vadd.f32 %v5077_v40, %v7382_v2 }
 0x358   : > { %v2265_v10 = vpop.f32.mrf.mxu1 }
 0x359   : > { %v2427_v4 = vadd.f32 %v2426_v42, %v2396_v53  ;;  %v7483_v34 = vadd.f32 %v2265_v10, %v7382_v2  ;;  %v2358_v32 = vadd.f32 %v2357_v45, %v7468_v43  ;;  %v2399_v1 = vmul.f32 %v7478_v35, %v7478_v35 }
 0x35a   : > { %v5080_v63 = vpop.f32.mrf.mxu1 }
 0x35b   : > { %v2359_v9 = vadd.f32 %v2358_v32, %v7483_v34  ;;  %v2398_v20 = vmul.f32 %v7483_v34, %v7483_v34  ;;  %v2428_v24 = vadd.f32 %v2427_v4, %v2397_v17  ;;  %v7492_v26 = vadd.f32 %v5080_v63, %v7382_v2 }
 0x35c   : > { %v2275_v36 = vpop.f32.mrf.mxu1 }
 0x35d   : > { %v2429_v51 = vadd.f32 %v2428_v24, %v2398_v20  ;;  %v7495_v29 = vadd.f32 %v2275_v36, %v7382_v2  ;;  %v2360_v27 = vadd.f32 %v2359_v9, %v7478_v35  ;;  %v2401_v30 = vmul.f32 %v7492_v26, %v7492_v26 }
 0x35e   : > { %v5083_v41 = vpop.f32.mrf.mxu1 }
 0x35f   : > { %v2361_v23 = vadd.f32 %v2360_v27, %v7495_v29  ;;  %v2400_v16 = vmul.f32 %v7495_v29, %v7495_v29  ;;  %v2430_v47 = vadd.f32 %v2429_v51, %v2399_v1  ;;  %v7502_v50 = vadd.f32 %v5083_v41, %v7382_v2 }
 0x360   : > { %v2285_v18 = vpop.f32.mrf.mxu1 }
 0x361   : > { %v2431_v5 = vadd.f32 %v2430_v47, %v2400_v16  ;;  %v7507_v60 = vadd.f32 %v2285_v18, %v7382_v2  ;;  %v2362_v11 = vadd.f32 %v2361_v23, %v7492_v26  ;;  %v2403_v0 = vmul.f32 %v7502_v50, %v7502_v50 }
 0x362   : > { %v5086_v39 = vpop.f32.mrf.mxu1 }
 0x363   : > { %v2363_v21 = vadd.f32 %v2362_v11, %v7507_v60  ;;  %v2402_v62 = vmul.f32 %v7507_v60, %v7507_v60  ;;  %v2432_v57 = vadd.f32 %v2431_v5, %v2401_v30  ;;  %v7516_v61 = vadd.f32 %v5086_v39, %v7382_v2 }
 0x364   : > { %v2295_v3 = vpop.f32.mrf.mxu1 }
 0x365   : > { %v2433_v8 = vadd.f32 %v2432_v57, %v2402_v62  ;;  %v7519_v38 = vadd.f32 %v2295_v3, %v7382_v2  ;;  %v2364_v48 = vadd.f32 %v2363_v21, %v7502_v50  ;;  %v2405_v42 = vmul.f32 %v7516_v61, %v7516_v61 }
 0x366   : > { %v5089_v54 = vpop.f32.mrf.mxu1 }
 0x367   : > { %v2365_v13 = vadd.f32 %v2364_v48, %v7519_v38  ;;  %v2404_v25 = vmul.f32 %v7519_v38, %v7519_v38  ;;  %v2434_v40 = vadd.f32 %v2433_v8, %v2403_v0  ;;  %v7526_v45 = vadd.f32 %v5089_v54, %v7382_v2 }
 0x368   : > { %v2305_v53 = vpop.f32.mrf.mxu1 }
 0x369   : > { %v2435_v10 = vadd.f32 %v2434_v40, %v2404_v25  ;;  %v7531_v17 = vadd.f32 %v2305_v53, %v7382_v2  ;;  %v2366_v4 = vadd.f32 %v2365_v13, %v7516_v61  ;;  %v2407_v24 = vmul.f32 %v7526_v45, %v7526_v45 }
 0x36a   : > { %v5092_v32 = vpop.f32.mrf.mxu1 }
 0x36b   : > { %v2367_v63 = vadd.f32 %v2366_v4, %v7531_v17  ;;  %v2406_v9 = vmul.f32 %v7531_v17, %v7531_v17  ;;  %v2436_v20 = vadd.f32 %v2435_v10, %v2405_v42  ;;  %v7540_v51 = vadd.f32 %v5092_v32, %v7382_v2 }
 0x36c   : > { %v2315_v1 = vpop.f32.mrf.mxu1 }
 0x36d   : > { %v2437_v36 = vadd.f32 %v2436_v20, %v2406_v9  ;;  %v7543_v27 = vadd.f32 %v2315_v1, %v7382_v2  ;;  %v2368_v41 = vadd.f32 %v2367_v63, %v7526_v45  ;;  %v2409_v11 = vmul.f32 %v7540_v51, %v7540_v51 }
 0x36e   : > { %v5095_v23 = vpop.f32.mrf.mxu1 }
 0x36f   : > { %v2369_v16 = vadd.f32 %v2368_v41, %v7543_v27  ;;  %v2408_v47 = vmul.f32 %v7543_v27, %v7543_v27  ;;  %v2438_v18 = vadd.f32 %v2437_v36, %v2407_v24  ;;  %v7550_v30 = vadd.f32 %v5095_v23, %v7382_v2 }
 0x370   : > { %v2325_v5 = vpop.f32.mrf.mxu1 }
 0x371   : > { %v2439_v39 = vadd.f32 %v2438_v18, %v2408_v47  ;;  %v7555_v21 = vadd.f32 %v2325_v5, %v7382_v2  ;;  %v2370_v62 = vadd.f32 %v2369_v16, %v7540_v51  ;;  %v2411_v48 = vmul.f32 %v7550_v30, %v7550_v30 }
 0x372   : > { %v5098_v57 = vpop.f32.mrf.mxu1 }
 0x373   : > { %v2371_v0 = vadd.f32 %v2370_v62, %v7555_v21  ;;  %v2410_v3 = vmul.f32 %v7555_v21, %v7555_v21  ;;  %v2440_v8 = vadd.f32 %v2439_v39, %v2409_v11  ;;  %v7564_v25 = vadd.f32 %v5098_v57, %v7382_v2 }
 0x374   : > { %v2335_v54 = vpop.f32.mrf.mxu1 }
 0x375   : > { %v2441_v13 = vadd.f32 %v2440_v8, %v2410_v3  ;;  %v2336_v40 = vadd.f32 %v2335_v54, %v7382_v2  ;;  %v2372_v53 = vadd.f32 %v2371_v0, %v7550_v30  ;;  %v2413_v32 = vmul.f32 %v7564_v25, %v7564_v25 }
 0x376   : > { %v7581_v54 = vrot.slane %v7378_v14, %v7137_v19 }
 0x377   : > { %v2373_v42 = vadd.f32 %v2372_v53, %v2336_v40  ;;  %v2412_v10 = vmul.f32 %v2336_v40, %v2336_v40  ;;  %v2442_v4 = vadd.f32 %v2441_v13, %v2411_v48  ;;  %v7577_v48 = vrot.slane %v7378_v14, %v7134_v28 }
 0x379   : > { %v2374_v63 = vadd.f32 %v2373_v42, %v7564_v25  ;;  %v2443_v9 = vadd.f32 %v2442_v4, %v2412_v10 }
 0x37b   : > { %v2375_v20 = vrot.slane %v2374_v63, 4  ;;  %v2444_v24 = vadd.f32 %v2443_v9, %v2413_v32 }
 0x37d   : > { %v2376_v1 = vadd.f32 %v2375_v20, %v2374_v63  ;;  %v2445_v36 = vrot.slane %v2444_v24, 4 }
 0x37f   : > { %v2377_v41 = vrot.slane %v2376_v1, 2  ;;  %v2446_v23 = vadd.f32 %v2445_v36, %v2444_v24 }
 0x381   : > { %v2378_v16 = vadd.f32 %v2377_v41, %v2376_v1  ;;  %v2447_v47 = vrot.slane %v2446_v23, 2 }
 0x383   : > { %v2379_v2 = vrot.slane %v2378_v16, 1  ;;  %v2448_v18 = vadd.f32 %v2447_v47, %v2446_v23 }
 0x385   : > { %v2380_v5 = vadd.f32 %v2379_v2, %v2378_v16  ;;  %v2449_v11 = vrot.slane %v2448_v18, 1 }
 0x387   : > { %v7571_v39 = vmul.f32 0.00390625, %v2380_v5  ;;  %v2450_v62 = vadd.f32 %v2449_v11, %v2448_v18 }
 0x389   : > { %v2451_v57 = vmul.f32 0.00390625, %v2450_v62  ;;  %v2452_v0 = vmul.f32 %v7571_v39, %v7571_v39  ;;  %v2484_v13 = vsub.f32 %v2336_v40, %v7571_v39  ;;  %v2454_v53 = vsub.f32 %v7388_v33, %v7571_v39 }
 0x38a   : > { %v2455_v42 = vsub.f32 %v7385_v46, %v7571_v39  ;;  %v2456_v10 = vsub.f32 %v7400_v58, %v7571_v39  ;;  %v2457_v4 = vsub.f32 %v7397_v56, %v7571_v39  ;;  %v2458_v32 = vsub.f32 %v7411_v44, %v7571_v39 }
 0x38b   : > { %v2453_v3 = vsub.f32 %v2451_v57, %v2452_v0  ;;  %v2459_v14 = vsub.f32 %v7406_v12, %v7571_v39  ;;  %v2460_v40 = vsub.f32 %v7423_v37, %v7571_v39  ;;  %v2461_v33 = vsub.f32 %v7420_v15, %v7571_v39 }
 0x38c   : > { %v2462_v46 = vsub.f32 %v7435_v49, %v7571_v39  ;;  %v2463_v58 = vsub.f32 %v7430_v6, %v7571_v39  ;;  %v2464_v56 = vsub.f32 %v7447_v55, %v7571_v39  ;;  %v2465_v44 = vsub.f32 %v7444_v59, %v7571_v39 }
 0x38d   : > { %v2486_v8 = vadd.f32 1e-05, %v2453_v3  ;;  %v2466_v12 = vsub.f32 %v7459_v31, %v7571_v39  ;;  %v2467_v37 = vsub.f32 %v7454_v22, %v7571_v39  ;;  %v2468_v15 = vsub.f32 %v7471_v52, %v7571_v39 }
 0x38e   : > { %v2469_v49 = vsub.f32 %v7468_v43, %v7571_v39  ;;  %v2470_v6 = vsub.f32 %v7483_v34, %v7571_v39  ;;  %v2471_v55 = vsub.f32 %v7478_v35, %v7571_v39  ;;  %v2472_v59 = vsub.f32 %v7495_v29, %v7571_v39 }
 0x38f   : > { %5200 = vrsqrt.f32 %v2486_v8  ;;  %v2473_v31 = vsub.f32 %v7492_v26, %v7571_v39  ;;  %v2474_v22 = vsub.f32 %v7507_v60, %v7571_v39  ;;  %v2475_v52 = vsub.f32 %v7502_v50, %v7571_v39 }
 0x390   : > { %v2476_v43 = vsub.f32 %v7519_v38, %v7571_v39  ;;  %v2477_v34 = vsub.f32 %v7516_v61, %v7571_v39  ;;  %v2478_v35 = vsub.f32 %v7531_v17, %v7571_v39  ;;  %v2479_v29 = vsub.f32 %v7526_v45, %v7571_v39 }
 0x391   : > { %v2480_v26 = vsub.f32 %v7543_v27, %v7571_v39  ;;  %v2481_v60 = vsub.f32 %v7540_v51, %v7571_v39  ;;  %v2482_v50 = vsub.f32 %v7555_v21, %v7571_v39  ;;  %v2483_v61 = vsub.f32 %v7550_v30, %v7571_v39 }
 0x392   : > { %v2485_v17 = vsub.f32 %v7564_v25, %v7571_v39 }
 0x39c   : > { %v5201_v63 = vpop.eup %5200 }
 0x39d   : > { %v2518_v38 = vmul.f32 %v5201_v63, %v2484_v13  ;;  %v2490_v9 = vmul.f32 %v5201_v63, %v2456_v10  ;;  %v2488_v20 = vmul.f32 %v5201_v63, %v2454_v53  ;;  %v2489_v24 = vmul.f32 %v5201_v63, %v2455_v42 }
 0x39e   : > { %v2491_v45 = vmul.f32 %v5201_v63, %v2457_v4  ;;  %v2492_v1 = vmul.f32 %v5201_v63, %v2458_v32  ;;  %v2493_v51 = vmul.f32 %v5201_v63, %v2459_v14  ;;  %v2494_v41 = vmul.f32 %v5201_v63, %v2460_v40 }
 0x39f   : > { %v2554_v27 = vmul.f32 %v7577_v48, %v2518_v38  ;;  %v2526_v36 = vmul.f32 %v7577_v48, %v2490_v9  ;;  %v2495_v23 = vmul.f32 %v5201_v63, %v2461_v33  ;;  %v2496_v21 = vmul.f32 %v5201_v63, %v2462_v46 }
 0x3a0   : > { %v2497_v16 = vmul.f32 %v5201_v63, %v2463_v58  ;;  %v2498_v47 = vmul.f32 %v5201_v63, %v2464_v56  ;;  %v2499_v2 = vmul.f32 %v5201_v63, %v2465_v44  ;;  %v2500_v18 = vmul.f32 %v5201_v63, %v2466_v12  ;;  %v7663_v56 = vpop.permute.xlu0 %2784 }
 0x3a1   : > { %v7649_v30 = vadd.f32 %v7581_v54, %v2554_v27  ;;  %v7652_v25 = vadd.f32 %v7581_v54, %v2526_v36  ;;  %v2501_v5 = vmul.f32 %v5201_v63, %v2467_v37  ;;  %v2502_v11 = vmul.f32 %v5201_v63, %v2468_v15 }
 0x3a2   : > { %v2503_v39 = vmul.f32 %v5201_v63, %v2469_v49  ;;  %v2504_v62 = vmul.f32 %v5201_v63, %v2470_v6  ;;  %v2505_v0 = vmul.f32 %v5201_v63, %v2471_v55  ;;  %v2506_v3 = vmul.f32 %v5201_v63, %v2472_v59  ;;  %v7668_v49 = vpop.permute.xlu1 %2788 }
 0x3a3   : > { %2622 = vst [vmem:[%s9930_s11 + $0xf0] sm:$0xff] %v7649_v30  ;;  %v2626_v57 = vmul.f32 0.5, %v7652_v25  ;;  %v2507_v8 = vmul.f32 %v5201_v63, %v2473_v31  ;;  %2594 = vst [vmem:[%s9930_s11 + $0x10] sm:$0xff] %v7652_v25  ;;  %v2508_v13 = vmul.f32 %v5201_v63, %v2474_v22  ;;  %v2509_v53 = vmul.f32 %v5201_v63, %v2475_v52 }
 0x3a4   : > { %v2510_v42 = vmul.f32 %v5201_v63, %v2476_v43  ;;  %v2511_v10 = vmul.f32 %v5201_v63, %v2477_v34  ;;  %v2512_v32 = vmul.f32 %v5201_v63, %v2478_v35  ;;  %v2513_v14 = vmul.f32 %v5201_v63, %v2479_v29 }
 0x3a5   : > { %v2660_v4 = vmul.f32 1.442695, %v2626_v57  ;;  %v2514_v40 = vmul.f32 %v5201_v63, %v2480_v26  ;;  %v2515_v33 = vmul.f32 %v5201_v63, %v2481_v60  ;;  %v2516_v46 = vmul.f32 %v5201_v63, %v2482_v50 }
 0x3a6   : > { %v2517_v58 = vmul.f32 %v5201_v63, %v2483_v61  ;;  %v2524_v44 = vmul.f32 %v7577_v48, %v2488_v20  ;;  %v2519_v12 = vmul.f32 %v5201_v63, %v2485_v17  ;;  %v2525_v37 = vmul.f32 %v7577_v48, %v2489_v24 }
 0x3a7   : > { %5202 = vpow2.f32 %v2660_v4  ;;  %v2527_v15 = vmul.f32 %v7577_v48, %v2491_v45  ;;  %v2528_v55 = vmul.f32 %v7577_v48, %v2492_v1  ;;  %v2529_v59 = vmul.f32 %v7577_v48, %v2493_v51  ;;  %v7695_v45 = vpop.permute.xlu0 %2786 }
 0x3a8   : > { %v7671_v6 = vadd.f32 %v7581_v54, %v2524_v44  ;;  %v2530_v31 = vmul.f32 %v7577_v48, %v2494_v41  ;;  %v2531_v22 = vmul.f32 %v7577_v48, %v2495_v23  ;;  %v2532_v52 = vmul.f32 %v7577_v48, %v2496_v21 }
 0x3a9   : > { %v2533_v43 = vmul.f32 %v7577_v48, %v2497_v16  ;;  %v2534_v34 = vmul.f32 %v7577_v48, %v2498_v47  ;;  %v2535_v63 = vmul.f32 %v7577_v48, %v2499_v2  ;;  %v2536_v29 = vmul.f32 %v7577_v48, %v2500_v18  ;;  %v7704_v16 = vpop.permute.xlu1 %2790 }
 0x3aa   : > { %v2624_v35 = vmul.f32 0.5, %v7671_v6  ;;  %v2537_v26 = vmul.f32 %v7577_v48, %v2501_v5  ;;  %2592 = vst [vmem:[%s9930_s11] sm:$0xff] %v7671_v6  ;;  %v2538_v60 = vmul.f32 %v7577_v48, %v2502_v11  ;;  %v2539_v50 = vmul.f32 %v7577_v48, %v2503_v39 }
 0x3ab   : > { %v2540_v38 = vmul.f32 %v7577_v48, %v2504_v62  ;;  %v2541_v61 = vmul.f32 %v7577_v48, %v2505_v0  ;;  %v2542_v9 = vmul.f32 %v7577_v48, %v2506_v3  ;;  %v2543_v20 = vmul.f32 %v7577_v48, %v2507_v8 }
 0x3ac   : > { %v2656_v17 = vmul.f32 1.442695, %v2624_v35  ;;  %v2544_v24 = vmul.f32 %v7577_v48, %v2508_v13  ;;  %v2545_v1 = vmul.f32 %v7577_v48, %v2509_v53  ;;  %v2546_v27 = vmul.f32 %v7577_v48, %v2510_v42 }
 0x3ad   : > { %v2547_v36 = vmul.f32 %v7577_v48, %v2511_v10  ;;  %v2548_v51 = vmul.f32 %v7577_v48, %v2512_v32  ;;  %v2549_v41 = vmul.f32 %v7577_v48, %v2513_v14  ;;  %v2550_v23 = vmul.f32 %v7577_v48, %v2514_v40  ;;  %v7778_v32 = vpop.permute.xlu0 %2792 }
 0x3ae   : > { %5204 = vpow2.f32 %v2656_v17  ;;  %v2551_v21 = vmul.f32 %v7577_v48, %v2515_v33  ;;  %v2552_v47 = vmul.f32 %v7577_v48, %v2516_v46  ;;  %v7708_v2 = vadd.f32 %v7581_v54, %v2527_v15  ;;  %v7830_v15 = vpop.permute.xlu1 %2794 }
 0x3af   : > { %v7711_v18 = vadd.f32 %v7581_v54, %v2525_v37  ;;  %v7714_v5 = vadd.f32 %v7581_v54, %v2528_v55  ;;  %v7717_v11 = vadd.f32 %v7581_v54, %v2529_v59  ;;  %v7720_v39 = vadd.f32 %v7581_v54, %v2530_v31 }
 0x3b0   : > { %v7723_v62 = vadd.f32 %v7581_v54, %v2531_v22  ;;  %v7726_v57 = vadd.f32 %v7581_v54, %v2532_v52  ;;  %v2553_v0 = vmul.f32 %v7577_v48, %v2517_v58  ;;  %v7730_v3 = vadd.f32 %v7581_v54, %v2533_v43  ;;  %2595 = vst [vmem:[%s9930_s11 + $0x18] sm:$0xff] %v7708_v2 }
 0x3b1   : > { %v7733_v8 = vadd.f32 %v7581_v54, %v2534_v34  ;;  %v7736_v13 = vadd.f32 %v7581_v54, %v2535_v63  ;;  %2593 = vst [vmem:[%s9930_s11 + $0x8] sm:$0xff] %v7711_v18  ;;  %2596 = vst [vmem:[%s9930_s11 + $0x20] sm:$0xff] %v7714_v5  ;;  %v7751_v53 = vadd.f32 %v7581_v54, %v2536_v29  ;;  %v2627_v55 = vmul.f32 0.5, %v7708_v2 }
 0x3b2   : > { %v7754_v42 = vadd.f32 %v7581_v54, %v2537_v26  ;;  %v7757_v10 = vadd.f32 %v7581_v54, %v2538_v60  ;;  %v7760_v4 = vadd.f32 %v7581_v54, %v2539_v50  ;;  %2597 = vst [vmem:[%s9930_s11 + $0x28] sm:$0xff] %v7717_v11  ;;  %2598 = vst [vmem:[%s9930_s11 + $0x30] sm:$0xff] %v7720_v39  ;;  %v2625_v29 = vmul.f32 0.5, %v7711_v18 }
 0x3b3   : > { %2599 = vst [vmem:[%s9930_s11 + $0x38] sm:$0xff] %v7723_v62  ;;  %2600 = vst [vmem:[%s9930_s11 + $0x40] sm:$0xff] %v7726_v57  ;;  %v2555_v14 = vmul.f32 %v7577_v48, %v2519_v12  ;;  %v7782_v40 = vadd.f32 %v7581_v54, %v2540_v38  ;;  %v7785_v33 = vadd.f32 %v7581_v54, %v2541_v61  ;;  %v2662_v26 = vmul.f32 1.442695, %v2627_v55  ;;  %v7922_v61 = vpop.permute.xlu1 %2798 }
 0x3b4   : > { %v7788_v46 = vadd.f32 %v7581_v54, %v2542_v9  ;;  %2601 = vst [vmem:[%s9930_s11 + $0x48] sm:$0xff] %v7730_v3  ;;  %2602 = vst [vmem:[%s9930_s11 + $0x50] sm:$0xff] %v7733_v8  ;;  %v5203_v48 = vpop.eup %5202  ;;  %v7803_v58 = vadd.f32 %v7581_v54, %v2543_v20  ;;  %v7806_v44 = vadd.f32 %v7581_v54, %v2544_v24  ;;  %v2658_v60 = vmul.f32 1.442695, %v2625_v29 }
 0x3b5   : > { %2603 = vst [vmem:[%s9930_s11 + $0x58] sm:$0xff] %v7736_v13  ;;  %v7809_v12 = vadd.f32 %v7581_v54, %v2545_v1  ;;  %v7812_v37 = vadd.f32 %v7581_v54, %v2546_v27  ;;  %2604 = vst [vmem:[%s9930_s11 + $0x60] sm:$0xff] %v7751_v53  ;;  %v7834_v59 = vadd.f32 %v7581_v54, %v2547_v36  ;;  %v2628_v50 = vmul.f32 0.5, %v7714_v5 }
 0x3b6   : > { %2605 = vst [vmem:[%s9930_s11 + $0x68] sm:$0xff] %v7754_v42  ;;  %2606 = vst [vmem:[%s9930_s11 + $0x70] sm:$0xff] %v7757_v10  ;;  %v7837_v31 = vadd.f32 %v7581_v54, %v2548_v51  ;;  %v7852_v22 = vadd.f32 %v7581_v54, %v2549_v41  ;;  %v7855_v52 = vadd.f32 %v7581_v54, %v2550_v23  ;;  %v2629_v38 = vmul.f32 0.5, %v7717_v11 }
 0x3b7   : > { %2607 = vst [vmem:[%s9930_s11 + $0x78] sm:$0xff] %v7760_v4  ;;  %2608 = vst [vmem:[%s9930_s11 + $0x80] sm:$0xff] %v7782_v40  ;;  %v7858_v43 = vadd.f32 %v7581_v54, %v2551_v21  ;;  %v7861_v34 = vadd.f32 %v7581_v54, %v2552_v47  ;;  %v7880_v35 = vadd.f32 %v7581_v54, %v2553_v0  ;;  %5206 = vpow2.f32 %v2658_v60  ;;  %v7932_v21 = vpop.permute.xlu1 %2802 }
 0x3b8   : > { %2609 = vst [vmem:[%s9930_s11 + $0x88] sm:$0xff] %v7785_v33  ;;  %2610 = vst [vmem:[%s9930_s11 + $0x90] sm:$0xff] %v7788_v46  ;;  %v7883_v63 = vadd.f32 %v7581_v54, %v2555_v14  ;;  %v7910_v54 = vpop.permute.xlu0 %2796  ;;  %v2630_v20 = vmul.f32 0.5, %v7720_v39  ;;  %5208 = vpow2.f32 %v2662_v26  ;;  %v2631_v24 = vmul.f32 0.5, %v7723_v62 }
 0x3b9   : > { %2611 = vst [vmem:[%s9930_s11 + $0x98] sm:$0xff] %v7803_v58  ;;  %2612 = vst [vmem:[%s9930_s11 + $0xa0] sm:$0xff] %v7806_v44  ;;  %v2666_v1 = vmul.f32 1.442695, %v2629_v38  ;;  %v2664_v27 = vmul.f32 1.442695, %v2628_v50  ;;  %v2882_v41 = vmul.f32 %v5203_v48, %v7668_v49 }
 0x3ba   : > { %2613 = vst [vmem:[%s9930_s11 + $0xa8] sm:$0xff] %v7809_v12  ;;  %2614 = vst [vmem:[%s9930_s11 + $0xb0] sm:$0xff] %v7812_v37  ;;  %v2632_v51 = vmul.f32 0.5, %v7726_v57  ;;  %v2668_v23 = vmul.f32 1.442695, %v2630_v20  ;;  %v2634_v0 = vmul.f32 0.5, %v7733_v8 }
 0x3bb   : > { %2615 = vst [vmem:[%s9930_s11 + $0xb8] sm:$0xff] %v7834_v59  ;;  %2616 = vst [vmem:[%s9930_s11 + $0xc0] sm:$0xff] %v7837_v31  ;;  %v5205_v17 = vpop.eup %5204  ;;  %5210 = vpow2.f32 %v2666_v1  ;;  %v2670_v47 = vmul.f32 1.442695, %v2631_v24  ;;  %v2635_v29 = vmul.f32 0.5, %v7736_v13  ;;  %v7940_v49 = vpop.permute.xlu1 %2806  ;;  %v2636_v48 = vmul.f32 0.5, %v7751_v53 }
 0x3bc   : > { %2617 = vst [vmem:[%s9930_s11 + $0xc8] sm:$0xff] %v7852_v22  ;;  %2618 = vst [vmem:[%s9930_s11 + $0xd0] sm:$0xff] %v7855_v52  ;;  %v2880_v9 = vmul.f32 %v5205_v17, %v7663_v56  ;;  %v7927_v36 = vpop.permute.xlu0 %2800  ;;  %v2633_v56 = vmul.f32 0.5, %v7730_v3  ;;  %5212 = vpow2.f32 %v2664_v27  ;;  %v2672_v14 = vmul.f32 1.442695, %v2632_v51 }
 0x3bd   : > { %2619 = vst [vmem:[%s9930_s11 + $0xd8] sm:$0xff] %v7858_v43  ;;  %2620 = vst [vmem:[%s9930_s11 + $0xe0] sm:$0xff] %v7861_v34  ;;  %5214 = vpow2.f32 %v2668_v23  ;;  %v2676_v60 = vmul.f32 1.442695, %v2634_v0  ;;  %v5338_v38 = vmov 0   ;;  %v2638_v27 = vmul.f32 0.5, %v7757_v10 }
 0x3be   : > { %2621 = vst [vmem:[%s9930_s11 + $0xe8] sm:$0xff] %v7880_v35  ;;  %2623 = vst [vmem:[%s9930_s11 + $0xf8] sm:$0xff] %v7883_v63  ;;  %2944 = vrot.lane.b32.xlu0 %v2880_v9, %s5337_s30  ;;  %v2674_v26 = vmul.f32 1.442695, %v2633_v56  ;;  %5216 = vpow2.f32 %v2670_v47  ;;  %5180 = vset.pattern.permute.xlu1 %v5338_v38  ;;  %v2637_v9 = vmul.f32 0.5, %v7754_v42 }
 0x3bf   : > { %5218 = vpow2.f32 %v2672_v14  ;;  %5179 = vset.pattern.permute.xlu0 %v5338_v38  ;;  %v2678_v20 = vmul.f32 1.442695, %v2635_v29  ;;  %v2680_v51 = vmul.f32 1.442695, %v2636_v48  ;;  %v2640_v14 = vmul.f32 0.5, %v7782_v40 }
 0x3c0   : > { %v7937_v55 = vpop.permute.xlu0 %2804  ;;  %5220 = vpow2.f32 %v2674_v26  ;;  %v2682_v47 = vmul.f32 1.442695, %v2637_v9  ;;  %v2684_v29 = vmul.f32 1.442695, %v2638_v27 }
 0x3c1   : > { %5222 = vpow2.f32 %v2676_v60  ;;  %v2688_v27 = vmul.f32 1.442695, %v2640_v14 }
 0x3c2   : > { %2948 = vrot.lane.b32.xlu0 %v2882_v41, %s5337_s30  ;;  %v7951_v41 = vpop.permute.xlu1 %2810  ;;  %5224 = vpow2.f32 %v2678_v20 }
 0x3c3   : > { %5226 = vpow2.f32 %v2680_v51 }
 0x3c4   : > { %v5207_v50 = vpop.eup %5206  ;;  %v7947_v1 = vpop.permute.xlu0 %2808  ;;  %5228 = vpow2.f32 %v2682_v47  ;;  %v2644_v47 = vmul.f32 0.5, %v7806_v44 }
 0x3c5   : > { %v2881_v17 = vmul.f32 %v5207_v50, %v7695_v45  ;;  %v5209_v24 = vpop.eup %5208  ;;  %v2639_v45 = vmul.f32 0.5, %v7760_v4  ;;  %v2641_v50 = vmul.f32 0.5, %v7785_v33  ;;  %5230 = vpow2.f32 %v2684_v29 }
 0x3c6   : > { %v2883_v56 = vmul.f32 %v5209_v24, %v7704_v16  ;;  %v7961_v20 = vpop.permute.xlu1 %2814  ;;  %v2642_v24 = vmul.f32 0.5, %v7788_v46 }
 0x3c7   : > { %2946 = vrot.lane.b32.xlu1 %v2881_v17, %s5337_s30  ;;  %v2686_v16 = vmul.f32 1.442695, %v2639_v45 }
 0x3c8   : > { %v5211_v23 = vpop.eup %5210  ;;  %v2813_v48 = vpop.permute.xlu0 %2812 }
 0x3c9   : > { %v5213_v0 = vpop.eup %5212  ;;  %v2885_v17 = vmul.f32 %v5211_v23, %v7830_v15  ;;  %5232 = vpow2.f32 %v2686_v16  ;;  %v2696_v16 = vmul.f32 1.442695, %v2644_v47 }
 0x3ca   : > { %v2884_v26 = vmul.f32 %v5213_v0, %v7778_v32  ;;  %v5215_v60 = vpop.eup %5214  ;;  %v2690_v0 = vmul.f32 1.442695, %v2641_v50  ;;  %5234 = vpow2.f32 %v2688_v27  ;;  %v2819_v29 = vpop.permute.xlu1 %2818 }
 0x3cb   : > { %2950 = vrot.lane.b32.xlu1 %v2883_v56, %s5337_s30  ;;  %v5217_v9 = vpop.eup %5216  ;;  %v2886_v32 = vmul.f32 %v5215_v60, %v7910_v54  ;;  %v2643_v56 = vmul.f32 0.5, %v7803_v58  ;;  %v2645_v60 = vmul.f32 0.5, %v7809_v12 }
 0x3cc   : > { %2952 = vrot.lane.b32.xlu0 %v2884_v26, %s5337_s30  ;;  %v5219_v51 = vpop.eup %5218  ;;  %v2887_v15 = vmul.f32 %v5217_v9, %v7922_v61  ;;  %v2817_v45 = vpop.permute.xlu0 %2816  ;;  %v2692_v26 = vmul.f32 1.442695, %v2642_v24  ;;  %5236 = vpow2.f32 %v2690_v0 }
 0x3cd   : > { %v5221_v23 = vpop.eup %5220  ;;  %v2888_v14 = vmul.f32 %v5219_v51, %v7927_v36  ;;  %v2694_v50 = vmul.f32 1.442695, %v2643_v56  ;;  %v2646_v36 = vmul.f32 0.5, %v7812_v37  ;;  %v2698_v51 = vmul.f32 1.442695, %v2645_v60 }
 0x3ce   : > { %v5223_v54 = vpop.eup %5222  ;;  %v2889_v61 = vmul.f32 %v5221_v23, %v7932_v21  ;;  %5238 = vpow2.f32 %v2692_v26  ;;  %v2823_v0 = vpop.permute.xlu1 %2822  ;;  %v2648_v23 = vmul.f32 0.5, %v7837_v31  ;;  %v2649_v26 = vmul.f32 0.5, %v7852_v22 }
 0x3cf   : > { %2954 = vrot.lane.b32.xlu1 %v2885_v17, %s5337_s30  ;;  %v5225_v17 = vpop.eup %5224  ;;  %v2890_v9 = vmul.f32 %v5223_v54, %v7937_v55  ;;  %5240 = vpow2.f32 %v2694_v50  ;;  %v2700_v55 = vmul.f32 1.442695, %v2646_v36 }
 0x3d0   : > { %2956 = vrot.lane.b32.xlu0 %v2886_v32, %s5337_s30  ;;  %v5227_v24 = vpop.eup %5226  ;;  %v2821_v27 = vpop.permute.xlu0 %2820  ;;  %v2647_v32 = vmul.f32 0.5, %v7834_v59  ;;  %v2891_v56 = vmul.f32 %v5225_v17, %v7940_v49  ;;  %5242 = vpow2.f32 %v2696_v16  ;;  %v2706_v36 = vmul.f32 1.442695, %v2649_v26 }
 0x3d1   : > { %v5229_v21 = vpop.eup %5228  ;;  %5244 = vpow2.f32 %v2698_v51  ;;  %v2652_v51 = vmul.f32 0.5, %v7861_v34 }
 0x3d2   : > { %v5231_v47 = vpop.eup %5230  ;;  %v2893_v54 = vmul.f32 %v5229_v21, %v7951_v41  ;;  %5246 = vpow2.f32 %v2700_v55  ;;  %v2827_v16 = vpop.permute.xlu1 %2826 }
 0x3d3   : > { %2958 = vrot.lane.b32.xlu1 %v2887_v15, %s5337_s30  ;;  %v2892_v15 = vmul.f32 %v5227_v24, %v7947_v1  ;;  %v2894_v50 = vmul.f32 %v5231_v47, %v2813_v48  ;;  %v2704_v1 = vmul.f32 1.442695, %v2648_v23 }
 0x3d4   : > { %2960 = vrot.lane.b32.xlu0 %v2888_v14, %s5337_s30  ;;  %v2702_v14 = vmul.f32 1.442695, %v2647_v32  ;;  %v2825_v60 = vpop.permute.xlu0 %2824 }
 0x3d6   : > { %v5233_v49 = vpop.eup %5232  ;;  %5248 = vpow2.f32 %v2702_v14  ;;  %v2831_v47 = vpop.permute.xlu1 %2830  ;;  %v2654_v14 = vmul.f32 0.5, %v7649_v30 }
 0x3d7   : > { %2962 = vrot.lane.b32.xlu1 %v2889_v61, %s5337_s30  ;;  %v2650_v61 = vmul.f32 0.5, %v7855_v52  ;;  %v5235_v17 = vpop.eup %5234  ;;  %v2895_v24 = vmul.f32 %v5233_v49, %v7961_v20  ;;  %5250 = vpow2.f32 %v2704_v1  ;;  %v2655_v49 = vmul.f32 0.5, %v7883_v63 }
 0x3d8   : > { %2964 = vrot.lane.b32.xlu0 %v2890_v9, %s5337_s30  ;;  %v2651_v9 = vmul.f32 0.5, %v7858_v43  ;;  %v2896_v32 = vmul.f32 %v5235_v17, %v2817_v45  ;;  %v2829_v21 = vpop.permute.xlu0 %2828  ;;  %5252 = vpow2.f32 %v2706_v36  ;;  %v2712_v45 = vmul.f32 1.442695, %v2652_v51 }
 0x3d9   : > { %v5237_v41 = vpop.eup %5236  ;;  %v2708_v48 = vmul.f32 1.442695, %v2650_v61 }
 0x3da   : > { %v2710_v55 = vmul.f32 1.442695, %v2651_v9  ;;  %v2897_v23 = vmul.f32 %v5237_v41, %v2819_v29  ;;  %v2716_v9 = vmul.f32 1.442695, %v2654_v14  ;;  %v2835_v36 = vpop.permute.xlu1 %2834 }
 0x3db   : > { %2966 = vrot.lane.b32.xlu1 %v2891_v56, %s5337_s30  ;;  %v5239_v56 = vpop.eup %5238  ;;  %5254 = vpow2.f32 %v2708_v48 }
 0x3dc   : > { %2968 = vrot.lane.b32.xlu0 %v2892_v15, %s5337_s30  ;;  %v2653_v15 = vmul.f32 0.5, %v7880_v35  ;;  %v5241_v20 = vpop.eup %5240  ;;  %v2898_v26 = vmul.f32 %v5239_v56, %v2821_v27  ;;  %5256 = vpow2.f32 %v2710_v55  ;;  %v2833_v61 = vpop.permute.xlu0 %2832 }
 0x3dd   : > { %v2899_v1 = vmul.f32 %v5241_v20, %v2823_v0  ;;  %5258 = vpow2.f32 %v2712_v45 }
 0x3df   : > { %2970 = vrot.lane.b32.xlu1 %v2893_v54, %s5337_s30  ;;  %v5243_v54 = vpop.eup %5242 }
 0x3e0   : > { %2972 = vrot.lane.b32.xlu0 %v2894_v50, %s5337_s30  ;;  %v2714_v50 = vmul.f32 1.442695, %v2653_v15  ;;  %v5245_v29 = vpop.eup %5244  ;;  %v2900_v17 = vmul.f32 %v5243_v54, %v2825_v60  ;;  %v2837_v51 = vpop.permute.xlu0 %2836 }
 0x3e1   : > { %v5247_v27 = vpop.eup %5246  ;;  %v2901_v41 = vmul.f32 %v5245_v29, %v2827_v16  ;;  %v2839_v15 = vpop.permute.xlu1 %2838 }
 0x3e2   : > { %5260 = vpow2.f32 %v2714_v50  ;;  %v2902_v48 = vmul.f32 %v5247_v27, %v2829_v21 }
 0x3e3   : > { %2974 = vrot.lane.b32.xlu1 %v2895_v24, %s5337_s30  ;;  %v2718_v24 = vmul.f32 1.442695, %v2655_v49  ;;  %5262 = vpow2.f32 %v2716_v9 }
 0x3e4   : > { %2976 = vrot.lane.b32.xlu0 %v2896_v32, %s5337_s30  ;;  %v5249_v32 = vpop.eup %5248  ;;  %v2841_v21 = vpop.permute.xlu0 %2840 }
 0x3e5   : > { %v5251_v0 = vpop.eup %5250  ;;  %v2903_v56 = vmul.f32 %v5249_v32, %v2831_v47  ;;  %5264 = vpow2.f32 %v2718_v24  ;;  %v2843_v14 = vpop.permute.xlu1 %2842 }
 0x3e6   : > { %v5253_v60 = vpop.eup %5252  ;;  %v2904_v55 = vmul.f32 %v5251_v0, %v2833_v61 }
 0x3e7   : > { %2978 = vrot.lane.b32.xlu1 %v2897_v23, %s5337_s30  ;;  %v2905_v23 = vmul.f32 %v5253_v60, %v2835_v36 }
 0x3e8   : > { %2980 = vrot.lane.b32.xlu0 %v2898_v26, %s5337_s30  ;;  %v5255_v16 = vpop.eup %5254 }
 0x3e9   : > { %v5257_v20 = vpop.eup %5256  ;;  %v2906_v26 = vmul.f32 %v5255_v16, %v2837_v51 }
 0x3ea   : > { %v5259_v45 = vpop.eup %5258  ;;  %v2907_v47 = vmul.f32 %v5257_v20, %v2839_v15 }
 0x3eb   : > { %2982 = vrot.lane.b32.xlu1 %v2899_v1, %s5337_s30  ;;  %v2908_v49 = vmul.f32 %v5259_v45, %v2841_v21  ;;  %v2845_v1 = vpop.permute.xlu0 %2844 }
 0x3ec   : > { %2984 = vrot.lane.b32.xlu0 %v2900_v17, %s5337_s30  ;;  %v2847_v17 = vpop.permute.xlu1 %2846 }
 0x3ef   : > { %2986 = vrot.lane.b32.xlu1 %v2901_v41, %s5337_s30  ;;  %v5261_v54 = vpop.eup %5260 }
 0x3f0   : > { %2988 = vrot.lane.b32.xlu0 %v2902_v48, %s5337_s30  ;;  %v5263_v50 = vpop.eup %5262  ;;  %v2909_v29 = vmul.f32 %v5261_v54, %v2843_v14 }
 0x3f1   : > { %v2910_v9 = vmul.f32 %v5263_v50, %v2845_v1 }
 0x3f2   : > { %v5265_v61 = vpop.eup %5264 }
 0x3f3   : > { %2990 = vrot.lane.b32.xlu1 %v2903_v56, %s5337_s30  ;;  %v2911_v27 = vmul.f32 %v5265_v61, %v2847_v17 }
 0x3f4   : > { %2992 = vrot.lane.b32.xlu0 %v2904_v55, %s5337_s30 }
 0x3f7   : > { %2994 = vrot.lane.b32.xlu1 %v2905_v23, %s5337_s30 }
 0x3f8   : > { %2996 = vrot.lane.b32.xlu0 %v2906_v26, %s5337_s30 }
 0x3fb   : > { %2998 = vrot.lane.b32.xlu1 %v2907_v47, %s5337_s30 }
 0x3fc   : > { %3000 = vrot.lane.b32.xlu0 %v2908_v49, %s5337_s30 }
 0x3ff   : > { %3002 = vrot.lane.b32.xlu1 %v2909_v29, %s5337_s30 }
 0x400   : > { %3004 = vrot.lane.b32.xlu0 %v2910_v9, %s5337_s30  ;;  %v5339_v9 = vmov 1  }
 0x403   : > { %3006 = vrot.lane.b32.xlu1 %v2911_v27, %s5337_s30 }
 0x430   : > { %v2945_v36 = vpop.permute.xlu0 %2944 }
 0x431   : > { %v8014_v24 = vadd.f32 %v2945_v36, %v7671_v6 }
 0x433   : > { %3075 = vperm.xlu0 %5179, %v8014_v24  }
 0x434   : > { %v2949_v32 = vpop.permute.xlu0 %2948 }
 0x435   : > { %v3042_v0 = vadd.f32 %v2949_v32, %v7652_v25 }
 0x439   : > { %v2947_v41 = vpop.permute.xlu1 %2946 }
 0x43a   : > { %v3041_v48 = vadd.f32 %v2947_v41, %v7711_v18 }
 0x43c   : > { %3080 = vperm.xlu1 %5180, %v3041_v48  }
 0x43d   : > { %v2951_v51 = vpop.permute.xlu1 %2950 }
 0x43e   : > { %v3043_v56 = vadd.f32 %v2951_v51, %v7708_v2  ;;  %v2953_v60 = vpop.permute.xlu0 %2952 }
 0x43f   : > { %v3044_v15 = vadd.f32 %v2953_v60, %v7714_v5 }
 0x440   : > { %3090 = vperm.xlu0 %5179, %v3043_v56   ;;  %3085 = vperm.xlu1 %5180, %v3042_v0  }
 0x441   : > { %v2955_v55 = vpop.permute.xlu1 %2954 }
 0x442   : > { %v3045_v6 = vadd.f32 %v2955_v55, %v7717_v11  ;;  %v2957_v16 = vpop.permute.xlu0 %2956 }
 0x443   : > { %v3046_v23 = vadd.f32 %v2957_v16, %v7720_v39 }
 0x444   : > { %3100 = vperm.xlu0 %5179, %v3045_v6   ;;  %3095 = vperm.xlu1 %5180, %v3044_v15  }
 0x445   : > { %v2959_v18 = vpop.permute.xlu1 %2958 }
 0x446   : > { %v3047_v20 = vadd.f32 %v2959_v18, %v7723_v62  ;;  %v2961_v25 = vpop.permute.xlu0 %2960 }
 0x447   : > { %v3048_v2 = vadd.f32 %v2961_v25, %v7726_v57 }
 0x448   : > { %3110 = vperm.xlu0 %5179, %v3047_v20   ;;  %3105 = vperm.xlu1 %5180, %v3046_v23  }
 0x449   : > { %v2963_v21 = vpop.permute.xlu1 %2962 }
 0x44a   : > { %v3049_v26 = vadd.f32 %v2963_v21, %v7730_v3  ;;  %v2965_v5 = vpop.permute.xlu0 %2964 }
 0x44b   : > { %v3050_v11 = vadd.f32 %v2965_v5, %v7733_v8 }
 0x44c   : > { %3120 = vperm.xlu0 %5179, %v3049_v26   ;;  %3115 = vperm.xlu1 %5180, %v3048_v2  }
 0x44d   : > { %v2967_v45 = vpop.permute.xlu1 %2966 }
 0x44e   : > { %v3051_v14 = vadd.f32 %v2967_v45, %v7736_v13  ;;  %v2969_v39 = vpop.permute.xlu0 %2968 }
 0x44f   : > { %v3052_v62 = vadd.f32 %v2969_v39, %v7751_v53 }
 0x450   : > { %3130 = vperm.xlu0 %5179, %v3051_v14   ;;  %3125 = vperm.xlu1 %5180, %v3050_v11  }
 0x451   : > { %v2971_v47 = vpop.permute.xlu1 %2970 }
 0x452   : > { %v3053_v54 = vadd.f32 %v2971_v47, %v7754_v42  ;;  %v2973_v57 = vpop.permute.xlu0 %2972 }
 0x453   : > { %v3054_v3 = vadd.f32 %v2973_v57, %v7757_v10 }
 0x454   : > { %3140 = vperm.xlu0 %5179, %v3053_v54   ;;  %3135 = vperm.xlu1 %5180, %v3052_v62  }
 0x455   : > { %v2975_v49 = vpop.permute.xlu1 %2974 }
 0x456   : > { %v3055_v50 = vadd.f32 %v2975_v49, %v7760_v4  ;;  %v2977_v8 = vpop.permute.xlu0 %2976 }
 0x457   : > { %v3056_v13 = vadd.f32 %v2977_v8, %v7782_v40 }
 0x458   : > { %3150 = vperm.xlu0 %5179, %v3055_v50   ;;  %3145 = vperm.xlu1 %5180, %v3054_v3  }
 0x459   : > { %v2979_v1 = vpop.permute.xlu1 %2978 }
 0x45a   : > { %v3057_v29 = vadd.f32 %v2979_v1, %v7785_v33  ;;  %v2981_v53 = vpop.permute.xlu0 %2980 }
 0x45b   : > { %v3058_v42 = vadd.f32 %v2981_v53, %v7788_v46 }
 0x45c   : > { %3160 = vperm.xlu0 %5179, %v3057_v29   ;;  %3155 = vperm.xlu1 %5180, %v3056_v13  }
 0x45d   : > { %v2983_v61 = vpop.permute.xlu1 %2982 }
 0x45e   : > { %v3059_v17 = vadd.f32 %v2983_v61, %v7803_v58  ;;  %v2985_v10 = vpop.permute.xlu0 %2984 }
 0x45f   : > { %v3060_v4 = vadd.f32 %v2985_v10, %v7806_v44 }
 0x460   : > { %3170 = vperm.xlu0 %5179, %v3059_v17   ;;  %3165 = vperm.xlu1 %5180, %v3058_v42  }
 0x461   : > { %v2987_v40 = vpop.permute.xlu1 %2986 }
 0x462   : > { %v3061_v33 = vadd.f32 %v2987_v40, %v7809_v12  ;;  %v2989_v46 = vpop.permute.xlu0 %2988 }
 0x463   : > { %v3062_v44 = vadd.f32 %v2989_v46, %v7812_v37 }
 0x464   : > { %5181 = vset.pattern.permute.xlu0 %v5339_v9  ;;  %3175 = vperm.xlu1 %5180, %v3060_v4  }
 0x465   : > { %3270 = vperm.xlu0 %5181, %v8014_v24   ;;  %v2991_v58 = vpop.permute.xlu1 %2990 }
 0x466   : > { %v2993_v27 = vpop.permute.xlu0 %2992  ;;  %v3063_v37 = vadd.f32 %v2991_v58, %v7834_v59 }
 0x467   : > { %v3064_v36 = vadd.f32 %v2993_v27, %v7837_v31 }
 0x468   : > { %5182 = vset.pattern.permute.xlu1 %v5339_v9 }
 0x469   : > { %3282 = vperm.xlu0 %5181, %v3043_v56   ;;  %3274 = vperm.xlu1 %5182, %v3041_v48   ;;  %v2995_v24 = vpop.permute.xlu1 %2994 }
 0x46a   : > { %v3065_v12 = vadd.f32 %v2995_v24, %v7852_v22  ;;  %v2997_v41 = vpop.permute.xlu0 %2996 }
 0x46b   : > { %v3066_v56 = vadd.f32 %v2997_v41, %v7855_v52 }
 0x46d   : > { %3290 = vperm.xlu0 %5181, %v3045_v6   ;;  %3278 = vperm.xlu1 %5182, %v3042_v0   ;;  %v2999_v32 = vpop.permute.xlu1 %2998 }
 0x46e   : > { %v3067_v48 = vadd.f32 %v2999_v32, %v7858_v43  ;;  %v3001_v31 = vpop.permute.xlu0 %3000 }
 0x46f   : > { %v3068_v0 = vadd.f32 %v3001_v31, %v7861_v34 }
 0x471   : > { %3298 = vperm.xlu0 %5181, %v3047_v20   ;;  %3286 = vperm.xlu1 %5182, %v3044_v15   ;;  %v3003_v22 = vpop.permute.xlu1 %3002 }
 0x472   : > { %v3005_v59 = vpop.permute.xlu0 %3004  ;;  %v3069_v52 = vadd.f32 %v3003_v22, %v7880_v35 }
 0x473   : > { %v3070_v51 = vadd.f32 %v3005_v59, %v7649_v30 }
 0x475   : > { %3306 = vperm.xlu0 %5181, %v3049_v26   ;;  %3294 = vperm.xlu1 %5182, %v3046_v23   ;;  %v3007_v43 = vpop.permute.xlu1 %3006 }
 0x476   : > { %v3071_v60 = vadd.f32 %v3007_v43, %v7883_v63 }
 0x479   : > { %3314 = vperm.xlu0 %5181, %v3051_v14   ;;  %3302 = vperm.xlu1 %5182, %v3048_v2   ;;  %v3072_v14 = vld [vmem:[%s9923_s4] sm:$0x3] }
 0x47a   : > { %v8099_v47 = vrot.slane %v3072_v14, %v6540_v7 }
 0x47d   : > { %3322 = vperm.xlu0 %5181, %v3053_v54   ;;  %3310 = vperm.xlu1 %5182, %v3050_v11  }
 0x481   : > { %3330 = vperm.xlu0 %5181, %v3055_v50   ;;  %3318 = vperm.xlu1 %5182, %v3052_v62  }
 0x485   : > { %3338 = vperm.xlu0 %5181, %v3057_v29   ;;  %3326 = vperm.xlu1 %5182, %v3054_v3   ;;  %v8106_v3 = vld [vmem:[%s9927_s8] sm:$0x7] }
 0x486   : > { %v8112_v8 = vrot.slane %v8106_v3, %v6540_v7 }
 0x489   : > { %3346 = vperm.xlu0 %5181, %v3059_v17   ;;  %3334 = vperm.xlu1 %5182, %v3056_v13  }
 0x48d   : > { %5183 = vset.pattern.permute.xlu0 %v5338_v38  ;;  %3342 = vperm.xlu1 %5182, %v3058_v42  }
 0x48e   : > { %3180 = vperm.xlu0 %5183, %v3061_v33  }
 0x491   : > { %3350 = vperm.xlu1 %5182, %v3060_v4  }
 0x492   : > { %5185 = vset.pattern.permute.xlu0 %v5339_v9 }
 0x493   : > { %3358 = vperm.xlu0 %5185, %v3062_v44  }
 0x495   : > { %3354 = vperm.xlu1 %5182, %v3061_v33  }
 0x497   : > { %5187 = vset.pattern.permute.xlu0 %v5338_v38 }
 0x498   : > { %3195 = vperm.xlu0 %5187, %v3064_v36  }
 0x499   : > { %5184 = vset.pattern.permute.xlu1 %v5338_v38 }
 0x49a   : > { %3185 = vperm.xlu1 %5184, %v3062_v44  }
 0x49c   : > { %5189 = vset.pattern.permute.xlu0 %v5339_v9 }
 0x49d   : > { %3370 = vperm.xlu0 %5189, %v3065_v12  }
 0x49e   : > { %3190 = vperm.xlu1 %5184, %v3063_v37  }
 0x4a1   : > { %5191 = vset.pattern.permute.xlu0 %v5338_v38 }
 0x4a2   : > { %5186 = vset.pattern.permute.xlu1 %v5339_v9  ;;  %3210 = vperm.xlu0 %5191, %v3067_v48  }
 0x4a3   : > { %3362 = vperm.xlu1 %5186, %v3063_v37  }
 0x4a6   : > { %5193 = vset.pattern.permute.xlu0 %v5339_v9 }
 0x4a7   : > { %3366 = vperm.xlu1 %5186, %v3064_v36   ;;  %3382 = vperm.xlu0 %5193, %v3068_v0  }
 0x4ab   : > { %5188 = vset.pattern.permute.xlu1 %v5338_v38  ;;  %5195 = vset.pattern.permute.xlu0 %v5338_v38 }
 0x4ac   : > { %3200 = vperm.xlu1 %5188, %v3065_v12   ;;  %3225 = vperm.xlu0 %5195, %v3070_v51  }
 0x4ae   : > { %v3076_v34 = vpop.permute.xlu0 %3075 }
 0x4af   : > { %v3237_v50 = vmul.f32 %v8099_v47, %v3076_v34 }
 0x4b0   : > { %3205 = vperm.xlu1 %5188, %v3066_v56   ;;  %5197 = vset.pattern.permute.xlu0 %v5339_v9 }
 0x4b1   : > { %3394 = vperm.xlu0 %5197, %v3071_v60  }
 0x4b4   : > { %5190 = vset.pattern.permute.xlu1 %v5339_v9 }
 0x4b5   : > { %3374 = vperm.xlu1 %5190, %v3066_v56  }
 0x4b7   : > { %v3081_v30 = vpop.permute.xlu1 %3080 }
 0x4b8   : > { %v3238_v53 = vmul.f32 %v8099_v47, %v3081_v30 }
 0x4b9   : > { %3378 = vperm.xlu1 %5190, %v3067_v48  }
 0x4bb   : > { %v3086_v15 = vpop.permute.xlu1 %3085  ;;  %v3091_v55 = vpop.permute.xlu0 %3090 }
 0x4bc   : > { %v3240_v17 = vmul.f32 %v8099_v47, %v3091_v55  ;;  %v3239_v7 = vmul.f32 %v8099_v47, %v3086_v15 }
 0x4bd   : > { %5192 = vset.pattern.permute.xlu1 %v5338_v38 }
 0x4be   : > { %3215 = vperm.xlu1 %5192, %v3068_v0  }
 0x4bf   : > { %v3096_v6 = vpop.permute.xlu1 %3095  ;;  %v3101_v16 = vpop.permute.xlu0 %3100 }
 0x4c0   : > { %v3242_v27 = vmul.f32 %v8099_v47, %v3101_v16  ;;  %v3241_v12 = vmul.f32 %v8099_v47, %v3096_v6 }
 0x4c2   : > { %3220 = vperm.xlu1 %5192, %v3069_v52  }
 0x4c3   : > { %v8064_v63 = vpop.permute.xlu1 %3105  ;;  %v3111_v23 = vpop.permute.xlu0 %3110 }
 0x4c4   : > { %v3244_v43 = vmul.f32 %v8099_v47, %v3111_v23 }
 0x4c6   : > { %5194 = vset.pattern.permute.xlu1 %v5339_v9 }
 0x4c7   : > { %v8067_v18 = vpop.permute.xlu1 %3115  ;;  %3386 = vperm.xlu1 %5194, %v3069_v52   ;;  %v8069_v20 = vpop.permute.xlu0 %3120 }
 0x4cb   : > { %v8071_v25 = vpop.permute.xlu1 %3125  ;;  %3390 = vperm.xlu1 %5194, %v3070_v51   ;;  %v8073_v2 = vpop.permute.xlu0 %3130 }
 0x4cf   : > { %v8075_v21 = vpop.permute.xlu1 %3135  ;;  %5196 = vset.pattern.permute.xlu1 %v5338_v38  ;;  %v8078_v35 = vpop.permute.xlu0 %3140  ;;  %v8096_v38 = vrot.slane %v3072_v14, %v7134_v28 }
 0x4d0   : > { %3230 = vperm.xlu1 %5196, %v3071_v60  }
 0x4d3   : > { %v8080_v26 = vpop.permute.xlu1 %3145  ;;  %v8082_v5 = vpop.permute.xlu0 %3150 }
 0x4d7   : > { %v8084_v11 = vpop.permute.xlu1 %3155  ;;  %v8086_v45 = vpop.permute.xlu0 %3160 }
 0x4db   : > { %v8091_v39 = vpop.permute.xlu1 %3165  ;;  %v8093_v62 = vpop.permute.xlu0 %3170 }
 0x4df   : > { %v8101_v54 = vpop.permute.xlu1 %3175 }
 0x4e0   : > { %v3271_v57 = vpop.permute.xlu0 %3270 }
 0x4e1   : > { %v3401_v49 = vmul.f32 %v8096_v38, %v3271_v57 }
 0x4e3   : > { %v3433_v13 = vadd.f32 %v3401_v49, %v3237_v50  ;;  %v3243_v49 = vmul.f32 %v8099_v47, %v8064_v63 }
 0x4e4   : > { %v3275_v1 = vpop.permute.xlu1 %3274  ;;  %v3283_v29 = vpop.permute.xlu0 %3282 }
 0x4e5   : > { %v3402_v42 = vmul.f32 %v8096_v38, %v3275_v1  ;;  %v3404_v61 = vmul.f32 %v8096_v38, %v3283_v29  ;;  %v8119_v4 = vadd.f32 %v8112_v8, %v3433_v13 }
 0x4e7   : > { %v3434_v10 = vadd.f32 %v3402_v42, %v3238_v53  ;;  %v3436_v9 = vadd.f32 %v3404_v61, %v3240_v17  ;;  %v3539_v41 = vmul.f32 %v8119_v4, %v8119_v4  ;;  %v3245_v42 = vmul.f32 %v8099_v47, %v8067_v18 }
 0x4e8   : > { %v3279_v40 = vpop.permute.xlu1 %3278  ;;  %v3291_v33 = vpop.permute.xlu0 %3290  ;;  %v3246_v61 = vmul.f32 %v8099_v47, %v8069_v20 }
 0x4e9   : > { %v8123_v46 = vadd.f32 %v8112_v8, %v3434_v10  ;;  %v3403_v58 = vmul.f32 %v8096_v38, %v3279_v40  ;;  %v3406_v44 = vmul.f32 %v8096_v38, %v3291_v33  ;;  %v8134_v37 = vadd.f32 %v8112_v8, %v3436_v9 }
 0x4eb   : > { %v3540_v36 = vmul.f32 %v8123_v46, %v8123_v46  ;;  %v3435_v24 = vadd.f32 %v3403_v58, %v3239_v7  ;;  %v3438_v32 = vadd.f32 %v3406_v44, %v3242_v27  ;;  %v3501_v0 = vadd.f32 %v8123_v46, %v8119_v4 }
 0x4ec   : > { %v3287_v48 = vpop.permute.xlu1 %3286  ;;  %v3299_v31 = vpop.permute.xlu0 %3298  ;;  %v3542_v15 = vmul.f32 %v8134_v37, %v8134_v37 }
 0x4ed   : > { %v8139_v22 = vadd.f32 %v8112_v8, %v3435_v24  ;;  %v3405_v59 = vmul.f32 %v8096_v38, %v3287_v48  ;;  %v3408_v51 = vmul.f32 %v8096_v38, %v3299_v31  ;;  %v3571_v56 = vadd.f32 %v3540_v36, %v3539_v41 }
 0x4ee   : > { %v8150_v55 = vadd.f32 %v8112_v8, %v3438_v32  ;;  %v3247_v24 = vmul.f32 %v8099_v47, %v8071_v25 }
 0x4ef   : > { %v3502_v60 = vadd.f32 %v3501_v0, %v8139_v22  ;;  %v3541_v34 = vmul.f32 %v8139_v22, %v8139_v22  ;;  %v3437_v30 = vadd.f32 %v3405_v59, %v3241_v12  ;;  %v3440_v57 = vadd.f32 %v3408_v51, %v3244_v43 }
 0x4f0   : > { %v3295_v6 = vpop.permute.xlu1 %3294  ;;  %v3307_v16 = vpop.permute.xlu0 %3306  ;;  %v3544_v17 = vmul.f32 %v8150_v55, %v8150_v55  ;;  %v3248_v12 = vmul.f32 %v8099_v47, %v8073_v2 }
 0x4f1   : > { %v3572_v52 = vadd.f32 %v3571_v56, %v3541_v34  ;;  %v8153_v14 = vadd.f32 %v8112_v8, %v3437_v30  ;;  %v3503_v23 = vadd.f32 %v3502_v60, %v8134_v37  ;;  %v3407_v50 = vmul.f32 %v8096_v38, %v3295_v6 }
 0x4f2   : > { %v3410_v13 = vmul.f32 %v8096_v38, %v3307_v16  ;;  %v8170_v33 = vadd.f32 %v8112_v8, %v3440_v57  ;;  %v3250_v34 = vmul.f32 %v8099_v47, %v8078_v35  ;;  %v3249_v6 = vmul.f32 %v8099_v47, %v8075_v21 }
 0x4f3   : > { %v3504_v1 = vadd.f32 %v3503_v23, %v8153_v14  ;;  %v3543_v29 = vmul.f32 %v8153_v14, %v8153_v14  ;;  %v3573_v53 = vadd.f32 %v3572_v52, %v3542_v15  ;;  %v3439_v63 = vadd.f32 %v3407_v50, %v3243_v49 }
 0x4f4   : > { %v3303_v10 = vpop.permute.xlu1 %3302  ;;  %v3315_v9 = vpop.permute.xlu0 %3314  ;;  %v3442_v18 = vadd.f32 %v3410_v13, %v3246_v61  ;;  %v3546_v0 = vmul.f32 %v8170_v33, %v8170_v33 }
 0x4f5   : > { %v3574_v40 = vadd.f32 %v3573_v53, %v3543_v29  ;;  %v3505_v7 = vadd.f32 %v3504_v1, %v8150_v55  ;;  %v3409_v58 = vmul.f32 %v8096_v38, %v3303_v10  ;;  %v8175_v44 = vadd.f32 %v8112_v8, %v3439_v63 }
 0x4f6   : > { %v3412_v20 = vmul.f32 %v8096_v38, %v3315_v9  ;;  %v8193_v2 = vadd.f32 %v8112_v8, %v3442_v18  ;;  %v3251_v63 = vmul.f32 %v8099_v47, %v8080_v26 }
 0x4f7   : > { %v3575_v27 = vadd.f32 %v3574_v40, %v3544_v17  ;;  %v3441_v36 = vadd.f32 %v3409_v58, %v3245_v42  ;;  %v3506_v41 = vadd.f32 %v3505_v7, %v8175_v44  ;;  %v3545_v32 = vmul.f32 %v8175_v44, %v8175_v44 }
 0x4f8   : > { %v3311_v48 = vpop.permute.xlu1 %3310  ;;  %v3323_v31 = vpop.permute.xlu0 %3322  ;;  %v3444_v60 = vadd.f32 %v3412_v20, %v3248_v12  ;;  %v3548_v1 = vmul.f32 %v8193_v2, %v8193_v2  ;;  %v3252_v42 = vmul.f32 %v8099_v47, %v8082_v5 }
 0x4f9   : > { %v8188_v59 = vadd.f32 %v8112_v8, %v3441_v36  ;;  %v3411_v51 = vmul.f32 %v8096_v38, %v3311_v48  ;;  %v3414_v25 = vmul.f32 %v8096_v38, %v3323_v31  ;;  %v3576_v43 = vadd.f32 %v3575_v27, %v3545_v32 }
 0x4fa   : > { %v3507_v56 = vadd.f32 %v3506_v41, %v8170_v33  ;;  %v8211_v53 = vadd.f32 %v8112_v8, %v3444_v60  ;;  %v3253_v32 = vmul.f32 %v8099_v47, %v8084_v11  ;;  %v3254_v48 = vmul.f32 %v8099_v47, %v8086_v45 }
 0x4fb   : > { %v3547_v30 = vmul.f32 %v8188_v59, %v8188_v59  ;;  %v3443_v15 = vadd.f32 %v3411_v51, %v3247_v24  ;;  %v3577_v52 = vadd.f32 %v3576_v43, %v3546_v0  ;;  %v3446_v50 = vadd.f32 %v3414_v25, %v3250_v34 }
 0x4fc   : > { %v3508_v16 = vadd.f32 %v3507_v56, %v8188_v59  ;;  %v3319_v23 = vpop.permute.xlu1 %3318  ;;  %v3331_v57 = vpop.permute.xlu0 %3330  ;;  %v3550_v27 = vmul.f32 %v8211_v53, %v8211_v53 }
 0x4fd   : > { %v8204_v49 = vadd.f32 %v8112_v8, %v3443_v15  ;;  %v3413_v13 = vmul.f32 %v8096_v38, %v3319_v23  ;;  %v3416_v35 = vmul.f32 %v8096_v38, %v3331_v57  ;;  %v3578_v29 = vadd.f32 %v3577_v52, %v3547_v30 }
 0x4fe   : > { %v3509_v21 = vadd.f32 %v3508_v16, %v8193_v2  ;;  %v8222_v58 = vadd.f32 %v8112_v8, %v3446_v50  ;;  %v3256_v52 = vmul.f32 %v8099_v47, %v8093_v62 }
 0x4ff   : > { %v3549_v61 = vmul.f32 %v8204_v49, %v8204_v49  ;;  %v3445_v17 = vadd.f32 %v3413_v13, %v3249_v6  ;;  %v3579_v9 = vadd.f32 %v3578_v29, %v3548_v1  ;;  %v3448_v20 = vadd.f32 %v3416_v35, %v3252_v42 }
 0x500   : > { %v3510_v10 = vadd.f32 %v3509_v21, %v8204_v49  ;;  %v3327_v40 = vpop.permute.xlu1 %3326  ;;  %v3339_v7 = vpop.permute.xlu0 %3338  ;;  %v3552_v43 = vmul.f32 %v8222_v58, %v8222_v58  ;;  %v3255_v13 = vmul.f32 %v8099_v47, %v8091_v39 }
 0x501   : > { %v8225_v18 = vadd.f32 %v8112_v8, %v3445_v17  ;;  %v3415_v5 = vmul.f32 %v8096_v38, %v3327_v40  ;;  %v3580_v36 = vadd.f32 %v3579_v9, %v3549_v61  ;;  %v3418_v24 = vmul.f32 %v8096_v38, %v3339_v7 }
 0x502   : > { %v3511_v26 = vadd.f32 %v3510_v10, %v8211_v53  ;;  %v8242_v56 = vadd.f32 %v8112_v8, %v3448_v20  ;;  %v3257_v40 = vmul.f32 %v8099_v47, %v8101_v54 }
 0x503   : > { %v3551_v12 = vmul.f32 %v8225_v18, %v8225_v18  ;;  %v3447_v41 = vadd.f32 %v3415_v5, %v3251_v63  ;;  %v3581_v0 = vadd.f32 %v3580_v36, %v3550_v27  ;;  %v3450_v45 = vadd.f32 %v3418_v24, %v3254_v48 }
 0x504   : > { %v3512_v31 = vadd.f32 %v3511_v26, %v8225_v18  ;;  %v3335_v51 = vpop.permute.xlu1 %3334  ;;  %v3347_v25 = vpop.permute.xlu0 %3346  ;;  %v3554_v35 = vmul.f32 %v8242_v56, %v8242_v56 }
 0x505   : > { %v8245_v60 = vadd.f32 %v8112_v8, %v3447_v41  ;;  %v3417_v34 = vmul.f32 %v8096_v38, %v3335_v51  ;;  %v3582_v11 = vadd.f32 %v3581_v0, %v3551_v12  ;;  %v3420_v15 = vmul.f32 %v8096_v38, %v3347_v25 }
 0x506   : > { %v3513_v30 = vadd.f32 %v3512_v31, %v8222_v58  ;;  %v8264_v42 = vadd.f32 %v8112_v8, %v3450_v45 }
 0x507   : > { %v3553_v6 = vmul.f32 %v8245_v60, %v8245_v60  ;;  %v3449_v16 = vadd.f32 %v3417_v34, %v3253_v32  ;;  %v3583_v57 = vadd.f32 %v3582_v11, %v3552_v43  ;;  %v3452_v61 = vadd.f32 %v3420_v15, %v3256_v52 }
 0x508   : > { %v3514_v23 = vadd.f32 %v3513_v30, %v8245_v60  ;;  %v3343_v50 = vpop.permute.xlu1 %3342  ;;  %v3556_v5 = vmul.f32 %v8264_v42, %v8264_v42 }
 0x509   : > { %v8260_v1 = vadd.f32 %v8112_v8, %v3449_v16  ;;  %v3419_v29 = vmul.f32 %v8096_v38, %v3343_v50  ;;  %v3584_v21 = vadd.f32 %v3583_v57, %v3553_v6  ;;  %v8279_v36 = vadd.f32 %v8112_v8, %v3452_v61  ;;  %v3181_v15 = vpop.permute.xlu0 %3180 }
 0x50a   : > { %v3515_v62 = vadd.f32 %v3514_v23, %v8242_v56 }
 0x50b   : > { %v3555_v17 = vmul.f32 %v8260_v1, %v8260_v1  ;;  %v3451_v63 = vadd.f32 %v3419_v29, %v3255_v13  ;;  %v3585_v10 = vadd.f32 %v3584_v21, %v3554_v35  ;;  %v3558_v31 = vmul.f32 %v8279_v36, %v8279_v36 }
 0x50c   : > { %v3516_v39 = vadd.f32 %v3515_v62, %v8260_v1  ;;  %v3351_v9 = vpop.permute.xlu1 %3350  ;;  %v3258_v21 = vmul.f32 %v8099_v47, %v3181_v15 }
 0x50d   : > { %v8273_v7 = vadd.f32 %v8112_v8, %v3451_v63  ;;  %v3421_v20 = vmul.f32 %v8096_v38, %v3351_v9  ;;  %v3586_v27 = vadd.f32 %v3585_v10, %v3555_v17 }
 0x50e   : > { %v3517_v26 = vadd.f32 %v3516_v39, %v8264_v42  ;;  %v3359_v52 = vpop.permute.xlu0 %3358 }
 0x50f   : > { %v3557_v24 = vmul.f32 %v8273_v7, %v8273_v7  ;;  %v3453_v12 = vadd.f32 %v3421_v20, %v3257_v40  ;;  %v3587_v41 = vadd.f32 %v3586_v27, %v3556_v5  ;;  %v3423_v61 = vmul.f32 %v8096_v38, %v3359_v52 }
 0x510   : > { %v3518_v54 = vadd.f32 %v3517_v26, %v8273_v7  ;;  %v3355_v32 = vpop.permute.xlu1 %3354 }
 0x511   : > { %v8286_v48 = vadd.f32 %v8112_v8, %v3453_v12  ;;  %v3588_v0 = vadd.f32 %v3587_v41, %v3557_v24  ;;  %v3422_v13 = vmul.f32 %v8096_v38, %v3355_v32 }
 0x512   : > { %v3519_v51 = vadd.f32 %v3518_v54, %v8279_v36 }
 0x513   : > { %v3559_v25 = vmul.f32 %v8286_v48, %v8286_v48  ;;  %v3589_v34 = vadd.f32 %v3588_v0, %v3558_v31  ;;  %v3196_v57 = vpop.permute.xlu0 %3195  ;;  %v3454_v17 = vadd.f32 %v3422_v13, %v3258_v21 }
 0x514   : > { %v3520_v43 = vadd.f32 %v3519_v51, %v8286_v48  ;;  %v3261_v27 = vmul.f32 %v8099_v47, %v3196_v57 }
 0x515   : > { %v3186_v11 = vpop.permute.xlu1 %3185  ;;  %v3590_v30 = vadd.f32 %v3589_v34, %v3559_v25  ;;  %v8302_v5 = vadd.f32 %v8112_v8, %v3454_v17 }
 0x516   : > { %v3259_v62 = vmul.f32 %v8099_v47, %v3186_v11 }
 0x517   : > { %v3560_v0 = vmul.f32 %v8302_v5, %v8302_v5  ;;  %v3521_v15 = vadd.f32 %v3520_v43, %v8302_v5 }
 0x518   : > { %v3371_v35 = vpop.permute.xlu0 %3370  ;;  %v3455_v10 = vadd.f32 %v3423_v61, %v3259_v62 }
 0x519   : > { %v3191_v45 = vpop.permute.xlu1 %3190  ;;  %v3426_v41 = vmul.f32 %v8096_v38, %v3371_v35  ;;  %v3591_v35 = vadd.f32 %v3590_v30, %v3560_v0 }
 0x51a   : > { %v3260_v9 = vmul.f32 %v8099_v47, %v3191_v45  ;;  %v8307_v12 = vadd.f32 %v8112_v8, %v3455_v10 }
 0x51d   : > { %v3211_v40 = vpop.permute.xlu0 %3210 }
 0x51e   : > { %v3363_v6 = vpop.permute.xlu1 %3362  ;;  %v3264_v52 = vmul.f32 %v8099_v47, %v3211_v40 }
 0x51f   : > { %v3424_v63 = vmul.f32 %v8096_v38, %v3363_v6  ;;  %v3561_v6 = vmul.f32 %v8307_v12, %v8307_v12 }
 0x521   : > { %v3456_v26 = vadd.f32 %v3424_v63, %v3260_v9  ;;  %v3592_v61 = vadd.f32 %v3591_v35, %v3561_v6 }
 0x522   : > { %v3367_v16 = vpop.permute.xlu1 %3366  ;;  %v3383_v25 = vpop.permute.xlu0 %3382 }
 0x523   : > { %v3425_v20 = vmul.f32 %v8096_v38, %v3367_v16  ;;  %v8314_v51 = vadd.f32 %v8112_v8, %v3456_v26  ;;  %v3429_v43 = vmul.f32 %v8096_v38, %v3383_v25 }
 0x525   : > { %v3457_v32 = vadd.f32 %v3425_v20, %v3261_v27 }
 0x527   : > { %v3201_v23 = vpop.permute.xlu1 %3200 }
 0x528   : > { %v3262_v24 = vmul.f32 %v8099_v47, %v3201_v23  ;;  %v8323_v23 = vadd.f32 %v8112_v8, %v3457_v32 }
 0x52a   : > { %v3458_v34 = vadd.f32 %v3426_v41, %v3262_v24  ;;  %v3563_v63 = vmul.f32 %v8323_v23, %v8323_v23 }
 0x52b   : > { %v3206_v50 = vpop.permute.xlu1 %3205 }
 0x52c   : > { %v3263_v11 = vmul.f32 %v8099_v47, %v3206_v50  ;;  %v3562_v50 = vmul.f32 %v8314_v51, %v8314_v51  ;;  %v8331_v21 = vadd.f32 %v8112_v8, %v3458_v34 }
 0x52e   : > { %v3593_v27 = vadd.f32 %v3592_v61, %v3562_v50  ;;  %v3564_v24 = vmul.f32 %v8331_v21, %v8331_v21 }
 0x530   : > { %v3375_v29 = vpop.permute.xlu1 %3374  ;;  %v3594_v32 = vadd.f32 %v3593_v27, %v3563_v63 }
 0x531   : > { %v3427_v31 = vmul.f32 %v8096_v38, %v3375_v29  ;;  %v3522_v29 = vadd.f32 %v3521_v15, %v8307_v12 }
 0x532   : > { %v3595_v15 = vadd.f32 %v3594_v32, %v3564_v24 }
 0x533   : > { %v3459_v57 = vadd.f32 %v3427_v31, %v3263_v11  ;;  %v3523_v17 = vadd.f32 %v3522_v29, %v8314_v51 }
 0x534   : > { %v3379_v39 = vpop.permute.xlu1 %3378 }
 0x535   : > { %v3428_v45 = vmul.f32 %v8096_v38, %v3379_v39  ;;  %v3226_v39 = vpop.permute.xlu0 %3225  ;;  %v8337_v30 = vadd.f32 %v8112_v8, %v3459_v57  ;;  %v3524_v26 = vadd.f32 %v3523_v17, %v8323_v23 }
 0x536   : > { %v3267_v11 = vmul.f32 %v8099_v47, %v3226_v39 }
 0x537   : > { %v3460_v62 = vadd.f32 %v3428_v45, %v3264_v52  ;;  %v3525_v31 = vadd.f32 %v3524_v26, %v8331_v21  ;;  %v3565_v0 = vmul.f32 %v8337_v30, %v8337_v30 }
 0x539   : > { %v3216_v54 = vpop.permute.xlu1 %3215  ;;  %v3395_v6 = vpop.permute.xlu0 %3394  ;;  %v3596_v35 = vadd.f32 %v3595_v15, %v3565_v0 }
 0x53a   : > { %v3265_v13 = vmul.f32 %v8099_v47, %v3216_v54  ;;  %v8345_v54 = vadd.f32 %v8112_v8, %v3460_v62 }
 0x53c   : > { %v3461_v10 = vadd.f32 %v3429_v43, %v3265_v13  ;;  %v3566_v52 = vmul.f32 %v8345_v54, %v8345_v54  ;;  %v3432_v43 = vmul.f32 %v8096_v38, %v3395_v6 }
 0x53d   : > { %v3221_v16 = vpop.permute.xlu1 %3220 }
 0x53e   : > { %v3266_v40 = vmul.f32 %v8099_v47, %v3221_v16  ;;  %v8351_v25 = vadd.f32 %v8112_v8, %v3461_v10  ;;  %v3526_v16 = vadd.f32 %v3525_v31, %v8337_v30  ;;  %v3597_v17 = vadd.f32 %v3596_v35, %v3566_v52 }
 0x540   : > { %v3527_v29 = vadd.f32 %v3526_v16, %v8345_v54  ;;  %v3567_v50 = vmul.f32 %v8351_v25, %v8351_v25 }
 0x542   : > { %v3387_v9 = vpop.permute.xlu1 %3386  ;;  %v3528_v63 = vadd.f32 %v3527_v29, %v8351_v25 }
 0x543   : > { %v3430_v20 = vmul.f32 %v8096_v38, %v3387_v9  ;;  %v3598_v9 = vadd.f32 %v3597_v17, %v3567_v50 }
 0x545   : > { %v3462_v41 = vadd.f32 %v3430_v20, %v3266_v40 }
 0x546   : > { %v3391_v34 = vpop.permute.xlu1 %3390 }
 0x547   : > { %v3431_v45 = vmul.f32 %v8096_v38, %v3391_v34  ;;  %v8359_v57 = vadd.f32 %v8112_v8, %v3462_v41 }
 0x549   : > { %v3463_v13 = vadd.f32 %v3431_v45, %v3267_v11  ;;  %v3568_v39 = vmul.f32 %v8359_v57, %v8359_v57  ;;  %v3529_v40 = vadd.f32 %v3528_v63, %v8359_v57 }
 0x54b   : > { %v8366_v62 = vadd.f32 %v8112_v8, %v3463_v13  ;;  %v3231_v61 = vpop.permute.xlu1 %3230  ;;  %v3599_v38 = vadd.f32 %v3598_v9, %v3568_v39  ;;  %v8392_v9 = vrot.slane %v8106_v3, %v7134_v28 }
 0x54c   : > { %v3268_v10 = vmul.f32 %v8099_v47, %v3231_v61 }
 0x54d   : > { %v3569_v20 = vmul.f32 %v8366_v62, %v8366_v62  ;;  %v3530_v26 = vadd.f32 %v3529_v40, %v8366_v62  ;;  %v8396_v40 = vrot.slane %v8106_v3, %v7137_v19 }
 0x54e   : > { %v3464_v27 = vadd.f32 %v3432_v43, %v3268_v10 }
 0x54f   : > { %v3600_v41 = vadd.f32 %v3599_v38, %v3569_v20 }
 0x550   : > { %v8377_v24 = vadd.f32 %v8112_v8, %v3464_v27 }
 0x552   : > { %v3531_v32 = vadd.f32 %v3530_v26, %v8377_v24  ;;  %v3570_v31 = vmul.f32 %v8377_v24, %v8377_v24 }
 0x554   : > { %v3532_v47 = vrot.slane %v3531_v32, 4  ;;  %v3601_v0 = vadd.f32 %v3600_v41, %v3570_v31 }
 0x556   : > { %v3533_v34 = vadd.f32 %v3532_v47, %v3531_v32  ;;  %v3602_v11 = vrot.slane %v3601_v0, 4 }
 0x558   : > { %v3534_v45 = vrot.slane %v3533_v34, 2  ;;  %v3603_v15 = vadd.f32 %v3602_v11, %v3601_v0 }
 0x55a   : > { %v3535_v6 = vadd.f32 %v3534_v45, %v3533_v34  ;;  %v3604_v16 = vrot.slane %v3603_v15, 2 }
 0x55c   : > { %v3536_v52 = vrot.slane %v3535_v6, 1  ;;  %v3605_v13 = vadd.f32 %v3604_v16, %v3603_v15 }
 0x55e   : > { %v3537_v35 = vadd.f32 %v3536_v52, %v3535_v6  ;;  %v3606_v29 = vrot.slane %v3605_v13, 1 }
 0x560   : > { %v8382_v8 = vmul.f32 0.00390625, %v3537_v35  ;;  %v3607_v50 = vadd.f32 %v3606_v29, %v3605_v13 }
 0x562   : > { %v3608_v43 = vmul.f32 0.00390625, %v3607_v50  ;;  %v3609_v61 = vmul.f32 %v8382_v8, %v8382_v8  ;;  %v3629_v63 = vsub.f32 %v8273_v7, %v8382_v8  ;;  %v3631_v39 = vsub.f32 %v8286_v48, %v8382_v8 }
 0x563   : > { %v3611_v20 = vsub.f32 %v8119_v4, %v8382_v8  ;;  %v3612_v27 = vsub.f32 %v8123_v46, %v8382_v8  ;;  %v3613_v7 = vsub.f32 %v8139_v22, %v8382_v8  ;;  %v3614_v48 = vsub.f32 %v8134_v37, %v8382_v8 }
 0x564   : > { %v3610_v17 = vsub.f32 %v3608_v43, %v3609_v61  ;;  %v3615_v28 = vsub.f32 %v8153_v14, %v8382_v8  ;;  %v3616_v38 = vsub.f32 %v8150_v55, %v8382_v8  ;;  %v3617_v19 = vsub.f32 %v8175_v44, %v8382_v8 }
 0x565   : > { %v3618_v3 = vsub.f32 %v8170_v33, %v8382_v8  ;;  %v3619_v4 = vsub.f32 %v8188_v59, %v8382_v8  ;;  %v3620_v46 = vsub.f32 %v8193_v2, %v8382_v8  ;;  %v3621_v37 = vsub.f32 %v8204_v49, %v8382_v8 }
 0x566   : > { %v3643_v10 = vadd.f32 1e-05, %v3610_v17  ;;  %v3622_v22 = vsub.f32 %v8211_v53, %v8382_v8  ;;  %v3623_v55 = vsub.f32 %v8225_v18, %v8382_v8  ;;  %v3624_v14 = vsub.f32 %v8222_v58, %v8382_v8 }
 0x567   : > { %v3625_v33 = vsub.f32 %v8245_v60, %v8382_v8  ;;  %v3626_v44 = vsub.f32 %v8242_v56, %v8382_v8  ;;  %v3627_v59 = vsub.f32 %v8260_v1, %v8382_v8  ;;  %v3628_v2 = vsub.f32 %v8264_v42, %v8382_v8 }
 0x568   : > { %5266 = vrsqrt.f32 %v3643_v10  ;;  %v3630_v49 = vsub.f32 %v8279_v36, %v8382_v8  ;;  %v3632_v53 = vsub.f32 %v8302_v5, %v8382_v8  ;;  %v3633_v58 = vsub.f32 %v8307_v12, %v8382_v8 }
 0x569   : > { %v3634_v18 = vsub.f32 %v8314_v51, %v8382_v8  ;;  %v3635_v56 = vsub.f32 %v8323_v23, %v8382_v8  ;;  %v3636_v60 = vsub.f32 %v8331_v21, %v8382_v8  ;;  %v3637_v1 = vsub.f32 %v8337_v30, %v8382_v8 }
 0x56a   : > { %v3638_v42 = vsub.f32 %v8345_v54, %v8382_v8  ;;  %v3639_v5 = vsub.f32 %v8351_v25, %v8382_v8  ;;  %v3640_v12 = vsub.f32 %v8359_v57, %v8382_v8  ;;  %v3641_v51 = vsub.f32 %v8366_v62, %v8382_v8 }
 0x56b   : > { %v3642_v23 = vsub.f32 %v8377_v24, %v8382_v8 }
 0x575   : > { %v5267_v36 = vpop.eup %5266 }
 0x576   : > { %v3645_v21 = vmul.f32 %v5267_v36, %v3611_v20  ;;  %v3646_v26 = vmul.f32 %v5267_v36, %v3612_v27  ;;  %v3647_v41 = vmul.f32 %v5267_v36, %v3613_v7  ;;  %v3648_v30 = vmul.f32 %v5267_v36, %v3614_v48 }
 0x577   : > { %v3649_v32 = vmul.f32 %v5267_v36, %v3615_v28  ;;  %v3650_v31 = vmul.f32 %v5267_v36, %v3616_v38  ;;  %v3651_v54 = vmul.f32 %v5267_v36, %v3617_v19  ;;  %v3652_v47 = vmul.f32 %v5267_v36, %v3618_v3 }
 0x578   : > { %v3653_v0 = vmul.f32 %v5267_v36, %v3619_v4  ;;  %v3654_v34 = vmul.f32 %v5267_v36, %v3620_v46  ;;  %v3655_v25 = vmul.f32 %v5267_v36, %v3621_v37  ;;  %v3656_v11 = vmul.f32 %v5267_v36, %v3622_v22 }
 0x579   : > { %v3657_v45 = vmul.f32 %v5267_v36, %v3623_v55  ;;  %v3658_v57 = vmul.f32 %v5267_v36, %v3624_v14  ;;  %v3659_v15 = vmul.f32 %v5267_v36, %v3625_v33  ;;  %v3660_v6 = vmul.f32 %v5267_v36, %v3626_v44 }
 0x57a   : > { %v3661_v62 = vmul.f32 %v5267_v36, %v3627_v59  ;;  %v3662_v16 = vmul.f32 %v5267_v36, %v3628_v2  ;;  %v3663_v52 = vmul.f32 %v5267_v36, %v3629_v63  ;;  %v3664_v24 = vmul.f32 %v5267_v36, %v3630_v49 }
 0x57b   : > { %v3665_v13 = vmul.f32 %v5267_v36, %v3631_v39  ;;  %v3666_v35 = vmul.f32 %v5267_v36, %v3632_v53  ;;  %v3667_v29 = vmul.f32 %v5267_v36, %v3633_v58  ;;  %v3668_v8 = vmul.f32 %v5267_v36, %v3634_v18 }
 0x57c   : > { %v3669_v50 = vmul.f32 %v5267_v36, %v3635_v56  ;;  %v3670_v43 = vmul.f32 %v5267_v36, %v3636_v60  ;;  %v3671_v61 = vmul.f32 %v5267_v36, %v3637_v1  ;;  %v3672_v17 = vmul.f32 %v5267_v36, %v3638_v42 }
 0x57d   : > { %v3673_v10 = vmul.f32 %v5267_v36, %v3639_v5  ;;  %v3674_v20 = vmul.f32 %v5267_v36, %v3640_v12  ;;  %v3675_v27 = vmul.f32 %v5267_v36, %v3641_v51  ;;  %v3676_v7 = vmul.f32 %v5267_v36, %v3642_v23 }
 0x57e   : > { %v3681_v48 = vmul.f32 %v8392_v9, %v3645_v21  ;;  %v3682_v28 = vmul.f32 %v8392_v9, %v3646_v26  ;;  %v3683_v38 = vmul.f32 %v8392_v9, %v3647_v41  ;;  %v3684_v63 = vmul.f32 %v8392_v9, %v3648_v30 }
 0x57f   : > { %v3685_v39 = vmul.f32 %v8392_v9, %v3649_v32  ;;  %v3686_v19 = vmul.f32 %v8392_v9, %v3650_v31  ;;  %v3687_v3 = vmul.f32 %v8392_v9, %v3651_v54  ;;  %v3688_v4 = vmul.f32 %v8392_v9, %v3652_v47 }
 0x580   : > { %v3689_v46 = vmul.f32 %v8392_v9, %v3653_v0  ;;  %v3690_v37 = vmul.f32 %v8392_v9, %v3654_v34  ;;  %v3691_v22 = vmul.f32 %v8392_v9, %v3655_v25  ;;  %v3692_v55 = vmul.f32 %v8392_v9, %v3656_v11 }
 0x581   : > { %v3693_v14 = vmul.f32 %v8392_v9, %v3657_v45  ;;  %v3694_v33 = vmul.f32 %v8392_v9, %v3658_v57  ;;  %v3695_v44 = vmul.f32 %v8392_v9, %v3659_v15  ;;  %v3696_v59 = vmul.f32 %v8392_v9, %v3660_v6 }
 0x582   : > { %v3697_v2 = vmul.f32 %v8392_v9, %v3661_v62  ;;  %v3698_v49 = vmul.f32 %v8392_v9, %v3662_v16  ;;  %v3699_v53 = vmul.f32 %v8392_v9, %v3663_v52  ;;  %v3700_v58 = vmul.f32 %v8392_v9, %v3664_v24 }
 0x583   : > { %v3701_v18 = vmul.f32 %v8392_v9, %v3665_v13  ;;  %v3702_v56 = vmul.f32 %v8392_v9, %v3666_v35  ;;  %v3703_v60 = vmul.f32 %v8392_v9, %v3667_v29  ;;  %v3704_v1 = vmul.f32 %v8392_v9, %v3668_v8 }
 0x584   : > { %v3705_v42 = vmul.f32 %v8392_v9, %v3669_v50  ;;  %v3706_v36 = vmul.f32 %v8392_v9, %v3670_v43  ;;  %v3707_v5 = vmul.f32 %v8392_v9, %v3671_v61  ;;  %v3708_v12 = vmul.f32 %v8392_v9, %v3672_v17 }
 0x585   : > { %v3709_v51 = vmul.f32 %v8392_v9, %v3673_v10  ;;  %v3710_v23 = vmul.f32 %v8392_v9, %v3674_v20  ;;  %v3711_v21 = vmul.f32 %v8392_v9, %v3675_v27  ;;  %v3712_v26 = vmul.f32 %v8392_v9, %v3676_v7 }
 0x586   : > { %v3717_v41 = vadd.f32 %v8396_v40, %v3681_v48  ;;  %v3718_v30 = vadd.f32 %v8396_v40, %v3682_v28  ;;  %v3719_v32 = vadd.f32 %v8396_v40, %v3683_v38  ;;  %v3720_v31 = vadd.f32 %v8396_v40, %v3684_v63 }
 0x587   : > { %v3721_v54 = vadd.f32 %v8396_v40, %v3685_v39  ;;  %v3722_v47 = vadd.f32 %v8396_v40, %v3686_v19  ;;  %v3723_v0 = vadd.f32 %v8396_v40, %v3687_v3  ;;  %v3724_v34 = vadd.f32 %v8396_v40, %v3688_v4 }
 0x588   : > { %v3725_v25 = vadd.f32 %v8396_v40, %v3689_v46  ;;  %v3726_v9 = vadd.f32 %v8396_v40, %v3690_v37  ;;  %v3727_v11 = vadd.f32 %v8396_v40, %v3691_v22  ;;  %v3728_v45 = vadd.f32 %v8396_v40, %v3692_v55 }
 0x589   : > { %v3729_v57 = vadd.f32 %v8396_v40, %v3693_v14  ;;  %v3730_v15 = vadd.f32 %v8396_v40, %v3694_v33  ;;  %v3731_v6 = vadd.f32 %v8396_v40, %v3695_v44  ;;  %v3732_v62 = vadd.f32 %v8396_v40, %v3696_v59 }
 0x58a   : > { %v3733_v16 = vadd.f32 %v8396_v40, %v3697_v2  ;;  %v3734_v52 = vadd.f32 %v8396_v40, %v3698_v49  ;;  %v3735_v24 = vadd.f32 %v8396_v40, %v3699_v53  ;;  %v3736_v13 = vadd.f32 %v8396_v40, %v3700_v58 }
 0x58b   : > { %v8511_v35 = vadd.f32 %v8396_v40, %v3701_v18  ;;  %v8514_v29 = vadd.f32 %v8396_v40, %v3702_v56  ;;  %v8517_v8 = vadd.f32 %v8396_v40, %v3703_v60  ;;  %v8520_v50 = vadd.f32 %v8396_v40, %v3704_v1 }
 0x58c   : > { %v8523_v43 = vadd.f32 %v8396_v40, %v3705_v42  ;;  %v8526_v61 = vadd.f32 %v8396_v40, %v3706_v36  ;;  %v8529_v17 = vadd.f32 %v8396_v40, %v3707_v5  ;;  %v8532_v10 = vadd.f32 %v8396_v40, %v3708_v12 }
 0x58d   : > { %v8535_v20 = vadd.f32 %v8396_v40, %v3709_v51  ;;  %v8538_v27 = vadd.f32 %v8396_v40, %v3710_v23  ;;  %v8541_v7 = vadd.f32 %v8396_v40, %v3711_v21  ;;  %v8544_v48 = vadd.f32 %v8396_v40, %v3712_v26 }
 0x58e   : > { %v3749_v28 = vmax.f32 %v3717_v41, 0.0  ;;  %v3750_v38 = vmax.f32 %v3718_v30, 0.0  ;;  %v3751_v63 = vmax.f32 %v3719_v32, 0.0  ;;  %v3752_v39 = vmax.f32 %v3720_v31, 0.0 }
 0x58f   : > { %v3753_v19 = vmax.f32 %v3721_v54, 0.0  ;;  %v3754_v3 = vmax.f32 %v3722_v47, 0.0  ;;  %v3755_v4 = vmax.f32 %v3723_v0, 0.0  ;;  %v3756_v46 = vmax.f32 %v3724_v34, 0.0 }
 0x590   : > { %v3757_v37 = vmax.f32 %v3725_v25, 0.0  ;;  %v3758_v22 = vmax.f32 %v3726_v9, 0.0  ;;  %v3759_v55 = vmax.f32 %v3727_v11, 0.0  ;;  %v3760_v14 = vmax.f32 %v3728_v45, 0.0  ;;  %3781 = vst [vmem:[#allocation2 + $0xb0] sm:$0xff] %v3749_v28  ;;  %3782 = vst [vmem:[#allocation2] sm:$0xff] %v3750_v38 }
 0x591   : > { %3783 = vst [vmem:[#allocation2 + $0xd8] sm:$0xff] %v3751_v63  ;;  %3784 = vst [vmem:[#allocation2 + $0x18] sm:$0xff] %v3752_v39  ;;  %v3761_v33 = vmax.f32 %v3729_v57, 0.0  ;;  %v3762_v44 = vmax.f32 %v3730_v15, 0.0  ;;  %v3763_v40 = vmax.f32 %v3731_v6, 0.0  ;;  %v3764_v59 = vmax.f32 %v3732_v62, 0.0 }
 0x592   : > { %3785 = vst [vmem:[#allocation2 + $0x50] sm:$0xff] %v3753_v19  ;;  %3786 = vst [vmem:[#allocation2 + $0x68] sm:$0xff] %v3754_v3  ;;  %v3765_v2 = vmax.f32 %v3733_v16, 0.0  ;;  %v3766_v49 = vmax.f32 %v3734_v52, 0.0  ;;  %v3767_v53 = vmax.f32 %v3735_v24, 0.0  ;;  %v3768_v58 = vmax.f32 %v3736_v13, 0.0 }
 0x593   : > { %3787 = vst [vmem:[#allocation2 + $0x30] sm:$0xff] %v3755_v4  ;;  %3788 = vst [vmem:[#allocation2 + $0x48] sm:$0xff] %v3756_v46  ;;  %v3769_v18 = vmax.f32 %v8511_v35, 0.0  ;;  %v3770_v56 = vmax.f32 %v8514_v29, 0.0  ;;  %v3771_v60 = vmax.f32 %v8517_v8, 0.0  ;;  %v3772_v1 = vmax.f32 %v8520_v50, 0.0 }
 0x594   : > { %3789 = vst [vmem:[#allocation2 + $0x80] sm:$0xff] %v3757_v37  ;;  %3790 = vst [vmem:[#allocation2 + $0x88] sm:$0xff] %v3758_v22  ;;  %v3773_v42 = vmax.f32 %v8523_v43, 0.0  ;;  %v3774_v36 = vmax.f32 %v8526_v61, 0.0  ;;  %v3775_v5 = vmax.f32 %v8529_v17, 0.0  ;;  %v3776_v12 = vmax.f32 %v8532_v10, 0.0 }
 0x595   : > { %3791 = vst [vmem:[#allocation2 + $0xe8] sm:$0xff] %v3759_v55  ;;  %3792 = vst [vmem:[#allocation2 + $0xb8] sm:$0xff] %v3760_v14  ;;  %v3777_v51 = vmax.f32 %v8535_v20, 0.0  ;;  %v3778_v23 = vmax.f32 %v8538_v27, 0.0  ;;  %v3779_v21 = vmax.f32 %v8541_v7, 0.0  ;;  %v3780_v26 = vmax.f32 %v8544_v48, 0.0 }
 0x596   : > { %3793 = vst [vmem:[#allocation2 + $0x60] sm:$0xff] %v3761_v33  ;;  %3794 = vst [vmem:[#allocation2 + $0xf0] sm:$0xff] %v3762_v44 }
 0x597   : > { %3795 = vst [vmem:[#allocation2 + $0x8] sm:$0xff] %v3763_v40  ;;  %3796 = vst [vmem:[#allocation2 + $0x78] sm:$0xff] %v3764_v59 }
 0x598   : > { %3797 = vst [vmem:[#allocation2 + $0x38] sm:$0xff] %v3765_v2  ;;  %3798 = vst [vmem:[#allocation2 + $0x58] sm:$0xff] %v3766_v49 }
 0x599   : > { %3799 = vst [vmem:[#allocation2 + $0x40] sm:$0xff] %v3767_v53  ;;  %3800 = vst [vmem:[#allocation2 + $0xc8] sm:$0xff] %v3768_v58 }
 0x59a   : > { %3801 = vst [vmem:[#allocation2 + $0xe0] sm:$0xff] %v3769_v18  ;;  %3802 = vst [vmem:[#allocation2 + $0x90] sm:$0xff] %v3770_v56 }
 0x59b   : > { %3803 = vst [vmem:[#allocation2 + $0x70] sm:$0xff] %v3771_v60  ;;  %3804 = vst [vmem:[#allocation2 + $0xc0] sm:$0xff] %v3772_v1 }
 0x59c   : > { %3805 = vst [vmem:[#allocation2 + $0xa8] sm:$0xff] %v3773_v42  ;;  %3806 = vst [vmem:[#allocation2 + $0xd0] sm:$0xff] %v3774_v36 }
 0x59d   : > { %3807 = vst [vmem:[#allocation2 + $0x10] sm:$0xff] %v3775_v5  ;;  %3808 = vst [vmem:[#allocation2 + $0x28] sm:$0xff] %v3776_v12 }
 0x59e   : > { %3809 = vst [vmem:[#allocation2 + $0xa0] sm:$0xff] %v3777_v51  ;;  %3810 = vst [vmem:[#allocation2 + $0xf8] sm:$0xff] %v3778_v23 }
 0x59f   : > { %3811 = vst [vmem:[#allocation2 + $0x20] sm:$0xff] %v3779_v21  ;;  %3812 = vst [vmem:[#allocation2 + $0x98] sm:$0xff] %v3780_v26 }
 0x5a0 PF: > { %v3877_v41 = vld [vmem:[%s5539_s15 + $0xf8] sm:$0xff]  ;;  %v3876_v30 = vld [vmem:[%s5539_s15 + $0xf0] sm:$0xff]  ;;  %v3875_v32 = vld [vmem:[%s5539_s15 + $0xe8] sm:$0xff]  ;;  %v5340_v0 = vmov 0.0   ;;  %s4735_s24 = scalar_lea.sflag [#allocation5], %s5529_s22  ;;  %s5341_s29 = smov [#allocation4]  }
 0x5a1   : > { %3897 = vmatprep.subr.mxu0 %v3877_v41  ;;  %v3874_v31 = vld [vmem:[%s5539_s15 + $0xe0] sm:$0xff]  ;;  %5099 = vmatprep.subr.mxu1 %v3877_v41  ;;  %v3873_v54 = vld [vmem:[%s5539_s15 + $0xd8] sm:$0xff]  ;;  %v3872_v47 = vld [vmem:[%s5539_s15 + $0xd0] sm:$0xff]  ;;  %s5277_s30 = sshll.u32 %s5341_s29, 4  ;;  %s5278_s30 = int_to_ptr.vmem [resolvable:$false] %s5277_s30 }
 0x5a2   : > { %3898 = vmatpush1.msra.mxu0 %v3876_v30  ;;  %5115 = vmatpush1.msra.mxu1 %v3876_v30  ;;  %v3871_v34 = vld [vmem:[%s5539_s15 + $0xc8] sm:$0xff]  ;;  %v3870_v25 = vld [vmem:[%s5539_s15 + $0xc0] sm:$0xff]  ;;  %v3869_v9 = vld [vmem:[%s5539_s15 + $0xb8] sm:$0xff]  ;;  %s5279_s5 = scalar_lea.vmem %s5278_s30, 16384 }
 0x5a3   : > { %3899 = vmatprep.subr.mxu0 %v3875_v32  ;;  %3961 = vmatprep.mubr.f32.mxu0 %v5340_v0  ;;  %v3868_v11 = vld [vmem:[%s5539_s15 + $0xb0] sm:$0xff]  ;;  %v3867_v45 = vld [vmem:[%s5539_s15 + $0xa8] sm:$0xff]  ;;  %v3866_v57 = vld [vmem:[%s5539_s15 + $0xa0] sm:$0xff] }
 0x5a4   : > { %3900 = vmatpush1.msra.mxu0 %v3874_v31  ;;  %5100 = vmatprep.subr.mxu1 %v3875_v32  ;;  %v3865_v15 = vld [vmem:[%s5539_s15 + $0x98] sm:$0xff]  ;;  %v3864_v6 = vld [vmem:[%s5539_s15 + $0x90] sm:$0xff]  ;;  %v3863_v62 = vld [vmem:[%s5539_s15 + $0x88] sm:$0xff] }
 0x5a5   : > { %3901 = vmatprep.subr.mxu0 %v3873_v54  ;;  %5116 = vmatpush1.msra.mxu1 %v3874_v31  ;;  %v3862_v16 = vld [vmem:[%s5539_s15 + $0x80] sm:$0xff]  ;;  %v3861_v52 = vld [vmem:[%s5539_s15 + $0x78] sm:$0xff]  ;;  %v3860_v24 = vld [vmem:[%s5539_s15 + $0x70] sm:$0xff] }
 0x5a6   : > { %3902 = vmatpush1.msra.mxu0 %v3872_v47  ;;  %5101 = vmatprep.subr.mxu1 %v3873_v54  ;;  %v3859_v13 = vld [vmem:[%s5539_s15 + $0x68] sm:$0xff]  ;;  %v3858_v35 = vld [vmem:[%s5539_s15 + $0x60] sm:$0xff]  ;;  %v3857_v29 = vld [vmem:[%s5539_s15 + $0x58] sm:$0xff] }
 0x5a7   : > { %3903 = vmatprep.subr.mxu0 %v3871_v34  ;;  %5117 = vmatpush1.msra.mxu1 %v3872_v47  ;;  %v3856_v8 = vld [vmem:[%s5539_s15 + $0x50] sm:$0xff]  ;;  %v3855_v50 = vld [vmem:[%s5539_s15 + $0x48] sm:$0xff]  ;;  %v3854_v43 = vld [vmem:[%s5539_s15 + $0x40] sm:$0xff] }
 0x5a8   : > { %3904 = vmatpush1.msra.mxu0 %v3870_v25  ;;  %5102 = vmatprep.subr.mxu1 %v3871_v34  ;;  %v3853_v61 = vld [vmem:[%s5539_s15 + $0x38] sm:$0xff]  ;;  %v3852_v17 = vld [vmem:[%s5539_s15 + $0x30] sm:$0xff]  ;;  %v3851_v10 = vld [vmem:[%s5539_s15 + $0x28] sm:$0xff] }
 0x5a9   : > { %3905 = vmatprep.subr.mxu0 %v3869_v9  ;;  %5118 = vmatpush1.msra.mxu1 %v3870_v25  ;;  %v3850_v20 = vld [vmem:[%s5539_s15 + $0x20] sm:$0xff]  ;;  %v3849_v27 = vld [vmem:[%s5539_s15 + $0x18] sm:$0xff]  ;;  %v3848_v7 = vld [vmem:[%s5539_s15 + $0x10] sm:$0xff] }
 0x5aa   : > { %3906 = vmatpush1.msra.mxu0 %v3868_v11  ;;  %5103 = vmatprep.subr.mxu1 %v3869_v9  ;;  %v3847_v48 = vld [vmem:[%s5539_s15 + $0x8] sm:$0xff]  ;;  %v3846_v28 = vld [vmem:[%s5539_s15] sm:$0xff]  ;;  %v3814_v38 = vld [vmem:[#allocation2 + $0xb0] sm:$0xff] }
 0x5ab   : > { %3907 = vmatprep.subr.mxu0 %v3867_v45  ;;  %5119 = vmatpush1.msra.mxu1 %v3868_v11  ;;  %v3830_v63 = vld [vmem:[#allocation2 + $0x38] sm:$0xff]  ;;  %v3815_v39 = vld [vmem:[#allocation2] sm:$0xff]  ;;  %v3833_v37 = vld [vmem:[#allocation2 + $0xc8] sm:$0xff] }
 0x5ac   : > { %3908 = vmatpush1.msra.mxu0 %v3866_v57  ;;  %5104 = vmatprep.subr.mxu1 %v3867_v45  ;;  %v3831_v19 = vld [vmem:[#allocation2 + $0x58] sm:$0xff]  ;;  %v3832_v4 = vld [vmem:[#allocation2 + $0x40] sm:$0xff]  ;;  %v3818_v22 = vld [vmem:[#allocation2 + $0x50] sm:$0xff]  ;;  %v3879_v45 = vlaneseq }
 0x5ad   : > { %3909 = vmatprep.subr.mxu0 %v3865_v15  ;;  %5120 = vmatpush1.msra.mxu1 %v3866_v57  ;;  %v3816_v3 = vld [vmem:[#allocation2 + $0xd8] sm:$0xff]  ;;  %v3834_v55 = vld [vmem:[#allocation2 + $0xe0] sm:$0xff]  ;;  %v3819_v14 = vld [vmem:[#allocation2 + $0x68] sm:$0xff] }
 0x5ae   : > { %3910 = vmatpush1.msra.mxu0 %v3864_v6  ;;  %5105 = vmatprep.subr.mxu1 %v3865_v15  ;;  %v3817_v46 = vld [vmem:[#allocation2 + $0x18] sm:$0xff]  ;;  %v3835_v33 = vld [vmem:[#allocation2 + $0x90] sm:$0xff]  ;;  %v3821_v59 = vld [vmem:[#allocation2 + $0x48] sm:$0xff] }
 0x5af   : > { %3911 = vmatprep.subr.mxu0 %v3863_v62  ;;  %5121 = vmatpush1.msra.mxu1 %v3864_v6  ;;  %v3820_v44 = vld [vmem:[#allocation2 + $0x30] sm:$0xff]  ;;  %v3837_v2 = vld [vmem:[#allocation2 + $0xc0] sm:$0xff]  ;;  %v3838_v53 = vld [vmem:[#allocation2 + $0xa8] sm:$0xff] }
 0x5b0   : > { %3912 = vmatpush1.msra.mxu0 %v3862_v16  ;;  %5106 = vmatprep.subr.mxu1 %v3863_v62  ;;  %v3836_v40 = vld [vmem:[#allocation2 + $0x70] sm:$0xff]  ;;  %v3822_v49 = vld [vmem:[#allocation2 + $0x80] sm:$0xff]  ;;  %v3823_v58 = vld [vmem:[#allocation2 + $0x88] sm:$0xff]  ;;  %v8634_v62 = vshrl.u32 %v3879_v45, 7 }
 0x5b1   : > { %3913 = vmatprep.subr.mxu0 %v3861_v52  ;;  %5122 = vmatpush1.msra.mxu1 %v3862_v16  ;;  %v3839_v18 = vld [vmem:[#allocation2 + $0xd0] sm:$0xff]  ;;  %v3824_v56 = vld [vmem:[#allocation2 + $0xe8] sm:$0xff]  ;;  %v3825_v1 = vld [vmem:[#allocation2 + $0xb8] sm:$0xff] }
 0x5b2   : > { %3914 = vmatpush1.msra.mxu0 %v3860_v24  ;;  %5107 = vmatprep.subr.mxu1 %v3861_v52  ;;  %v3840_v60 = vld [vmem:[#allocation2 + $0x10] sm:$0xff]  ;;  %v3841_v42 = vld [vmem:[#allocation2 + $0x28] sm:$0xff]  ;;  %v3826_v36 = vld [vmem:[#allocation2 + $0x60] sm:$0xff] }
 0x5b3   : > { %3915 = vmatprep.subr.mxu0 %v3859_v13  ;;  %5123 = vmatpush1.msra.mxu1 %v3860_v24  ;;  %v3842_v5 = vld [vmem:[#allocation2 + $0xa0] sm:$0xff]  ;;  %v3827_v12 = vld [vmem:[#allocation2 + $0xf0] sm:$0xff]  ;;  %v3843_v51 = vld [vmem:[#allocation2 + $0xf8] sm:$0xff] }
 0x5b4   : > { %3916 = vmatpush1.msra.mxu0 %v3858_v35  ;;  %5108 = vmatprep.subr.mxu1 %v3859_v13  ;;  %v3828_v23 = vld [vmem:[#allocation2 + $0x8] sm:$0xff]  ;;  %v3844_v21 = vld [vmem:[#allocation2 + $0x20] sm:$0xff]  ;;  %v3829_v26 = vld [vmem:[#allocation2 + $0x78] sm:$0xff] }
 0x5b5   : > { %3917 = vmatprep.subr.mxu0 %v3857_v29  ;;  %5124 = vmatpush1.msra.mxu1 %v3858_v35  ;;  %v3845_v41 = vld [vmem:[#allocation2 + $0x98] sm:$0xff]  ;;  %v3881_v35 = vsub.s32 0, %v8634_v62 }
 0x5b6   : > { %3918 = vmatpush1.msra.mxu0 %v3856_v8  ;;  %5109 = vmatprep.subr.mxu1 %v3857_v29  ;;  %v8642_v29 = vld [vmem:[%s5537_s14] sm:$0x77]  ;;  %s4884_s14 = sshll.u32 %s5426_s21, 8  ;;  %s4748_s21 = sshll.u32 %s5541_s16, 4  ;;  %s9866_s21 = int_to_ptr.vmem [resolvable:$true] %s4748_s21 }
 0x5b7   : > { %3919 = vmatprep.subr.mxu0 %v3855_v50  ;;  %5125 = vmatpush1.msra.mxu1 %v3856_v8  ;;  %v3885_v8 = vsub.s32 4, %v8634_v62  ;;  %s9852_s12 = scalar_lea.hbm %s9929_s10, %s4884_s14  ;;  %s5273_s25 = scalar_lea.vmem %s9866_s21, 8192 }
 0x5b8   : > { %3920 = vmatpush1.msra.mxu0 %v3854_v43  ;;  %5110 = vmatprep.subr.mxu1 %v3855_v50  ;;  %p5274_p1 = scmp.ne.s32.totalorder %s9866_s21, %s5273_s25  ;;  %p5280_p4 = scmp.lt.s32.totalorder %s9866_s21, %s5278_s30 }
 0x5b9   : > { %3921 = vmatprep.subr.mxu0 %v3853_v61  ;;  %5126 = vmatpush1.msra.mxu1 %v3854_v43  ;;  %p5281_p5 = scmp.lt.s32.totalorder %s5279_s5, %s5273_s25 }
 0x5ba   : > { %3922 = vmatpush1.msra.mxu0 %v3852_v17  ;;  %5111 = vmatprep.subr.mxu1 %v3853_v61  ;;  %p5275_p2 = pnand %p5274_p1, %p5444_p6 }
 0x5bb   : > { %3923 = vmatprep.subr.mxu0 %v3851_v10  ;;  %5127 = vmatpush1.msra.mxu1 %v3852_v17  ;;  %p5282_p7 = por %p5281_p5, %p5280_p4 }
 0x5bc   : > { %3924 = vmatpush1.msra.mxu0 %v3850_v20  ;;  %5112 = vmatprep.subr.mxu1 %v3851_v10  ;;  %v3882_v10 = vrot.slane %v8642_v29, %v3881_v35  ;;  %p5276_p3 = pneg %p5275_p2 }
 0x5bd   : > { %3925 = vmatprep.subr.mxu0 %v3849_v27  ;;  %5128 = vmatpush1.msra.mxu1 %v3850_v20  ;;  %v3886_v20 = vrot.slane %v8642_v29, %v3885_v8 }
 0x5be   : > { %3926 = vmatpush1.msra.mxu0 %v3848_v7  ;;  %5113 = vmatprep.subr.mxu1 %v3849_v27  ;;  %p5283_p9 = pnand %p5282_p7, %p5276_p3 }
 0x5bf   : > { %3927 = vmatprep.subr.mxu0 %v3847_v48  ;;  %5129 = vmatpush1.msra.mxu1 %v3848_v7 }
 0x5c0   : > { %3928 = vmatpush1.msra.mxu0 %v3846_v28  ;;  %5114 = vmatprep.subr.mxu1 %v3847_v48 }
 0x5c1   : > { %3962 = vmatmul.mubr.f32.vlgmr.msra.gmra.mxu0 %v3814_v38  ;;  %5130 = vmatpush1.msra.mxu1 %v3846_v28  ;;  %v8655_v38 = vrot.slane %v3882_v10, %v3881_v35 }
 0x5c2   : > { %3967 = vmatprep.mubr.f32.mxu0 %v5340_v0  ;;  %4057 = vmatprep.mubr.f32.mxu1 %v5340_v0 }
 0x5c3   : > { %4058 = vmatmul.mubr.f32.vlgmr.msra.gmra.mxu1 %v3830_v63  ;;  %v8657_v63 = vrot.slane %v3886_v20, %v3881_v35 }
 0x5c4   : > { %4063 = vmatprep.mubr.f32.mxu1 %v5340_v0 }
 0x5c5   : > { %3968 = vmatmul.mubr.f32.gmra.mxu0 %v3815_v39 }
 0x5c6   : > { %3973 = vmatprep.mubr.f32.mxu0 %v5340_v0 }
 0x5c7   : > { %4064 = vmatmul.mubr.f32.gmra.mxu1 %v3831_v19 }
 0x5c8   : > { %4069 = vmatprep.mubr.f32.mxu1 %v5340_v0 }
 0x5c9   : > { %3974 = vmatmul.mubr.f32.gmra.mxu0 %v3816_v3 }
 0x5ca   : > { %3979 = vmatprep.mubr.f32.mxu0 %v5340_v0 }
 0x5cb   : > { %4070 = vmatmul.mubr.f32.gmra.mxu1 %v3832_v4 }
 0x5cc   : > { %4075 = vmatprep.mubr.f32.mxu1 %v5340_v0 }
 0x5cd   : > { %3980 = vmatmul.mubr.f32.gmra.mxu0 %v3817_v46 }
 0x5ce   : > { %3985 = vmatprep.mubr.f32.mxu0 %v5340_v0 }
 0x5cf   : > { %4076 = vmatmul.mubr.f32.gmra.mxu1 %v3833_v37 }
 0x5d0   : > { %4081 = vmatprep.mubr.f32.mxu1 %v5340_v0 }
 0x5d1   : > { %3986 = vmatmul.mubr.f32.gmra.mxu0 %v3818_v22 }
 0x5d2   : > { %3991 = vmatprep.mubr.f32.mxu0 %v5340_v0 }
 0x5d3   : > { %4082 = vmatmul.mubr.f32.gmra.mxu1 %v3834_v55 }
 0x5d4   : > { %4087 = vmatprep.mubr.f32.mxu1 %v5340_v0 }
 0x5d5   : > { %3992 = vmatmul.mubr.f32.gmra.mxu0 %v3819_v14 }
 0x5d6   : > { %3997 = vmatprep.mubr.f32.mxu0 %v5340_v0 }
 0x5d7   : > { %4088 = vmatmul.mubr.f32.gmra.mxu1 %v3835_v33 }
 0x5d8   : > { %4093 = vmatprep.mubr.f32.mxu1 %v5340_v0 }
 0x5d9   : > { %3998 = vmatmul.mubr.f32.gmra.mxu0 %v3820_v44 }
 0x5da   : > { %4003 = vmatprep.mubr.f32.mxu0 %v5340_v0 }
 0x5db   : > { %4094 = vmatmul.mubr.f32.gmra.mxu1 %v3836_v40 }
 0x5dc   : > { %4099 = vmatprep.mubr.f32.mxu1 %v5340_v0 }
 0x5dd   : > { %4004 = vmatmul.mubr.f32.gmra.mxu0 %v3821_v59 }
 0x5de   : > { %4009 = vmatprep.mubr.f32.mxu0 %v5340_v0 }
 0x5df   : > { %4100 = vmatmul.mubr.f32.gmra.mxu1 %v3837_v2 }
 0x5e0   : > { %4105 = vmatprep.mubr.f32.mxu1 %v5340_v0 }
 0x5e1   : > { %4010 = vmatmul.mubr.f32.gmra.mxu0 %v3822_v49 }
 0x5e2   : > { %4015 = vmatprep.mubr.f32.mxu0 %v5340_v0 }
 0x5e3   : > { %4106 = vmatmul.mubr.f32.gmra.mxu1 %v3838_v53 }
 0x5e4   : > { %4111 = vmatprep.mubr.f32.mxu1 %v5340_v0 }
 0x5e5   : > { %4016 = vmatmul.mubr.f32.gmra.mxu0 %v3823_v58 }
 0x5e6   : > { %4021 = vmatprep.mubr.f32.mxu0 %v5340_v0 }
 0x5e7   : > { %4112 = vmatmul.mubr.f32.gmra.mxu1 %v3839_v18 }
 0x5e8   : > { %4117 = vmatprep.mubr.f32.mxu1 %v5340_v0 }
 0x5e9   : > { %4022 = vmatmul.mubr.f32.gmra.mxu0 %v3824_v56 }
 0x5ea   : > { %4027 = vmatprep.mubr.f32.mxu0 %v5340_v0 }
 0x5eb   : > { %4118 = vmatmul.mubr.f32.gmra.mxu1 %v3840_v60 }
 0x5ec   : > { %4123 = vmatprep.mubr.f32.mxu1 %v5340_v0 }
 0x5ed   : > { %4028 = vmatmul.mubr.f32.gmra.mxu0 %v3825_v1 }
 0x5ee   : > { %4033 = vmatprep.mubr.f32.mxu0 %v5340_v0 }
 0x5ef   : > { %4124 = vmatmul.mubr.f32.gmra.mxu1 %v3841_v42 }
 0x5f0   : > { %4129 = vmatprep.mubr.f32.mxu1 %v5340_v0 }
 0x5f1   : > { %4034 = vmatmul.mubr.f32.gmra.mxu0 %v3826_v36 }
 0x5f2   : > { %4039 = vmatprep.mubr.f32.mxu0 %v5340_v0 }
 0x5f3   : > { %4130 = vmatmul.mubr.f32.gmra.mxu1 %v3842_v5 }
 0x5f4   : > { %4135 = vmatprep.mubr.f32.mxu1 %v5340_v0 }
 0x5f5   : > { %4040 = vmatmul.mubr.f32.gmra.mxu0 %v3827_v12 }
 0x5f6   : > { %4045 = vmatprep.mubr.f32.mxu0 %v5340_v0 }
 0x5f7   : > { %4136 = vmatmul.mubr.f32.gmra.mxu1 %v3843_v51 }
 0x5f8   : > { %4141 = vmatprep.mubr.f32.mxu1 %v5340_v0 }
 0x5f9   : > { %4046 = vmatmul.mubr.f32.gmra.mxu0 %v3828_v23 }
 0x5fa   : > { %4051 = vmatprep.mubr.f32.mxu0 %v5340_v0 }
 0x5fb   : > { %4142 = vmatmul.mubr.f32.gmra.mxu1 %v3844_v21 }
 0x5fc   : > { %4147 = vmatprep.mubr.f32.mxu1 %v5340_v0 }
 0x5fd   : > { %4052 = vmatmul.mubr.f32.gmra.mxu0 %v3829_v26 }
 0x5ff   : > { %4148 = vmatmul.mubr.f32.gmra.mxu1 %v3845_v41 }
 0x681   : > { %v3963_v30 = vpop.f32.mrf.mxu0 }
 0x682   : > { %v8670_v22 = vadd.f32 %v3963_v30, %v8655_v38 }
 0x683   : > { %v3965_v32 = vpop.f32.mrf.mxu0  ;;  %v8622_v31 = vpop.f32.mrf.mxu1 }
 0x684   : > { %v8676_v14 = vadd.f32 %v3965_v32, %v8657_v63  ;;  %v4230_v56 = vmul.f32 %v8670_v22, %v8670_v22 }
 0x685   : > { %v3969_v54 = vpop.f32.mrf.mxu0  ;;  %v8624_v47 = vpop.f32.mrf.mxu1 }
 0x686   : > { %v8662_v3 = vadd.f32 %v3969_v54, %v8655_v38  ;;  %v4231_v42 = vmul.f32 %v8676_v14, %v8676_v14 }
 0x687   : > { %v3971_v34 = vpop.f32.mrf.mxu0  ;;  %v8626_v25 = vpop.f32.mrf.mxu1 }
 0x688   : > { %v8665_v4 = vadd.f32 %v3971_v34, %v8657_v63  ;;  %v4232_v59 = vmul.f32 %v8662_v3, %v8662_v3  ;;  %v4154_v36 = vadd.f32 %v8662_v3, %v8670_v22 }
 0x689   : > { %v3975_v9 = vpop.f32.mrf.mxu0  ;;  %v8628_v11 = vpop.f32.mrf.mxu1 }
 0x68a   : > { %10000 = vst [vmem:[#allocation10_spill] sm:$0xff] %v8665_v4  ;;  %v8673_v55 = vadd.f32 %v3975_v9, %v8655_v38  ;;  %v4233_v49 = vmul.f32 %v8665_v4, %v8665_v4  ;;  %v4294_v21 = vadd.f32 %v4232_v59, %v4230_v56  ;;  %v4191_v26 = vadd.f32 %v8665_v4, %v8676_v14 }
 0x68b   : > { %v3977_v57 = vpop.f32.mrf.mxu0  ;;  %v8630_v0 = vpop.f32.mrf.mxu1 }
 0x68c   : > { %v8679_v33 = vadd.f32 %v3977_v57, %v8657_v63  ;;  %v4234_v60 = vmul.f32 %v8673_v55, %v8673_v55  ;;  %v4331_v32 = vadd.f32 %v4233_v49, %v4231_v42  ;;  %v4155_v54 = vadd.f32 %v4154_v36, %v8673_v55 }
 0x68d   : > { %v3981_v15 = vpop.f32.mrf.mxu0  ;;  %v8632_v6 = vpop.f32.mrf.mxu1 }
 0x68e   : > { %10001 = vst [vmem:[#allocation11_spill] sm:$0xff] %v8679_v33  ;;  %v8686_v2 = vadd.f32 %v3981_v15, %v8655_v38  ;;  %v4235_v5 = vmul.f32 %v8679_v33, %v8679_v33  ;;  %v4295_v15 = vadd.f32 %v4294_v21, %v4234_v60  ;;  %v4192_v35 = vadd.f32 %v4191_v26, %v8679_v33 }
 0x68f   : > { %v3983_v16 = vpop.f32.mrf.mxu0  ;;  %v8636_v52 = vpop.f32.mrf.mxu1 }
 0x690   : > { %v8691_v53 = vadd.f32 %v3983_v16, %v8657_v63  ;;  %v4236_v41 = vmul.f32 %v8686_v2, %v8686_v2  ;;  %v4332_v8 = vadd.f32 %v4331_v32, %v4235_v5 }
 0x691   : > { %v3987_v24 = vpop.f32.mrf.mxu0  ;;  %v8638_v13 = vpop.f32.mrf.mxu1 }
 0x692   : > { %10002 = vst [vmem:[#allocation12_spill] sm:$0xff] %v8691_v53  ;;  %v8700_v1 = vadd.f32 %v3987_v24, %v8655_v38  ;;  %v4237_v34 = vmul.f32 %v8691_v53, %v8691_v53  ;;  %v4193_v56 = vadd.f32 %v4192_v35, %v8691_v53 }
 0x693   : > { %v3989_v50 = vpop.f32.mrf.mxu0  ;;  %v8645_v43 = vpop.f32.mrf.mxu1 }
 0x694   : > { %v8709_v12 = vadd.f32 %v3989_v50, %v8657_v63  ;;  %v4238_v16 = vmul.f32 %v8700_v1, %v8700_v1  ;;  %v4156_v50 = vadd.f32 %v4155_v54, %v8686_v2  ;;  %v4333_v60 = vadd.f32 %v4332_v8, %v4237_v34 }
 0x695   : > { %v3993_v61 = vpop.f32.mrf.mxu0  ;;  %v8647_v17 = vpop.f32.mrf.mxu1 }
 0x696   : > { %10003 = vst [vmem:[#allocation13_spill] sm:$0xff] %v8709_v12  ;;  %v8718_v30 = vadd.f32 %v3993_v61, %v8655_v38  ;;  %v4239_v61 = vmul.f32 %v8709_v12, %v8709_v12  ;;  %v4157_v42 = vadd.f32 %v4156_v50, %v8700_v1  ;;  %v4194_v32 = vadd.f32 %v4193_v56, %v8709_v12 }
 0x697   : > { %v3995_v27 = vpop.f32.mrf.mxu0  ;;  %v8651_v7 = vpop.f32.mrf.mxu1 }
 0x698   : > { %v8724_v9 = vadd.f32 %v3995_v27, %v8657_v63  ;;  %v4296_v27 = vadd.f32 %v4295_v15, %v4236_v41  ;;  %v4240_v59 = vmul.f32 %v8718_v30, %v8718_v30  ;;  %v4334_v54 = vadd.f32 %v4333_v60, %v4239_v61 }
 0x699   : > { %v3999_v48 = vpop.f32.mrf.mxu0  ;;  %v8653_v28 = vpop.f32.mrf.mxu1  ;;  %v4158_v34 = vadd.f32 %v4157_v42, %v8718_v30 }
 0x69a   : > { %10004 = vst [vmem:[#allocation14_spill] sm:$0xff] %v8724_v9  ;;  %v8731_v24 = vadd.f32 %v3999_v48, %v8655_v38  ;;  %v4241_v36 = vmul.f32 %v8724_v9, %v8724_v9  ;;  %v4297_v21 = vadd.f32 %v4296_v27, %v4238_v16 }
 0x69b   : > { %v4001_v39 = vpop.f32.mrf.mxu0  ;;  %v8659_v19 = vpop.f32.mrf.mxu1 }
 0x69c   : > { %v8742_v49 = vadd.f32 %v4001_v39, %v8657_v63  ;;  %v4242_v26 = vmul.f32 %v8731_v24, %v8731_v24  ;;  %v4298_v35 = vadd.f32 %v4297_v21, %v4240_v59  ;;  %v4335_v50 = vadd.f32 %v4334_v54, %v4241_v36 }
 0x69d   : > { %v4005_v46 = vpop.f32.mrf.mxu0  ;;  %v8667_v37 = vpop.f32.mrf.mxu1  ;;  %v4159_v56 = vadd.f32 %v4158_v34, %v8731_v24 }
 0x69e   : > { %10005 = vst [vmem:[#allocation15_spill] sm:$0xff] %v8742_v49  ;;  %v8745_v48 = vadd.f32 %v4005_v46, %v8655_v38  ;;  %v4243_v16 = vmul.f32 %v8742_v49, %v8742_v49  ;;  %v4299_v60 = vadd.f32 %v4298_v35, %v4242_v26 }
 0x69f   : > { %v4007_v44 = vpop.f32.mrf.mxu0  ;;  %v8681_v40 = vpop.f32.mrf.mxu1 }
 0x6a0   : > { %v8754_v41 = vadd.f32 %v4007_v44, %v8657_v63  ;;  %v4244_v8 = vmul.f32 %v8745_v48, %v8745_v48  ;;  %v4336_v54 = vadd.f32 %v4335_v50, %v4243_v16  ;;  %v4160_v26 = vadd.f32 %v4159_v56, %v8745_v48 }
 0x6a1   : > { %v4011_v58 = vpop.f32.mrf.mxu0  ;;  %v8693_v18 = vpop.f32.mrf.mxu1 }
 0x6a2   : > { %10006 = vst [vmem:[#allocation16_spill] sm:$0xff] %v8754_v41  ;;  %v8757_v39 = vadd.f32 %v4011_v58, %v8655_v38  ;;  %v4195_v58 = vadd.f32 %v4194_v32, %v8724_v9  ;;  %v4245_v59 = vmul.f32 %v8754_v41, %v8754_v41  ;;  %v4300_v34 = vadd.f32 %v4299_v60, %v4244_v8 }
 0x6a3   : > { %v4013_v51 = vpop.f32.mrf.mxu0  ;;  %v8711_v23 = vpop.f32.mrf.mxu1 }
 0x6a4   : > { %v8768_v44 = vadd.f32 %v4013_v51, %v8657_v63  ;;  %v4246_v42 = vmul.f32 %v8757_v39, %v8757_v39  ;;  %v4196_v51 = vadd.f32 %v4195_v58, %v8742_v49  ;;  %v4337_v49 = vadd.f32 %v4336_v54, %v4245_v59 }
 0x6a5   : > { %v4017_v45 = vpop.f32.mrf.mxu0  ;;  %v8726_v57 = vpop.f32.mrf.mxu1  ;;  %v4161_v16 = vadd.f32 %v4160_v26, %v8757_v39 }
 0x6a6   : > { %10007 = vst [vmem:[#allocation17_spill] sm:$0xff] %v8768_v44  ;;  %v8772_v27 = vadd.f32 %v4017_v45, %v8655_v38  ;;  %v4247_v35 = vmul.f32 %v8768_v44, %v8768_v44  ;;  %v4301_v50 = vadd.f32 %v4300_v34, %v4246_v42 }
 0x6a7   : > { %v4019_v10 = vpop.f32.mrf.mxu0  ;;  %v8737_v20 = vpop.f32.mrf.mxu1 }
 0x6a8   : > { %v8783_v32 = vadd.f32 %v4019_v10, %v8657_v63  ;;  %v4248_v9 = vmul.f32 %v8772_v27, %v8772_v27  ;;  %v4162_v42 = vadd.f32 %v4161_v16, %v8772_v27 }
 0x6a9   : > { %v4023_v5 = vpop.f32.mrf.mxu0  ;;  %v8759_v46 = vpop.f32.mrf.mxu1 }
 0x6aa   : > { %10008 = vst [vmem:[#allocation18_spill] sm:$0xff] %v8783_v32  ;;  %v8786_v45 = vadd.f32 %v4023_v5, %v8655_v38  ;;  %v4197_v5 = vadd.f32 %v4196_v51, %v8754_v41  ;;  %v4249_v56 = vmul.f32 %v8783_v32, %v8783_v32  ;;  %v4338_v51 = vadd.f32 %v4337_v49, %v4247_v35 }
 0x6ab   : > { %v4025_v15 = vpop.f32.mrf.mxu0  ;;  %v8779_v21 = vpop.f32.mrf.mxu1  ;;  %v4302_v54 = vadd.f32 %v4301_v50, %v4248_v9 }
 0x6ac   : > { %v8794_v12 = vadd.f32 %v4025_v15, %v8657_v63  ;;  %v4250_v60 = vmul.f32 %v8786_v45, %v8786_v45  ;;  %v4198_v59 = vadd.f32 %v4197_v5, %v8768_v44  ;;  %v4163_v33 = vadd.f32 %v4162_v42, %v8786_v45 }
 0x6ad   : > { %v4029_v61 = vpop.f32.mrf.mxu0  ;;  %v8801_v8 = vpop.f32.mrf.mxu1  ;;  %v4339_v9 = vadd.f32 %v4338_v51, %v4249_v56  ;;  %v8835_v44 = vadd.f32 %v8622_v31, %v8655_v38 }
 0x6ae   : > { %10009 = vst [vmem:[#allocation19_spill] sm:$0xff] %v8794_v12  ;;  %v8797_v10 = vadd.f32 %v4029_v61, %v8655_v38  ;;  %v4251_v26 = vmul.f32 %v8794_v12, %v8794_v12  ;;  %v4303_v35 = vadd.f32 %v4302_v54, %v4250_v60 }
 0x6af   : > { %v4031_v36 = vpop.f32.mrf.mxu0  ;;  %v8827_v49 = vpop.f32.mrf.mxu1 }
 0x6b0   : > { %v8808_v15 = vadd.f32 %v4031_v36, %v8657_v63  ;;  %v4252_v34 = vmul.f32 %v8797_v10, %v8797_v10  ;;  %v4164_v42 = vadd.f32 %v4163_v33, %v8797_v10  ;;  %v4340_v56 = vadd.f32 %v4339_v9, %v4251_v26 }
 0x6b1   : > { %v4035_v58 = vpop.f32.mrf.mxu0  ;;  %v8851_v33 = vpop.f32.mrf.mxu1 }
 0x6b2   : > { %10010 = vst [vmem:[#allocation20_spill] sm:$0xff] %v8808_v15  ;;  %v8811_v61 = vadd.f32 %v4035_v58, %v8655_v38  ;;  %v4199_v58 = vadd.f32 %v4198_v59, %v8783_v32  ;;  %v4253_v16 = vmul.f32 %v8808_v15, %v8808_v15  ;;  %v4304_v60 = vadd.f32 %v4303_v35, %v4252_v34 }
 0x6b3   : > { %v4037_v53 = vpop.f32.mrf.mxu0 }
 0x6b4   : > { %v8820_v41 = vadd.f32 %v4037_v53, %v8657_v63  ;;  %v4254_v50 = vmul.f32 %v8811_v61, %v8811_v61  ;;  %v4200_v59 = vadd.f32 %v4199_v58, %v8794_v12  ;;  %v4165_v31 = vadd.f32 %v4164_v42, %v8811_v61 }
 0x6b5   : > { %v4041_v36 = vpop.f32.mrf.mxu0 }
 0x6b6   : > { %10011 = vst [vmem:[#allocation21_spill] sm:$0xff] %v8820_v41  ;;  %v8825_v5 = vadd.f32 %v4041_v36, %v8655_v38  ;;  %v4255_v51 = vmul.f32 %v8820_v41, %v8820_v41  ;;  %v4201_v4 = vadd.f32 %v4200_v59, %v8808_v15  ;;  %v4305_v12 = vadd.f32 %v4304_v60, %v4254_v50 }
 0x6b7   : > { %v4043_v53 = vpop.f32.mrf.mxu0 }
 0x6b8   : > { %v8840_v36 = vadd.f32 %v4043_v53, %v8657_v63  ;;  %v4256_v54 = vmul.f32 %v8825_v5, %v8825_v5  ;;  %v4341_v53 = vadd.f32 %v4340_v56, %v4253_v16  ;;  %v4202_v9 = vadd.f32 %v4201_v4, %v8820_v41  ;;  %v8871_v41 = vpop.f32.mrf.mxu1 }
 0x6b9   : > { %v4047_v32 = vpop.f32.mrf.mxu0  ;;  %v4166_v35 = vadd.f32 %v4165_v31, %v8825_v5 }
 0x6ba   : > { %10012 = vst [vmem:[#allocation22_spill] sm:$0xff] %v8840_v36  ;;  %v8849_v58 = vadd.f32 %v4047_v32, %v8655_v38  ;;  %v4257_v26 = vmul.f32 %v8840_v36, %v8840_v36  ;;  %v4262_v32 = vmul.f32 %v8835_v44, %v8835_v44  ;;  %v4342_v15 = vadd.f32 %v4341_v53, %v4255_v51 }
 0x6bb   : > { %v4049_v34 = vpop.f32.mrf.mxu0  ;;  %v4306_v16 = vadd.f32 %v4305_v12, %v4256_v54  ;;  %v4203_v56 = vadd.f32 %v4202_v9, %v8840_v36  ;;  %v8879_v12 = vadd.f32 %v8626_v25, %v8655_v38  ;;  %v8894_v25 = vadd.f32 %v8630_v0, %v8655_v38 }
 0x6bc   : > { %v4258_v59 = vmul.f32 %v8849_v58, %v8849_v58  ;;  %v8860_v42 = vadd.f32 %v4049_v34, %v8657_v63  ;;  %v4167_v60 = vadd.f32 %v4166_v35, %v8849_v58  ;;  %v8875_v34 = vadd.f32 %v8624_v47, %v8657_v63 }
 0x6bd   : > { %v4053_v50 = vpop.f32.mrf.mxu0  ;;  %v4343_v51 = vadd.f32 %v4342_v15, %v4257_v26  ;;  %v8890_v47 = vadd.f32 %v8628_v11, %v8657_v63  ;;  %v8898_v15 = vadd.f32 %v8632_v6, %v8657_v63  ;;  %v4264_v0 = vmul.f32 %v8879_v12, %v8879_v12 }
 0x6be   : > { %10013 = vst [vmem:[#allocation23_spill] sm:$0xff] %v8860_v42  ;;  %v4259_v4 = vmul.f32 %v8860_v42, %v8860_v42  ;;  %v8869_v31 = vadd.f32 %v4053_v50, %v8655_v38  ;;  %10014 = vst [vmem:[#allocation24_spill] sm:$0xff] %v8875_v34  ;;  %v4307_v54 = vadd.f32 %v4306_v16, %v4258_v59 }
 0x6bf   : > { %v4055_v53 = vpop.f32.mrf.mxu0  ;;  %v4204_v9 = vadd.f32 %v4203_v56, %v8860_v42  ;;  %10016 = vst [vmem:[#allocation26_spill] sm:$0xff] %v8890_v47  ;;  %10017 = vst [vmem:[#allocation27_spill] sm:$0xff] %v8898_v15  ;;  %v4263_v11 = vmul.f32 %v8875_v34, %v8875_v34  ;;  %v8912_v6 = vadd.f32 %v8636_v52, %v8655_v38 }
 0x6c0   : > { %v4168_v35 = vadd.f32 %v4167_v60, %v8869_v31  ;;  %v4260_v50 = vmul.f32 %v8869_v31, %v8869_v31  ;;  %v8886_v36 = vadd.f32 %v4055_v53, %v8657_v63  ;;  %v4344_v26 = vadd.f32 %v4343_v51, %v4259_v4  ;;  %v8904_v53 = vpop.f32.mrf.mxu1 }
 0x6c1   : > { %v8916_v4 = vadd.f32 %v8638_v13, %v8657_v63  ;;  %v4267_v52 = vmul.f32 %v8898_v15, %v8898_v15  ;;  %v8928_v42 = vadd.f32 %v8645_v43, %v8655_v38  ;;  %v8944_v43 = vadd.f32 %v8651_v7, %v8655_v38 }
 0x6c2   : > { %10015 = vst [vmem:[#allocation25_spill] sm:$0xff] %v8886_v36  ;;  %v4169_v59 = vadd.f32 %v4168_v35, %v8835_v44  ;;  %v4308_v16 = vadd.f32 %v4307_v54, %v4260_v50  ;;  %v4205_v56 = vadd.f32 %v4204_v9, %v8886_v36  ;;  %v4261_v60 = vmul.f32 %v8886_v36, %v8886_v36 }
 0x6c3   : > { %10018 = vst [vmem:[#allocation28_spill] sm:$0xff] %v8916_v4  ;;  %v4265_v50 = vmul.f32 %v8890_v47, %v8890_v47  ;;  %v4266_v36 = vmul.f32 %v8894_v25, %v8894_v25  ;;  %v8960_v7 = vadd.f32 %v8667_v37, %v8657_v63  ;;  %v8974_v37 = vadd.f32 %v8693_v18, %v8657_v63 }
 0x6c4   : > { %v4170_v51 = vadd.f32 %v4169_v59, %v8879_v12  ;;  %v4309_v54 = vadd.f32 %v4308_v16, %v4262_v32  ;;  %v4206_v9 = vadd.f32 %v4205_v56, %v8875_v34  ;;  %v4345_v35 = vadd.f32 %v4344_v26, %v4261_v60  ;;  %v8932_v26 = vpop.f32.mrf.mxu1 }
 0x6c5   : > { %v4268_v56 = vmul.f32 %v8912_v6, %v8912_v6  ;;  %v4269_v60 = vmul.f32 %v8916_v4, %v8916_v4  ;;  %v8940_v34 = vadd.f32 %v8647_v17, %v8657_v63  ;;  %v8956_v17 = vadd.f32 %v8659_v19, %v8655_v38  ;;  %10021 = vst [vmem:[#allocation31_spill] sm:$0xff] %v8960_v7 }
 0x6c6   : > { %v4171_v13 = vadd.f32 %v4170_v51, %v8894_v25  ;;  %v4310_v59 = vadd.f32 %v4309_v54, %v4264_v0  ;;  %v4207_v32 = vadd.f32 %v4206_v9, %v8890_v47  ;;  %v4346_v16 = vadd.f32 %v4345_v35, %v4263_v11  ;;  %10022 = vst [vmem:[#allocation32_spill] sm:$0xff] %v8974_v37 }
 0x6c7   : > { %10019 = vst [vmem:[#allocation29_spill] sm:$0xff] %v8940_v34  ;;  %v4270_v9 = vmul.f32 %v8928_v42, %v8928_v42  ;;  %v8952_v35 = vadd.f32 %v8653_v28, %v8657_v63  ;;  %v4272_v28 = vmul.f32 %v8944_v43, %v8944_v43  ;;  %v8970_v19 = vadd.f32 %v8681_v40, %v8655_v38 }
 0x6c8   : > { %v4172_v0 = vadd.f32 %v4171_v13, %v8912_v6  ;;  %v4311_v51 = vadd.f32 %v4310_v59, %v4266_v36  ;;  %v4208_v11 = vadd.f32 %v4207_v32, %v8898_v15  ;;  %v4347_v54 = vadd.f32 %v4346_v16, %v4265_v50  ;;  %v4139_v32 = vpop.f32.mrf.mxu1 }
 0x6c9   : > { %10020 = vst [vmem:[#allocation30_spill] sm:$0xff] %v8952_v35  ;;  %v4271_v16 = vmul.f32 %v8940_v34, %v8940_v34  ;;  %v4275_v40 = vmul.f32 %v8960_v7, %v8960_v7 }
 0x6ca   : > { %v4312_v13 = vadd.f32 %v4311_v51, %v4268_v56  ;;  %v4209_v36 = vadd.f32 %v4208_v11, %v8916_v4  ;;  %v4348_v59 = vadd.f32 %v4347_v54, %v4267_v52  ;;  %v4173_v50 = vadd.f32 %v4172_v0, %v8928_v42 }
 0x6cb   : > { %v4273_v11 = vmul.f32 %v8952_v35, %v8952_v35  ;;  %v4274_v54 = vmul.f32 %v8956_v17, %v8956_v17  ;;  %v8986_v4 = vadd.f32 %v8711_v23, %v8655_v38  ;;  %v9000_v23 = vadd.f32 %v8737_v20, %v8655_v38 }
 0x6cc   : > { %v4349_v56 = vadd.f32 %v4348_v59, %v4269_v60  ;;  %v4174_v52 = vadd.f32 %v4173_v50, %v8944_v43  ;;  %v4313_v51 = vadd.f32 %v4312_v13, %v4270_v9  ;;  %v4210_v0 = vadd.f32 %v4209_v36, %v8940_v34  ;;  %v4143_v36 = vpop.f32.mrf.mxu1 }
 0x6cd   : > { %v4276_v59 = vmul.f32 %v8970_v19, %v8970_v19  ;;  %v4277_v50 = vmul.f32 %v8974_v37, %v8974_v37  ;;  %v8996_v34 = vadd.f32 %v8726_v57, %v8657_v63  ;;  %v9012_v57 = vadd.f32 %v8779_v21, %v8655_v38 }
 0x6ce   : > { %v4175_v18 = vadd.f32 %v4174_v52, %v8956_v17  ;;  %v4314_v60 = vadd.f32 %v4313_v51, %v4272_v28  ;;  %v4211_v9 = vadd.f32 %v4210_v0, %v8952_v35  ;;  %v4350_v13 = vadd.f32 %v4349_v56, %v4271_v16 }
 0x6cf   : > { %10023 = vst [vmem:[#allocation33_spill] sm:$0xff] %v8996_v34  ;;  %v4278_v51 = vmul.f32 %v8986_v4, %v8986_v4  ;;  %v9008_v0 = vadd.f32 %v8759_v46, %v8657_v63  ;;  %v9016_v20 = vadd.f32 %v8801_v8, %v8657_v63  ;;  %v4280_v46 = vmul.f32 %v9000_v23, %v9000_v23 }
 0x6d0   : > { %v4176_v28 = vadd.f32 %v4175_v18, %v8970_v19  ;;  %v4315_v52 = vadd.f32 %v4314_v60, %v4274_v54  ;;  %v4212_v16 = vadd.f32 %v4211_v9, %v8960_v7  ;;  %v4351_v56 = vadd.f32 %v4350_v13, %v4273_v11  ;;  %v4145_v9 = vpop.f32.mrf.mxu1 }
 0x6d1   : > { %10024 = vst [vmem:[#allocation34_spill] sm:$0xff] %v9008_v0  ;;  %10025 = vst [vmem:[#allocation35_spill] sm:$0xff] %v9016_v20  ;;  %v4279_v13 = vmul.f32 %v8996_v34, %v8996_v34  ;;  %v9026_v21 = vadd.f32 %v8827_v49, %v8655_v38  ;;  %v9030_v8 = vadd.f32 %v8851_v33, %v8657_v63 }
 0x6d2   : > { %v4177_v54 = vadd.f32 %v4176_v28, %v8986_v4  ;;  %v4316_v18 = vadd.f32 %v4315_v52, %v4276_v59  ;;  %v4213_v11 = vadd.f32 %v4212_v16, %v8974_v37  ;;  %v4352_v60 = vadd.f32 %v4351_v56, %v4275_v40 }
 0x6d3   : > { %10026 = vst [vmem:[#allocation36_spill] sm:$0xff] %v9030_v8  ;;  %v4281_v16 = vmul.f32 %v9008_v0, %v9008_v0  ;;  %v4282_v56 = vmul.f32 %v9012_v57, %v9012_v57  ;;  %v4283_v49 = vmul.f32 %v9016_v20, %v9016_v20  ;;  %v9042_v37 = vadd.f32 %v8871_v41, %v8655_v38 }
 0x6d4   : > { %v4317_v28 = vadd.f32 %v4316_v18, %v4278_v51  ;;  %v4214_v59 = vadd.f32 %v4213_v11, %v8996_v34  ;;  %v4353_v52 = vadd.f32 %v4352_v60, %v4277_v50  ;;  %v4178_v40 = vadd.f32 %v4177_v54, %v9000_v23  ;;  %v4149_v54 = vpop.f32.mrf.mxu1 }
 0x6d5   : > { %v4284_v11 = vmul.f32 %v9026_v21, %v9026_v21  ;;  %v4285_v60 = vmul.f32 %v9030_v8, %v9030_v8  ;;  %v9052_v34 = vadd.f32 %v8904_v53, %v8657_v63  ;;  %v9056_v41 = vadd.f32 %v8932_v26, %v8655_v38 }
 0x6d6   : > { %v4354_v33 = vadd.f32 %v4353_v52, %v4279_v13  ;;  %v4318_v51 = vadd.f32 %v4317_v28, %v4280_v46  ;;  %v4215_v18 = vadd.f32 %v4214_v59, %v9008_v0  ;;  %v4179_v50 = vadd.f32 %v4178_v40, %v9012_v57 }
 0x6d7   : > { %10027 = vst [vmem:[#allocation37_spill] sm:$0xff] %v9052_v34  ;;  %v4286_v52 = vmul.f32 %v9042_v37, %v9042_v37  ;;  %v9063_v40 = vadd.f32 %v4139_v32, %v8657_v63  ;;  %v9066_v0 = vadd.f32 %v4143_v36, %v8655_v38  ;;  %v9069_v53 = vadd.f32 %v4149_v54, %v8655_v38 }
 0x6d8   : > { %v4355_v13 = vadd.f32 %v4354_v33, %v4281_v16  ;;  %v4319_v46 = vadd.f32 %v4318_v51, %v4282_v56  ;;  %v4216_v28 = vadd.f32 %v4215_v18, %v9016_v20  ;;  %v4180_v59 = vadd.f32 %v4179_v50, %v9026_v21  ;;  %v4151_v33 = vpop.f32.mrf.mxu1 }
 0x6d9   : > { %10028 = vst [vmem:[#allocation38_spill] sm:$0xff] %v9063_v40  ;;  %v4287_v51 = vmul.f32 %v9052_v34, %v9052_v34  ;;  %v4288_v32 = vmul.f32 %v9056_v41, %v9056_v41  ;;  %v9078_v18 = vadd.f32 %v4145_v9, %v8657_v63  ;;  %v4289_v54 = vmul.f32 %v9063_v40, %v9063_v40 }
 0x6da   : > { %v4356_v26 = vadd.f32 %v4355_v13, %v4283_v49  ;;  %v4320_v7 = vadd.f32 %v4319_v46, %v4284_v11  ;;  %v4217_v16 = vadd.f32 %v4216_v28, %v9030_v8  ;;  %v4181_v56 = vadd.f32 %v4180_v59, %v9042_v37 }
 0x6db   : > { %10029 = vst [vmem:[#allocation39_spill] sm:$0xff] %v9078_v18  ;;  %v4290_v11 = vmul.f32 %v9066_v0, %v9066_v0  ;;  %v4292_v13 = vmul.f32 %v9069_v53, %v9069_v53  ;;  %v9089_v46 = vadd.f32 %v4151_v33, %v8657_v63  ;;  %v4291_v59 = vmul.f32 %v9078_v18, %v9078_v18 }
 0x6dc   : > { %v4357_v36 = vadd.f32 %v4356_v26, %v4285_v60  ;;  %v4321_v50 = vadd.f32 %v4320_v7, %v4286_v52  ;;  %v4218_v38 = vadd.f32 %v4217_v16, %v9052_v34  ;;  %v4182_v49 = vadd.f32 %v4181_v56, %v9056_v41 }
 0x6dd   : > { %v4293_v34 = vmul.f32 %v9089_v46, %v9089_v46 }
 0x6de   : > { %v4358_v9 = vadd.f32 %v4357_v36, %v4287_v51  ;;  %v4322_v28 = vadd.f32 %v4321_v50, %v4288_v32  ;;  %v4219_v7 = vadd.f32 %v4218_v38, %v9063_v40  ;;  %v4183_v60 = vadd.f32 %v4182_v49, %v9066_v0 }
 0x6e0   : > { %v4359_v52 = vadd.f32 %v4358_v9, %v4289_v54  ;;  %v4323_v26 = vadd.f32 %v4322_v28, %v4290_v11  ;;  %v4220_v16 = vadd.f32 %v4219_v7, %v9078_v18  ;;  %v4184_v56 = vadd.f32 %v4183_v60, %v9069_v53 }
 0x6e1   : > { %v4508_v9 = vsub.s32 1, %v8634_v62  ;;  %v4590_v28 = vsub.s32 2, %v8634_v62  ;;  %v4512_v7 = vsub.s32 5, %v8634_v62 }
 0x6e2   : > { %v4360_v63 = vadd.f32 %v4359_v52, %v4291_v59  ;;  %v4185_v33 = vrot.slane %v4184_v56, 4  ;;  %v4324_v51 = vadd.f32 %v4323_v26, %v4292_v13  ;;  %v4221_v32 = vadd.f32 %v4220_v16, %v9089_v46 }
 0x6e3   : > { %v4594_v26 = vsub.s32 6, %v8634_v62 }
 0x6e4   : > { %v4186_v36 = vadd.f32 %v4185_v33, %v4184_v56  ;;  %v4325_v50 = vrot.slane %v4324_v51, 4  ;;  %v4222_v38 = vrot.slane %v4221_v32, 4  ;;  %v4361_v49 = vadd.f32 %v4360_v63, %v4293_v34 }
 0x6e5   : > { %v4509_v63 = vrot.slane %v8642_v29, %v4508_v9  ;;  %v4595_v18 = vrot.slane %v8642_v29, %v4594_v26 }
 0x6e6   : > { %v4187_v40 = vrot.slane %v4186_v36, 2  ;;  %v4326_v8 = vadd.f32 %v4325_v50, %v4324_v51  ;;  %v4223_v54 = vadd.f32 %v4222_v38, %v4221_v32  ;;  %v4362_v11 = vrot.slane %v4361_v49, 4 }
 0x6e7   : > { %v4591_v51 = vrot.slane %v8642_v29, %v4590_v28  ;;  %v4513_v32 = vrot.slane %v8642_v29, %v4512_v7  ;;  %v9110_v62 = vrot.slane %v4509_v63, %v4508_v9  ;;  %v9118_v7 = vrot.slane %v4595_v18, %v4590_v28 }
 0x6e8   : > { %v4188_v60 = vadd.f32 %v4187_v40, %v4186_v36  ;;  %v4327_v59 = vrot.slane %v4326_v8, 2  ;;  %v4224_v52 = vrot.slane %v4223_v54, 2  ;;  %v4363_v13 = vadd.f32 %v4362_v11, %v4361_v49 }
 0x6e9   : > { %10031 = vst [vmem:[#allocation41_spill] sm:$0xff] %v9118_v7 }
 0x6ea   : > { %v4189_v16 = vrot.slane %v4188_v60, 1  ;;  %v4328_v56 = vadd.f32 %v4327_v59, %v4326_v8  ;;  %v4225_v33 = vadd.f32 %v4224_v52, %v4223_v54  ;;  %v4364_v34 = vrot.slane %v4363_v13, 2 }
 0x6eb   : > { %v9112_v8 = vrot.slane %v4591_v51, %v4590_v28  ;;  %v9114_v54 = vrot.slane %v4513_v32, %v4508_v9  ;;  %v10041_v51 = vld [vmem:[#allocation19_spill] sm:$0xff]  ;;  %v10043_v28 = vld [vmem:[#allocation21_spill] sm:$0xff]  ;;  %v10057_v9 = vld [vmem:[#allocation38_spill] sm:$0xff] }
 0x6ec   : > { %v4190_v50 = vadd.f32 %v4189_v16, %v4188_v60  ;;  %v4329_v38 = vrot.slane %v4328_v56, 1  ;;  %v4226_v40 = vrot.slane %v4225_v33, 1  ;;  %v4365_v36 = vadd.f32 %v4364_v34, %v4363_v13 }
 0x6ed   : > { %10030 = vst [vmem:[#allocation40_spill] sm:$0xff] %v9112_v8 }
 0x6ee   : > { %v9108_v20 = vmul.f32 0.00390625, %v4190_v50  ;;  %v4330_v49 = vadd.f32 %v4329_v38, %v4328_v56  ;;  %v4227_v60 = vadd.f32 %v4226_v40, %v4225_v33  ;;  %v4366_v52 = vrot.slane %v4365_v36, 1  ;;  %v10036_v33 = vld [vmem:[#allocation14_spill] sm:$0xff]  ;;  %v10045_v56 = vld [vmem:[#allocation23_spill] sm:$0xff]  ;;  %v10051_v40 = vld [vmem:[#allocation32_spill] sm:$0xff] }
 0x6f0   : > { %v4368_v11 = vmul.f32 0.00390625, %v4330_v49  ;;  %v4370_v59 = vmul.f32 %v9108_v20, %v9108_v20  ;;  %v9176_v49 = vmul.f32 0.00390625, %v4227_v60  ;;  %v10037_v60 = vld [vmem:[#allocation15_spill] sm:$0xff]  ;;  %v10058_v16 = vsub.f32 %v9069_v53, %v9108_v20 }
 0x6f1   : > { %v10061_v7 = vsub.f32 %v8662_v3, %v9108_v20  ;;  %v10062_v35 = vsub.f32 %v8673_v55, %v9108_v20  ;;  %v10066_v3 = vsub.f32 %v8731_v24, %v9108_v20  ;;  %v10071_v24 = vsub.f32 %v8797_v10, %v9108_v20 }
 0x6f2   : > { %v4372_v13 = vsub.f32 %v4368_v11, %v4370_v59  ;;  %v4371_v38 = vmul.f32 %v9176_v49, %v9176_v49  ;;  %v10033_v59 = vld [vmem:[#allocation11_spill] sm:$0xff]  ;;  %v10063_v11 = vsub.f32 %v8686_v2, %v9108_v20  ;;  %v10075_v10 = vsub.f32 %v8869_v31, %v9108_v20 }
 0x6f3   : > { %v10079_v31 = vsub.f32 %v8912_v6, %v9108_v20  ;;  %v10083_v6 = vsub.f32 %v8970_v19, %v9108_v20  ;;  %v10087_v19 = vsub.f32 %v9026_v21, %v9108_v20 }
 0x6f4   : > { %v4438_v34 = vadd.f32 1e-05, %v4372_v13  ;;  %v10034_v13 = vld [vmem:[#allocation12_spill] sm:$0xff] }
 0x6f6   : > { %5269 = vrsqrt.f32 %v4438_v34  ;;  %v4367_v34 = vadd.f32 %v4366_v52, %v4365_v36  ;;  %v10032_v52 = vld [vmem:[#allocation10_spill] sm:$0xff] }
 0x6f8   : > { %v4369_v32 = vmul.f32 0.00390625, %v4367_v34  ;;  %v10035_v34 = vld [vmem:[#allocation13_spill] sm:$0xff] }
 0x6fa   : > { %v4373_v63 = vsub.f32 %v4369_v32, %v4371_v38  ;;  %v10042_v32 = vld [vmem:[#allocation20_spill] sm:$0xff]  ;;  %v10054_v38 = vld [vmem:[#allocation35_spill] sm:$0xff] }
 0x6fc   : > { %v4439_v50 = vadd.f32 1e-05, %v4373_v63 }
 0x6fe   : > { %5271 = vrsqrt.f32 %v4439_v50  ;;  %v10060_v50 = vsub.f32 %v8670_v22, %v9108_v20  ;;  %v10065_v22 = vsub.f32 %v8718_v30, %v9108_v20 }
 0x703   : > { %v5270_v15 = vpop.eup %5269 }
 0x704   : > { %v4504_v47 = vmul.f32 %v5270_v15, %v10058_v16  ;;  %v4442_v29 = vmul.f32 %v5270_v15, %v10060_v50  ;;  %v4444_v18 = vmul.f32 %v5270_v15, %v10061_v7  ;;  %v4446_v36 = vmul.f32 %v5270_v15, %v10062_v35 }
 0x705   : > { %v4448_v53 = vmul.f32 %v5270_v15, %v10063_v11  ;;  %v10064_v16 = vsub.f32 %v8700_v1, %v9108_v20  ;;  %v4452_v50 = vmul.f32 %v5270_v15, %v10065_v22  ;;  %v4454_v55 = vmul.f32 %v5270_v15, %v10066_v3 }
 0x706   : > { %v4586_v26 = vmul.f32 %v9110_v62, %v4504_v47  ;;  %v10067_v35 = vsub.f32 %v8745_v48, %v9108_v20  ;;  %v10068_v7 = vsub.f32 %v8757_v39, %v9108_v20  ;;  %v10069_v11 = vsub.f32 %v8772_v27, %v9108_v20 }
 0x707   : > { %v4450_v63 = vmul.f32 %v5270_v15, %v10064_v16  ;;  %v10070_v47 = vsub.f32 %v8786_v45, %v9108_v20  ;;  %v9296_v22 = vmul.f32 %v5270_v15, %v10071_v24  ;;  %v10072_v48 = vsub.f32 %v8811_v61, %v9108_v20 }
 0x708   : > { %v4456_v2 = vmul.f32 %v5270_v15, %v10067_v35  ;;  %v4458_v1 = vmul.f32 %v5270_v15, %v10068_v7  ;;  %v9286_v30 = vmul.f32 %v5270_v15, %v10069_v11  ;;  %v4668_v3 = vadd.f32 %v9112_v8, %v4586_v26  ;;  %v10139_v8 = vld [vmem:[#allocation31_spill] sm:$0xff] }
 0x709   : > { %v9291_v16 = vmul.f32 %v5270_v15, %v10070_v47  ;;  %v9301_v39 = vmul.f32 %v5270_v15, %v10072_v48  ;;  %v10073_v27 = vsub.f32 %v8825_v5, %v9108_v20  ;;  %v10074_v45 = vsub.f32 %v8849_v58, %v9108_v20 }
 0x70a   : > { %v9317_v11 = vmul.f32 %v5270_v15, %v10075_v10  ;;  %v10076_v61 = vsub.f32 %v8835_v44, %v9108_v20  ;;  %v10077_v5 = vsub.f32 %v8879_v12, %v9108_v20  ;;  %v10078_v58 = vsub.f32 %v8894_v25, %v9108_v20  ;;  %4732 = vst [vmem:[%s5541_s16 + $0x1f0] sm:$0xff] %v4668_v3 }
 0x70b   : > { %v9307_v35 = vmul.f32 %v5270_v15, %v10073_v27  ;;  %v9312_v7 = vmul.f32 %v5270_v15, %v10074_v45  ;;  %v9337_v48 = vmul.f32 %v5270_v15, %v10079_v31  ;;  %v10080_v44 = vsub.f32 %v8928_v42, %v9108_v20 }
 0x70c   : > { %v9322_v47 = vmul.f32 %v5270_v15, %v10076_v61  ;;  %v9327_v26 = vmul.f32 %v5270_v15, %v10077_v5  ;;  %v9332_v24 = vmul.f32 %v5270_v15, %v10078_v58  ;;  %v10081_v12 = vsub.f32 %v8944_v43, %v9108_v20 }
 0x70d   : > { %v9343_v27 = vmul.f32 %v5270_v15, %v10080_v44  ;;  %v10082_v25 = vsub.f32 %v8956_v17, %v9108_v20  ;;  %v9358_v61 = vmul.f32 %v5270_v15, %v10083_v6  ;;  %v10084_v42 = vsub.f32 %v8986_v4, %v9108_v20 }
 0x70e   : > { %v9348_v45 = vmul.f32 %v5270_v15, %v10081_v12  ;;  %v10085_v43 = vsub.f32 %v9000_v23, %v9108_v20  ;;  %v10086_v17 = vsub.f32 %v9012_v57, %v9108_v20  ;;  %v9378_v31 = vmul.f32 %v5270_v15, %v10087_v19 }
 0x70f   : > { %v9353_v10 = vmul.f32 %v5270_v15, %v10082_v25  ;;  %v9363_v3 = vmul.f32 %v5270_v15, %v10084_v42  ;;  %v10089_v4 = vsub.f32 %v9042_v37, %v9108_v20  ;;  %v10091_v23 = vsub.f32 %v9056_v41, %v9108_v20 }
 0x710   : > { %v9368_v5 = vmul.f32 %v5270_v15, %v10085_v43  ;;  %v9373_v58 = vmul.f32 %v5270_v15, %v10086_v17  ;;  %10088 = vst [vmem:[#allocation10_spill] sm:$0xff] %v9378_v31  ;;  %v10093_v57 = vsub.f32 %v9066_v0, %v9108_v20  ;;  %v9396_v6 = vmul.f32 %v9110_v62, %v4442_v29  ;;  %v5272_v43 = vpop.eup %5271 }
 0x711   : > { %v9383_v44 = vmul.f32 %v5270_v15, %v10089_v4  ;;  %v9388_v12 = vmul.f32 %v5270_v15, %v10091_v23  ;;  %v9399_v21 = vmul.f32 %v9110_v62, %v4444_v18  ;;  %v9402_v37 = vmul.f32 %v9110_v62, %v4446_v36 }
 0x712   : > { %v9393_v25 = vmul.f32 %v5270_v15, %v10093_v57  ;;  %10095 = vst [vmem:[#allocation14_spill] sm:$0xff] %v9396_v6  ;;  %v9405_v42 = vmul.f32 %v9110_v62, %v4448_v53  ;;  %v9408_v41 = vmul.f32 %v9110_v62, %v4450_v63  ;;  %v9411_v0 = vmul.f32 %v9110_v62, %v4452_v50  ;;  %v10142_v6 = vld [vmem:[#allocation33_spill] sm:$0xff] }
 0x713   : > { %10090 = vst [vmem:[#allocation11_spill] sm:$0xff] %v9383_v44  ;;  %10092 = vst [vmem:[#allocation12_spill] sm:$0xff] %v9388_v12  ;;  %v9414_v15 = vmul.f32 %v9110_v62, %v4454_v55  ;;  %v9417_v20 = vmul.f32 %v9110_v62, %v4456_v2  ;;  %v9420_v29 = vmul.f32 %v9110_v62, %v4458_v1  ;;  %v10149_v12 = vld [vmem:[#allocation37_spill] sm:$0xff]  ;;  %v10152_v44 = vld [vmem:[#allocation39_spill] sm:$0xff] }
 0x714   : > { %10094 = vst [vmem:[#allocation13_spill] sm:$0xff] %v9393_v25  ;;  %10096 = vst [vmem:[#allocation15_spill] sm:$0xff] %v9399_v21  ;;  %v10104_v18 = vsub.f32 %v9089_v46, %v9176_v49  ;;  %v10105_v63 = vsub.f32 %v8676_v14, %v9176_v49  ;;  %v10106_v50 = vsub.f32 %v10032_v52, %v9176_v49  ;;  %v10135_v21 = vld [vmem:[#allocation29_spill] sm:$0xff]  ;;  %v10144_v25 = vld [vmem:[#allocation34_spill] sm:$0xff] }
 0x715   : > { %10097 = vst [vmem:[#allocation19_spill] sm:$0xff] %v9402_v37  ;;  %10098 = vst [vmem:[#allocation20_spill] sm:$0xff] %v9405_v42  ;;  %v10107_v55 = vsub.f32 %v10033_v59, %v9176_v49  ;;  %v10108_v1 = vsub.f32 %v10034_v13, %v9176_v49  ;;  %v10109_v46 = vsub.f32 %v10035_v34, %v9176_v49  ;;  %v10112_v59 = vld [vmem:[#allocation16_spill] sm:$0xff] }
 0x716   : > { %10099 = vst [vmem:[#allocation21_spill] sm:$0xff] %v9408_v41  ;;  %10100 = vst [vmem:[#allocation23_spill] sm:$0xff] %v9411_v0  ;;  %v4505_v36 = vmul.f32 %v5272_v43, %v10104_v18  ;;  %v4443_v53 = vmul.f32 %v5272_v43, %v10105_v63  ;;  %v4445_v17 = vmul.f32 %v5272_v43, %v10106_v50  ;;  %v10114_v50 = vld [vmem:[#allocation17_spill] sm:$0xff]  ;;  %v10133_v37 = vld [vmem:[#allocation28_spill] sm:$0xff] }
 0x717   : > { %10101 = vst [vmem:[#allocation32_spill] sm:$0xff] %v9414_v15  ;;  %10102 = vst [vmem:[#allocation35_spill] sm:$0xff] %v9417_v20  ;;  %v4447_v2 = vmul.f32 %v5272_v43, %v10107_v55  ;;  %v4449_v19 = vmul.f32 %v5272_v43, %v10108_v1  ;;  %v4451_v4 = vmul.f32 %v5272_v43, %v10109_v46  ;;  %v10116_v1 = vld [vmem:[#allocation18_spill] sm:$0xff]  ;;  %v10123_v20 = vld [vmem:[#allocation41_spill] sm:$0xff] }
 0x718   : > { %10103 = vst [vmem:[#allocation38_spill] sm:$0xff] %v9420_v29  ;;  %v10110_v14 = vsub.f32 %v10036_v33, %v9176_v49  ;;  %v10111_v52 = vsub.f32 %v10037_v60, %v9176_v49  ;;  %v4587_v18 = vmul.f32 %v9114_v54, %v4505_v36  ;;  %v10113_v63 = vsub.f32 %v10112_v59, %v9176_v49  ;;  %v10121_v29 = vld [vmem:[#allocation22_spill] sm:$0xff] }
 0x719   : > { %v10115_v55 = vsub.f32 %v10114_v50, %v9176_v49  ;;  %v10117_v46 = vsub.f32 %v10116_v1, %v9176_v49  ;;  %v10119_v36 = vsub.f32 %v10042_v32, %v9176_v49  ;;  %v10120_v59 = vsub.f32 %v10043_v28, %v9176_v49  ;;  %v10127_v32 = vld [vmem:[#allocation24_spill] sm:$0xff]  ;;  %v10129_v28 = vld [vmem:[#allocation26_spill] sm:$0xff] }
 0x71a   : > { %v4453_v23 = vmul.f32 %v5272_v43, %v10110_v14  ;;  %v4455_v57 = vmul.f32 %v5272_v43, %v10111_v52  ;;  %v4457_v13 = vmul.f32 %v5272_v43, %v10113_v63  ;;  %v10118_v14 = vsub.f32 %v10041_v51, %v9176_v49  ;;  %v10125_v51 = vld [vmem:[#allocation25_spill] sm:$0xff] }
 0x71b   : > { %v4459_v34 = vmul.f32 %v5272_v43, %v10115_v55  ;;  %v4461_v33 = vmul.f32 %v5272_v43, %v10117_v46  ;;  %v4465_v52 = vmul.f32 %v5272_v43, %v10119_v36  ;;  %v4467_v63 = vmul.f32 %v5272_v43, %v10120_v59 }
 0x71c   : > { %v4463_v60 = vmul.f32 %v5272_v43, %v10118_v14  ;;  %v10122_v50 = vsub.f32 %v10121_v29, %v9176_v49  ;;  %v4669_v15 = vadd.f32 %v10123_v20, %v4587_v18  ;;  %v10124_v1 = vsub.f32 %v10045_v56, %v9176_v49  ;;  %v10131_v29 = vld [vmem:[#allocation27_spill] sm:$0xff]  ;;  %v10137_v20 = vld [vmem:[#allocation30_spill] sm:$0xff] }
 0x71d   : > { %v10126_v14 = vsub.f32 %v10125_v51, %v9176_v49  ;;  %v10128_v36 = vsub.f32 %v10127_v32, %v9176_v49  ;;  %v10130_v59 = vsub.f32 %v10129_v28, %v9176_v49  ;;  %v10134_v56 = vsub.f32 %v10133_v37, %v9176_v49 }
 0x71e   : > { %v4469_v55 = vmul.f32 %v5272_v43, %v10122_v50  ;;  %v4471_v46 = vmul.f32 %v5272_v43, %v10124_v1  ;;  %v10132_v50 = vsub.f32 %v10131_v29, %v9176_v49  ;;  %v10136_v51 = vsub.f32 %v10135_v21, %v9176_v49  ;;  %4733 = vst [vmem:[%s5541_s16 + $0x1f8] sm:$0xff] %v4669_v15 }
 0x71f   : > { %v4473_v0 = vmul.f32 %v5272_v43, %v10126_v14  ;;  %v4475_v41 = vmul.f32 %v5272_v43, %v10128_v36  ;;  %v4477_v42 = vmul.f32 %v5272_v43, %v10130_v59  ;;  %v4481_v1 = vmul.f32 %v5272_v43, %v10134_v56 }
 0x720   : > { %v4479_v18 = vmul.f32 %v5272_v43, %v10132_v50  ;;  %v4483_v14 = vmul.f32 %v5272_v43, %v10136_v51  ;;  %v10138_v32 = vsub.f32 %v10137_v20, %v9176_v49  ;;  %v10140_v28 = vsub.f32 %v10139_v8, %v9176_v49 }
 0x721   : > { %v10141_v29 = vsub.f32 %v10051_v40, %v9176_v49  ;;  %v10143_v37 = vsub.f32 %v10142_v6, %v9176_v49  ;;  %v10145_v21 = vsub.f32 %v10144_v25, %v9176_v49  ;;  %v10146_v20 = vsub.f32 %v10054_v38, %v9176_v49 }
 0x722   : > { %v4485_v36 = vmul.f32 %v5272_v43, %v10138_v32  ;;  %v4487_v59 = vmul.f32 %v5272_v43, %v10140_v28  ;;  %v10147_v32 = vld [vmem:[#allocation36_spill] sm:$0xff]  ;;  %v10150_v40 = vsub.f32 %v10149_v12, %v9176_v49  ;;  %v10151_v6 = vsub.f32 %v10057_v9, %v9176_v49 }
 0x723   : > { %v4489_v50 = vmul.f32 %v5272_v43, %v10141_v29  ;;  %v4491_v56 = vmul.f32 %v5272_v43, %v10143_v37  ;;  %v4493_v15 = vmul.f32 %v5272_v43, %v10145_v21  ;;  %v4495_v51 = vmul.f32 %v5272_v43, %v10146_v20 }
 0x724   : > { %v10148_v8 = vsub.f32 %v10147_v32, %v9176_v49  ;;  %v4499_v29 = vmul.f32 %v5272_v43, %v10150_v40  ;;  %v4501_v37 = vmul.f32 %v5272_v43, %v10151_v6  ;;  %v10153_v25 = vsub.f32 %v10152_v44, %v9176_v49  ;;  %v10162_v6 = vld [vmem:[#allocation14_spill] sm:$0xff] }
 0x725   : > { %v4525_v31 = vmul.f32 %v9114_v54, %v4443_v53  ;;  %v4527_v38 = vmul.f32 %v9114_v54, %v4445_v17  ;;  %v4529_v20 = vmul.f32 %v9114_v54, %v4447_v2  ;;  %v4531_v32 = vmul.f32 %v9114_v54, %v4449_v19 }
 0x726   : > { %v4497_v28 = vmul.f32 %v5272_v43, %v10148_v8  ;;  %v4503_v21 = vmul.f32 %v5272_v43, %v10153_v25  ;;  %v4533_v8 = vmul.f32 %v9114_v54, %v4451_v4  ;;  %v4535_v12 = vmul.f32 %v9114_v54, %v4453_v23  ;;  %v10163_v25 = vld [vmem:[#allocation40_spill] sm:$0xff] }
 0x727   : > { %v9528_v40 = vmul.f32 %v9114_v54, %v4455_v57  ;;  %v9531_v9 = vmul.f32 %v9114_v54, %v4457_v13  ;;  %v9534_v49 = vmul.f32 %v9114_v54, %v4459_v34  ;;  %v9538_v44 = vmul.f32 %v9110_v62, %v9286_v30 }
 0x728   : > { %v9541_v43 = vmul.f32 %v9114_v54, %v4461_v33  ;;  %v9545_v53 = vmul.f32 %v9110_v62, %v9291_v16  ;;  %v9548_v17 = vmul.f32 %v9114_v54, %v4463_v60  ;;  %v9552_v2 = vmul.f32 %v9110_v62, %v9296_v22 }
 0x729   : > { %v9555_v19 = vmul.f32 %v9114_v54, %v4465_v52  ;;  %v9559_v30 = vmul.f32 %v9110_v62, %v9301_v39  ;;  %v9562_v4 = vmul.f32 %v9114_v54, %v4467_v63  ;;  %v9566_v16 = vmul.f32 %v9110_v62, %v9307_v35 }
 0x72a   : > { %v9569_v23 = vmul.f32 %v9114_v54, %v4469_v55  ;;  %v9573_v22 = vmul.f32 %v9110_v62, %v9312_v7  ;;  %v9576_v57 = vmul.f32 %v9114_v54, %v4471_v46  ;;  %v9580_v39 = vmul.f32 %v9110_v62, %v9317_v11 }
 0x72b   : > { %v9583_v13 = vmul.f32 %v9114_v54, %v4473_v0  ;;  %v9587_v35 = vmul.f32 %v9110_v62, %v9322_v47  ;;  %v9590_v34 = vmul.f32 %v9114_v54, %v4475_v41  ;;  %v9594_v7 = vmul.f32 %v9110_v62, %v9327_v26 }
 0x72c   : > { %v9597_v33 = vmul.f32 %v9114_v54, %v4477_v42  ;;  %v9601_v11 = vmul.f32 %v9110_v62, %v9332_v24  ;;  %v9604_v0 = vmul.f32 %v9114_v54, %v4479_v18  ;;  %v9608_v47 = vmul.f32 %v9110_v62, %v9337_v48 }
 0x72d   : > { %v9611_v41 = vmul.f32 %v9114_v54, %v4481_v1  ;;  %v9615_v26 = vmul.f32 %v9110_v62, %v9343_v27  ;;  %v9618_v42 = vmul.f32 %v9114_v54, %v4483_v14  ;;  %v9622_v24 = vmul.f32 %v9110_v62, %v9348_v45  ;;  %v10154_v1 = vld [vmem:[#allocation10_spill] sm:$0xff] }
 0x72e   : > { %v9625_v60 = vmul.f32 %v9114_v54, %v4485_v36  ;;  %v9629_v48 = vmul.f32 %v9110_v62, %v9353_v10  ;;  %v9632_v52 = vmul.f32 %v9114_v54, %v4487_v59  ;;  %v9636_v27 = vmul.f32 %v9110_v62, %v9358_v61  ;;  %v10155_v36 = vld [vmem:[#allocation11_spill] sm:$0xff] }
 0x72f   : > { %v9639_v63 = vmul.f32 %v9114_v54, %v4489_v50  ;;  %v9643_v45 = vmul.f32 %v9110_v62, %v9363_v3  ;;  %v9646_v55 = vmul.f32 %v9114_v54, %v4491_v56  ;;  %v9650_v10 = vmul.f32 %v9110_v62, %v9368_v5 }
 0x730   : > { %v9653_v46 = vmul.f32 %v9114_v54, %v4493_v15  ;;  %v9657_v61 = vmul.f32 %v9110_v62, %v9373_v58  ;;  %v9660_v18 = vmul.f32 %v9114_v54, %v4495_v51  ;;  %v9664_v3 = vmul.f32 %v9110_v62, %v10154_v1  ;;  %v10156_v58 = vld [vmem:[#allocation12_spill] sm:$0xff]  ;;  %v10159_v15 = vld [vmem:[#allocation13_spill] sm:$0xff] }
 0x731   : > { %v9667_v14 = vmul.f32 %v9114_v54, %v4497_v28  ;;  %v9671_v5 = vmul.f32 %v9110_v62, %v10155_v36  ;;  %v9674_v59 = vmul.f32 %v9114_v54, %v4499_v29  ;;  %v9678_v50 = vmul.f32 %v9110_v62, %v10156_v58  ;;  %v10164_v1 = vld [vmem:[#allocation41_spill] sm:$0xff]  ;;  %v10165_v58 = vld [vmem:[#allocation15_spill] sm:$0xff] }
 0x732   : > { %v9681_v56 = vmul.f32 %v9114_v54, %v4501_v37  ;;  %v9685_v51 = vmul.f32 %v9110_v62, %v10159_v15  ;;  %v9688_v28 = vmul.f32 %v9114_v54, %v4503_v21  ;;  %v4606_v29 = vadd.f32 %v10163_v25, %v10162_v6  ;;  %v10167_v54 = vld [vmem:[#allocation20_spill] sm:$0xff] }
 0x733   : > { %10157 = vst [vmem:[#allocation16_spill] sm:$0xff] %v9678_v50  ;;  %v4607_v36 = vadd.f32 %v10164_v1, %v4525_v31  ;;  %v4608_v37 = vadd.f32 %v10163_v25, %v10165_v58  ;;  %v10166_v50 = vld [vmem:[#allocation19_spill] sm:$0xff]  ;;  %v4611_v15 = vadd.f32 %v10164_v1, %v4529_v20  ;;  %v4612_v21 = vadd.f32 %v10163_v25, %v10167_v54 }
 0x734   : > { %10158 = vst [vmem:[#allocation17_spill] sm:$0xff] %v9681_v56  ;;  %10160 = vst [vmem:[#allocation18_spill] sm:$0xff] %v9685_v51  ;;  %v4609_v56 = vadd.f32 %v10164_v1, %v4527_v38  ;;  %v4610_v62 = vadd.f32 %v10163_v25, %v10166_v50  ;;  %v4613_v6 = vadd.f32 %v10164_v1, %v4531_v32  ;;  %v10169_v58 = vld [vmem:[#allocation23_spill] sm:$0xff]  ;;  %v10170_v51 = vld [vmem:[#allocation32_spill] sm:$0xff] }
 0x735   : > { %10161 = vst [vmem:[#allocation22_spill] sm:$0xff] %v9688_v28  ;;  %v10168_v28 = vld [vmem:[#allocation21_spill] sm:$0xff]  ;;  %4670 = vst [vmem:[%s5541_s16] sm:$0xff] %v4606_v29  ;;  %v4615_v38 = vadd.f32 %v10164_v1, %v4533_v8  ;;  %v4616_v50 = vadd.f32 %v10163_v25, %v10169_v58  ;;  %v4617_v20 = vadd.f32 %v10164_v1, %v4535_v12  ;;  %v10171_v8 = vld [vmem:[#allocation35_spill] sm:$0xff] }
 0x736   : > { %v4614_v31 = vadd.f32 %v10163_v25, %v10168_v28  ;;  %v4618_v54 = vadd.f32 %v10163_v25, %v10170_v51  ;;  %4671 = vst [vmem:[%s5541_s16 + $0x8] sm:$0xff] %v4607_v36  ;;  %4672 = vst [vmem:[%s5541_s16 + $0x10] sm:$0xff] %v4608_v37  ;;  %v4619_v32 = vadd.f32 %v10164_v1, %v9528_v40  ;;  %v10172_v29 = vld [vmem:[#allocation38_spill] sm:$0xff] }
 0x737   : > { %4673 = vst [vmem:[%s5541_s16 + $0x18] sm:$0xff] %v4609_v56  ;;  %4674 = vst [vmem:[%s5541_s16 + $0x20] sm:$0xff] %v4610_v62  ;;  %v4620_v28 = vadd.f32 %v10163_v25, %v10171_v8  ;;  %v4621_v12 = vadd.f32 %v10164_v1, %v9531_v9  ;;  %v4622_v51 = vadd.f32 %v10163_v25, %v10172_v29 }
 0x738   : > { %4675 = vst [vmem:[%s5541_s16 + $0x28] sm:$0xff] %v4611_v15  ;;  %4676 = vst [vmem:[%s5541_s16 + $0x30] sm:$0xff] %v4612_v21  ;;  %v4623_v40 = vadd.f32 %v10164_v1, %v9534_v49  ;;  %v4624_v56 = vadd.f32 %v10163_v25, %v9538_v44  ;;  %v4625_v9 = vadd.f32 %v10164_v1, %v9541_v43 }
 0x739   : > { %4677 = vst [vmem:[%s5541_s16 + $0x38] sm:$0xff] %v4613_v6  ;;  %4678 = vst [vmem:[%s5541_s16 + $0x40] sm:$0xff] %v4614_v31  ;;  %v4626_v36 = vadd.f32 %v10163_v25, %v9545_v53  ;;  %v4627_v49 = vadd.f32 %v10164_v1, %v9548_v17  ;;  %v4628_v44 = vadd.f32 %v10163_v25, %v9552_v2 }
 0x73a   : > { %4679 = vst [vmem:[%s5541_s16 + $0x48] sm:$0xff] %v4615_v38  ;;  %4680 = vst [vmem:[%s5541_s16 + $0x50] sm:$0xff] %v4616_v50  ;;  %v4629_v43 = vadd.f32 %v10164_v1, %v9555_v19  ;;  %v4630_v53 = vadd.f32 %v10163_v25, %v9559_v30  ;;  %v4631_v17 = vadd.f32 %v10164_v1, %v9562_v4 }
 0x73b   : > { %4681 = vst [vmem:[%s5541_s16 + $0x58] sm:$0xff] %v4617_v20  ;;  %4682 = vst [vmem:[%s5541_s16 + $0x60] sm:$0xff] %v4618_v54  ;;  %v4632_v2 = vadd.f32 %v10163_v25, %v9566_v16  ;;  %v4633_v19 = vadd.f32 %v10164_v1, %v9569_v23  ;;  %v4634_v30 = vadd.f32 %v10163_v25, %v9573_v22  ;;  %v10175_v62 = vld [vmem:[#allocation18_spill] sm:$0xff] }
 0x73c   : > { %4683 = vst [vmem:[%s5541_s16 + $0x68] sm:$0xff] %v4619_v32  ;;  %4684 = vst [vmem:[%s5541_s16 + $0x70] sm:$0xff] %v4620_v28  ;;  %v4635_v4 = vadd.f32 %v10164_v1, %v9576_v57  ;;  %v4636_v16 = vadd.f32 %v10163_v25, %v9580_v39  ;;  %v4637_v23 = vadd.f32 %v10164_v1, %v9583_v13 }
 0x73d   : > { %4685 = vst [vmem:[%s5541_s16 + $0x78] sm:$0xff] %v4621_v12  ;;  %4686 = vst [vmem:[%s5541_s16 + $0x80] sm:$0xff] %v4622_v51  ;;  %v4638_v22 = vadd.f32 %v10163_v25, %v9587_v35  ;;  %v4639_v57 = vadd.f32 %v10164_v1, %v9590_v34  ;;  %v4640_v39 = vadd.f32 %v10163_v25, %v9594_v7 }
 0x73e   : > { %4687 = vst [vmem:[%s5541_s16 + $0x88] sm:$0xff] %v4623_v40  ;;  %4688 = vst [vmem:[%s5541_s16 + $0x90] sm:$0xff] %v4624_v56  ;;  %v4641_v13 = vadd.f32 %v10164_v1, %v9597_v33  ;;  %v4642_v35 = vadd.f32 %v10163_v25, %v9601_v11  ;;  %v4643_v34 = vadd.f32 %v10164_v1, %v9604_v0 }
 0x73f   : > { %4689 = vst [vmem:[%s5541_s16 + $0x98] sm:$0xff] %v4625_v9  ;;  %4690 = vst [vmem:[%s5541_s16 + $0xa0] sm:$0xff] %v4626_v36  ;;  %v4644_v7 = vadd.f32 %v10163_v25, %v9608_v47  ;;  %v4645_v33 = vadd.f32 %v10164_v1, %v9611_v41  ;;  %v4646_v11 = vadd.f32 %v10163_v25, %v9615_v26 }
 0x740   : > { %4691 = vst [vmem:[%s5541_s16 + $0xa8] sm:$0xff] %v4627_v49  ;;  %4692 = vst [vmem:[%s5541_s16 + $0xb0] sm:$0xff] %v4628_v44  ;;  %v4647_v0 = vadd.f32 %v10164_v1, %v9618_v42  ;;  %v4648_v47 = vadd.f32 %v10163_v25, %v9622_v24  ;;  %v4649_v41 = vadd.f32 %v10164_v1, %v9625_v60 }
 0x741   : > { %4693 = vst [vmem:[%s5541_s16 + $0xb8] sm:$0xff] %v4629_v43  ;;  %4694 = vst [vmem:[%s5541_s16 + $0xc0] sm:$0xff] %v4630_v53  ;;  %v4650_v26 = vadd.f32 %v10163_v25, %v9629_v48  ;;  %v4651_v42 = vadd.f32 %v10164_v1, %v9632_v52  ;;  %v4652_v24 = vadd.f32 %v10163_v25, %v9636_v27 }
 0x742   : > { %4695 = vst [vmem:[%s5541_s16 + $0xc8] sm:$0xff] %v4631_v17  ;;  %4696 = vst [vmem:[%s5541_s16 + $0xd0] sm:$0xff] %v4632_v2  ;;  %v4653_v60 = vadd.f32 %v10164_v1, %v9639_v63  ;;  %v4654_v48 = vadd.f32 %v10163_v25, %v9643_v45  ;;  %v4655_v52 = vadd.f32 %v10164_v1, %v9646_v55 }
 0x743   : > { %4697 = vst [vmem:[%s5541_s16 + $0xd8] sm:$0xff] %v4633_v19  ;;  %4698 = vst [vmem:[%s5541_s16 + $0xe0] sm:$0xff] %v4634_v30  ;;  %v4656_v27 = vadd.f32 %v10163_v25, %v9650_v10  ;;  %v4657_v63 = vadd.f32 %v10164_v1, %v9653_v46  ;;  %v4658_v45 = vadd.f32 %v10163_v25, %v9657_v61 }
 0x744   : > { %4699 = vst [vmem:[%s5541_s16 + $0xe8] sm:$0xff] %v4635_v4  ;;  %4700 = vst [vmem:[%s5541_s16 + $0xf0] sm:$0xff] %v4636_v16  ;;  %v4659_v37 = vadd.f32 %v10164_v1, %v9660_v18  ;;  %v4660_v55 = vadd.f32 %v10163_v25, %v9664_v3  ;;  %v4661_v10 = vadd.f32 %v10164_v1, %v9667_v14  ;;  %v10173_v18 = vld [vmem:[#allocation16_spill] sm:$0xff]  ;;  %v10174_v14 = vld [vmem:[#allocation17_spill] sm:$0xff] }
 0x745   : > { %4701 = vst [vmem:[%s5541_s16 + $0xf8] sm:$0xff] %v4637_v23  ;;  %4702 = vst [vmem:[%s5541_s16 + $0x100] sm:$0xff] %v4638_v22  ;;  %v4662_v46 = vadd.f32 %v10163_v25, %v9671_v5  ;;  %v4663_v61 = vadd.f32 %v10164_v1, %v9674_v59  ;;  %v4664_v3 = vadd.f32 %v10163_v25, %v10173_v18  ;;  %v10176_v59 = vld [vmem:[#allocation22_spill] sm:$0xff] }
 0x746   : > { %4703 = vst [vmem:[%s5541_s16 + $0x108] sm:$0xff] %v4639_v57  ;;  %4704 = vst [vmem:[%s5541_s16 + $0x110] sm:$0xff] %v4640_v39  ;;  %v4665_v5 = vadd.f32 %v10164_v1, %v10174_v14  ;;  %v4666_v15 = vadd.f32 %v10163_v25, %v10175_v62  ;;  %v4667_v21 = vadd.f32 %v10164_v1, %v10176_v59 }
 0x747   : > { %4705 = vst [vmem:[%s5541_s16 + $0x118] sm:$0xff] %v4641_v13  ;;  %4706 = vst [vmem:[%s5541_s16 + $0x120] sm:$0xff] %v4642_v35 }
 0x748   : > { %4707 = vst [vmem:[%s5541_s16 + $0x128] sm:$0xff] %v4643_v34  ;;  %4708 = vst [vmem:[%s5541_s16 + $0x130] sm:$0xff] %v4644_v7 }
 0x749   : > { %4709 = vst [vmem:[%s5541_s16 + $0x138] sm:$0xff] %v4645_v33  ;;  %4710 = vst [vmem:[%s5541_s16 + $0x140] sm:$0xff] %v4646_v11 }
 0x74a   : > { %4711 = vst [vmem:[%s5541_s16 + $0x148] sm:$0xff] %v4647_v0  ;;  %4712 = vst [vmem:[%s5541_s16 + $0x150] sm:$0xff] %v4648_v47 }
 0x74b   : > { %4713 = vst [vmem:[%s5541_s16 + $0x158] sm:$0xff] %v4649_v41  ;;  %4714 = vst [vmem:[%s5541_s16 + $0x160] sm:$0xff] %v4650_v26 }
 0x74c   : > { %4715 = vst [vmem:[%s5541_s16 + $0x168] sm:$0xff] %v4651_v42  ;;  %4716 = vst [vmem:[%s5541_s16 + $0x170] sm:$0xff] %v4652_v24 }
 0x74d   : > { %4717 = vst [vmem:[%s5541_s16 + $0x178] sm:$0xff] %v4653_v60  ;;  %4718 = vst [vmem:[%s5541_s16 + $0x180] sm:$0xff] %v4654_v48 }
 0x74e   : > { %4719 = vst [vmem:[%s5541_s16 + $0x188] sm:$0xff] %v4655_v52  ;;  %4720 = vst [vmem:[%s5541_s16 + $0x190] sm:$0xff] %v4656_v27 }
 0x74f   : > { %4721 = vst [vmem:[%s5541_s16 + $0x198] sm:$0xff] %v4657_v63  ;;  %4722 = vst [vmem:[%s5541_s16 + $0x1a0] sm:$0xff] %v4658_v45 }
 0x750   : > { %4723 = vst [vmem:[%s5541_s16 + $0x1a8] sm:$0xff] %v4659_v37  ;;  %4724 = vst [vmem:[%s5541_s16 + $0x1b0] sm:$0xff] %v4660_v55 }
 0x751   : > { %4725 = vst [vmem:[%s5541_s16 + $0x1b8] sm:$0xff] %v4661_v10  ;;  %4726 = vst [vmem:[%s5541_s16 + $0x1c0] sm:$0xff] %v4662_v46 }
 0x752   : > { %4727 = vst [vmem:[%s5541_s16 + $0x1c8] sm:$0xff] %v4663_v61  ;;  %4728 = vst [vmem:[%s5541_s16 + $0x1d0] sm:$0xff] %v4664_v3 }
 0x753   : > { %4729 = vst [vmem:[%s5541_s16 + $0x1d8] sm:$0xff] %v4665_v5  ;;  %4730 = vst [vmem:[%s5541_s16 + $0x1e0] sm:$0xff] %v4666_v15 }
 0x754   : > { %4731 = vst [vmem:[%s5541_s16 + $0x1e8] sm:$0xff] %v4667_v21 }
 0x755   : > { %5286 = shalt.err (!%p5283_p9)
}
 0x756   : > { %s5287_s16 = scalar_lea.hbm %s9852_s12, 8192  ;;  %s5291_s26 = scalar_lea.hbm %s9929_s10, 32768 }
 0x757   : > { %p5288_p10 = scmp.ne.s32.totalorder %s9852_s12, %s5287_s16  ;;  %p5292_p13 = scmp.lt.s32.totalorder %s9852_s12, %s9929_s10 }
 0x758   : > { %p5293_p0 = scmp.lt.s32.totalorder %s5291_s26, %s5287_s16 }
 0x759   : > { %p5289_p11 = pnand %p5288_p10, %p5444_p6 }
 0x75a   : > { %p5294_p1 = por %p5293_p0, %p5292_p13 }
 0x75b   : > { %p5290_p12 = pneg %p5289_p11 }
 0x75d   : > { %p5295_p2 = pnand %p5294_p1, %p5290_p12 }
 0x75f   : > { %5298 = shalt.err (!%p5295_p2)
}
 0x760   : > { %s5342_s13 = smov 256   ;;  %s5343_s25 = smov 1024  }
 0x761   : > { %s5344_s29 = smov 16  }
 0x762   : > { %5131 = dma.vmem_to_hbm [thread:$0]  (%p5444_p6), %s9866_s21, 8192, %s9852_s12, %s4735_s24, %s5342_s13, %s5343_s25, %s5344_s29  }
 0x763 PF: > { %p5137_p3 = scmp.ge.s32.totalorder %s5333_s20, 2  ;;  %s4769_s30 = sand.u32 1, %s5321_s17  }
 0x764   : > { %s4770_s5 = scalar_lea.sflag [#allocation5], %s4769_s30 }
 0x765   : > { %p5134_p4 = pnand %p5137_p3, %p5448_p8 }
 0x767   : > { %p5135_p5 = pneg %p5134_p4 }
 0x769   : > { %5316 = dma.done.wait (%p5135_p5), %s4770_s5, 8192  }
 0x76a   : > { %5318 = vsyncadd (%p5135_p5), %s4770_s5, 4294959104  ;;  %s10177_s17 = sld [smem:[#allocation7_spill]]  ;;  %p22_p7 = scmp.ge.s32.totalorder %s5430_s23, 6  }
 0x76b   : > { %s10178_s18 = sld [smem:[#allocation8_spill]]  ;;  %s10180_s20 = smov %s5430_s23 }
 0x76c   : > { %s10179_s19 = sld [smem:[#allocation9_spill]]  ;;  %24 = sbr.rel (!%p22_p7) target bundleno = 5 (0x5), region = 138 }
 0x771   :  { %4775 = vsyncpa [#allocation5], 1 }
 0x772   :  { %4777 = vsyncpa [#allocation5 + $0x1], 1 }

</bundles_post_ra>
